<compile_context>
chip_gen: v6e
topology: v6e:2x2x1
jax: 0.10.0
libtpu: 0.0.40
codegen_flags: <defaults>
</compile_context>

<pallas_src>
import jax
import jax.numpy as jnp
from jax.experimental import pallas as pl
from jax.experimental.pallas import tpu as pltpu


# ------------------------------ layout constants ------------------------------
B_TILE_MAX = 1024     # boards per grid step (lane dim); review item 2 (was 512)
PATCH_ROWS = 18       # 2 channels x 3x3 kernel taps; row = c*9 + kh*3 + kw
NPOS = 9              # 3x3 grid of sub-boards (stride-3 conv output positions)

# Padded per-layer weight shapes (rows multiple of 8; zero pad rows/cols stay zero
# through ReLU, so padding is mathematically inert).
N0 = 32               # 24 conv channels + 1 carry(ones) row + pad
N1 = 16               # 8 comb channels + 1 carry + pad
NF = 80               # 9 positions * 8 comb channels + carry + pad  (FC1 input rows)
N2 = 16               # 8 fc1 + carry + pad
N3 = 16               # 4 fc2 + carry + pad
N4 = 8                # 1 fc3 output + pad


# -------------------------------- Pallas kernel --------------------------------
def tttq_kernel(w0_ref, b0_ref, w1_ref, w2_ref, w3_ref, w4_ref, x_ref, o_ref):
    """Whole 5-layer forward for one batch tile.

    Lane layout of x_ref / layer 0-1 activations is pos*bt + board (position-major),
    so both conv layers are dense MXU dots with no structural zeros.  A carry row
    (constant 1, seeded by the layer-0 bias column) propagates the biases of the
    deeper layers, so every layer stays a single dot.
    """
    bt = o_ref.shape[1]                     # boards in this tile (static)
    f32 = jnp.float32

    x = x_ref[...]                                                      # (18, 9*bt) bf16
    # layer 0: Conv2d(2->24, k3, s3) per position + bias + ReLU  (bf16 MXU, f32 acc)
    h0 = jnp.maximum(
        jnp.dot(w0_ref[...], x, preferred_element_type=f32) + b0_ref[...], 0.0)
    h0 = h0.astype(jnp.bfloat16)                                        # (32, 9*bt)
    # layer 1: Conv1d(24->8, k1) + bias + ReLU (bias/carry folded into w1 via carry row)
    h1 = jnp.maximum(
        jnp.dot(w1_ref[...], h0, preferred_element_type=f32), 0.0)      # (16, 9*bt) f32

    # Regroup per-position channels from lanes into sublanes for FC1:
    #   feat row p*8+c = comb channel c at position p; row 72 = carry(=1); 73..79 = 0.
    # All pieces are 8-row, 128-aligned f32 slices -> cheap, layout-friendly concat.
    pieces = [h1[0:8, p * bt:(p + 1) * bt] for p in range(NPOS)]
    pieces.append(h1[8:16, 0:bt])             # [carry=1, 0, ..., 0] rows
    feat = jnp.concatenate(pieces, axis=0)                              # (80, bt) f32

    # layers 2-4: tiny dense dots, kept in f32 (DMA-hidden; avoids extra rounding)
    h2 = jnp.maximum(jnp.dot(w2_ref[...], feat, preferred_element_type=f32), 0.0)
    h3 = jnp.maximum(jnp.dot(w3_ref[...], h2, preferred_element_type=f32), 0.0)
    y = jnp.dot(w4_ref[...], h3, preferred_element_type=f32)            # (8, bt)
    o_ref[...] = jax.nn.sigmoid(y[0:1, :])                              # lane-dense store


# --------------------------------- parameters ----------------------------------
def make_params(key):
    ks = jax.random.split(key, 10)
    return {
        "smol_w": jax.random.normal(ks[0], (24, 2, 3, 3), jnp.float32) * 0.20,
        "smol_b": jax.random.normal(ks[1], (24,), jnp.float32) * 0.05,
        "comb_w": jax.random.normal(ks[2], (8, 24, 1), jnp.float32) * 0.20,
        "comb_b": jax.random.normal(ks[3], (8,), jnp.float32) * 0.05,
        "fc1_w": jax.random.normal(ks[4], (8, 144), jnp.float32) * 0.10,
        "fc1_b": jax.random.normal(ks[5], (8,), jnp.float32) * 0.05,
        "fc2_w": jax.random.normal(ks[6], (4, 8), jnp.float32) * 0.20,
        "fc2_b": jax.random.normal(ks[7], (4,), jnp.float32) * 0.05,
        "fc3_w": jax.random.normal(ks[8], (1, 4), jnp.float32) * 0.30,
        "fc3_b": jax.random.normal(ks[9], (1,), jnp.float32) * 0.05,
    }


def pack_weights(params):
    """Pack the 5 layers into small padded per-layer arrays (done once, outside the kernel)."""
    f32, bf16 = jnp.float32, jnp.bfloat16
    w_smol = params["smol_w"].reshape(24, 18).astype(f32)    # col = c*9 + kh*3 + kw
    b_smol = params["smol_b"].astype(f32)
    w_comb = params["comb_w"].reshape(8, 24).astype(f32)
    b_comb = params["comb_b"].astype(f32)
    w_fc1 = params["fc1_w"][:, :72].astype(f32)              # only 72 features exist (see NOTE)
    b_fc1 = params["fc1_b"].astype(f32)
    w_fc2 = params["fc2_w"].astype(f32)
    b_fc2 = params["fc2_b"].astype(f32)
    w_fc3 = params["fc3_w"].astype(f32)
    b_fc3 = params["fc3_b"].astype(f32)

    # layer 0: dense per-position conv; the bias column also seeds the carry row (=1)
    w0 = jnp.zeros((N0, PATCH_ROWS), f32).at[0:24, :].set(w_smol)
    b0 = jnp.zeros((N0, 1), f32).at[0:24, 0].set(b_smol).at[24, 0].set(1.0)

    # layer 1: comb weights; col 24 multiplies the carry row (=1) -> bias; row 8 = carry
    w1 = jnp.zeros((N1, N0), f32)
    w1 = w1.at[0:8, 0:24].set(w_comb).at[0:8, 24].set(b_comb).at[8, 24].set(1.0)

    # layer 2 (FC1): columns permuted from torch flatten order (c*9+p) to the kernel's
    # regroup order (p*8+c); col 72 = bias (via carry); row 8 = carry.
    w_fc1_perm = w_fc1.reshape(8, 8, 9).transpose(0, 2, 1).reshape(8, 72)
    w2 = jnp.zeros((N2, NF), f32)
    w2 = w2.at[0:8, 0:72].set(w_fc1_perm).at[0:8, 72].set(b_fc1).at[8, 72].set(1.0)

    # layer 3 (FC2)
    w3 = jnp.zeros((N3, N2), f32)
    w3 = w3.at[0:4, 0:8].set(w_fc2).at[0:4, 8].set(b_fc2).at[4, 8].set(1.0)

    # layer 4 (FC3): no carry needed after this
    w4 = jnp.zeros((N4, N3), f32)
    w4 = w4.at[0:1, 0:4].set(w_fc3).at[0, 4].set(b_fc3[0])

    # layers 0-1 (~90% of flops) take the bf16 MXU path; layers 2-4 stay f32.
    return (w0.astype(bf16), b0, w1.astype(bf16), w2, w3, w4)


# ----------------------------------- wrapper ------------------------------------
def _pick_b_tile(batch):
    """Largest tile <= B_TILE_MAX (multiple of 128) that still leaves >=2 grid steps
    when the batch allows it (keeps both v7x TensorCores busy; no-op on v5e/v6e)."""
    half = ((batch + 1) // 2 + 127) // 128 * 128
    return max(128, min(B_TILE_MAX, half))


def _make_patches(a, b, b_tile):
    """(B,9,9) boards -> im2col patches (PATCH_ROWS, 9*B_pad) in bf16.

    Lane index = tile*9*b_tile + pos*b_tile + board_in_tile (position-major inside a
    tile), row index = c*9 + kh*3 + kw.  One fused XLA transpose, emitted directly in
    bf16 (exact for {0,1} boards) to halve wrapper-side HBM traffic.
    """
    batch = a.shape[0]
    n_tiles = (batch + b_tile - 1) // b_tile
    b_pad = n_tiles * b_tile
    x = jnp.stack([a, b], axis=1).astype(jnp.bfloat16)              # (B, 2, 9, 9)
    if b_pad != batch:
        x = jnp.pad(x, ((0, b_pad - batch), (0, 0), (0, 0), (0, 0)))
    xr = x.reshape(n_tiles, b_tile, 2, 3, 3, 3, 3)                  # (t, bl, c, sh, kh, sw, kw)
    xr = jnp.transpose(xr, (2, 4, 6, 0, 3, 5, 1))                   # (c, kh, kw, t, sh, sw, bl)
    return xr.reshape(PATCH_ROWS, n_tiles * NPOS * b_tile), b_pad


@jax.jit
def tttq_forward_batched(a, b, weights):
    """Forward for a batch of (a, b) board pairs; returns (B,) sigmoid values."""
    a = a.reshape(-1, 9, 9)
    b = b.reshape(-1, 9, 9)
    batch = a.shape[0]
    b_tile = _pick_b_tile(batch)
    patches, b_pad = _make_patches(a, b, b_tile)                    # (18, 9*B_pad) bf16
    n_tiles = b_pad // b_tile

    w0, b0, w1, w2, w3, w4 = weights
    const2 = lambda i: (0, 0)   # constant index_map: fetched once, VMEM-resident

    out = pl.pallas_call(
        tttq_kernel,
        out_shape=jax.ShapeDtypeStruct((1, b_pad), jnp.float32),
        grid_spec=pltpu.PrefetchScalarGridSpec(
            num_scalar_prefetch=0,
            grid=(n_tiles,),
            in_specs=[
                pl.BlockSpec(w0.shape, const2),
                pl.BlockSpec(b0.shape, const2),
                pl.BlockSpec(w1.shape, const2),
                pl.BlockSpec(w2.shape, const2),
                pl.BlockSpec(w3.shape, const2),
                pl.BlockSpec(w4.shape, const2),
                # activations: tiled along the batch/position lane axis
                pl.BlockSpec((PATCH_ROWS, NPOS * b_tile), lambda i: (0, i)),
            ],
            out_specs=pl.BlockSpec((1, b_tile), lambda i: (0, i)),
        ),
        compiler_params=pltpu.CompilerParams(
            dimension_semantics=("parallel",),      # shards tiles across TCs on v7x
        ),
    )(w0, b0, w1, w2, w3, w4, patches)
    return out[0, :batch]


# -------------------------------- pure-JAX reference --------------------------------
def tttq_reference_single(a, b, params):
    """Single-pair f32 reference with the intended module semantics (for checking)."""
    a = a.reshape(9, 9).astype(jnp.float32)
    b = b.reshape(9, 9).astype(jnp.float32)
    x = jnp.stack([a, b])                                # (2, 9, 9)
    xr = x.reshape(2, 3, 3, 3, 3)                        # (c, sh, kh, sw, kw)
    patches = jnp.transpose(xr, (1, 3, 0, 2, 4)).reshape(9, 18).T     # (18, 9)
    h1 = jnp.maximum(params["smol_w"].reshape(24, 18) @ patches
                     + params["smol_b"][:, None], 0.0)                # (24, 9)
    h2 = jnp.maximum(params["comb_w"].reshape(8, 24) @ h1
                     + params["comb_b"][:, None], 0.0)                # (8, 9)
    feat = h2.reshape(-1)                                             # 72 features
    y1 = jnp.maximum(params["fc1_w"][:, :72] @ feat + params["fc1_b"], 0.0)
    y2 = jnp.maximum(params["fc2_w"] @ y1 + params["fc2_b"], 0.0)
    y3 = params["fc3_w"] @ y2 + params["fc3_b"]
    return jax.nn.sigmoid(y3)                                         # (1,)


# ------------------------------------- main -------------------------------------
if __name__ == "__main__":
    key = jax.random.PRNGKey(0)
    ka, kb, _ = jax.random.split(key, 3)
    B = 2048   # tiny boards; 2 grid steps of B_TILE=1024 (exercises pipeline + both v7x TCs)
    a = (jax.random.uniform(ka, (B, 9, 9)) < 0.3).astype(jnp.float32)
    b = (jax.random.uniform(kb, (B, 9, 9)) < 0.3).astype(jnp.float32)

    params = make_params(jax.random.PRNGKey(42))
    weights = pack_weights(params)

    # batched forward through the Pallas kernel
    y = tttq_forward_batched(a, b, weights)
    y = jax.block_until_ready(y)
    assert y.shape == (B,)

    # check against the pure-f32 per-board reference.  Conv weights are held in bf16
    # (review item 1); boards/patches are exact in bf16, so only weight + one
    # activation-cast rounding separates the kernel from the f32 reference -> a
    # slightly looser tolerance than 1e-3 is expected (per the review notes).
    y_ref = jax.vmap(lambda aa, bb: tttq_reference_single(aa, bb, params)[0])(a, b)
    assert jnp.allclose(y, y_ref, atol=5e-3, rtol=5e-3), (
        float(jnp.max(jnp.abs(y - y_ref))), y[:4], y_ref[:4])

    # single-pair path (original module forward takes one (a, b) pair, returns shape (1,))
    y_one = tttq_forward_batched(a[0:1], b[0:1], weights)
    y_one = jax.block_until_ready(y_one)
    assert y_one.shape == (1,)
    assert jnp.allclose(y_one, y_ref[0:1], atol=5e-3, rtol=5e-3), (y_one, y_ref[0])

    print("KERNEL_OK")
</pallas_src>

<mosaic_0001>
module attributes {stable_mosaic.version = 11 : i64} {
  func.func @tttq_kernel(%arg0: i32, %arg1: memref<32x18xbf16, #tpu.memory_space<vmem>>, %arg2: memref<32x1xf32, #tpu.memory_space<vmem>>, %arg3: memref<16x32xbf16, #tpu.memory_space<vmem>>, %arg4: memref<16x80xf32, #tpu.memory_space<vmem>>, %arg5: memref<16x16xf32, #tpu.memory_space<vmem>>, %arg6: memref<8x16xf32, #tpu.memory_space<vmem>>, %arg7: memref<18x9216xbf16, #tpu.memory_space<vmem>>, %arg8: memref<1x1024xf32, #tpu.memory_space<vmem>>) attributes {dimension_semantics = [#tpu.dimension_semantics<parallel>], iteration_bounds = array<i64: 2>, scalar_prefetch = 0 : i64, scratch_operands = 0 : i64, tpu.core_type = #tpu.core_type<tc>, window_params = [{pipeline_mode = #tpu.pipeline_mode<synchronous>, transform_indices = @transform_0, window_bounds = array<i64: 32, 18>}, {pipeline_mode = #tpu.pipeline_mode<synchronous>, transform_indices = @transform_1, window_bounds = array<i64: 32, 1>}, {pipeline_mode = #tpu.pipeline_mode<synchronous>, transform_indices = @transform_2, window_bounds = array<i64: 16, 32>}, {pipeline_mode = #tpu.pipeline_mode<synchronous>, transform_indices = @transform_3, window_bounds = array<i64: 16, 80>}, {pipeline_mode = #tpu.pipeline_mode<synchronous>, transform_indices = @transform_4, window_bounds = array<i64: 16, 16>}, {pipeline_mode = #tpu.pipeline_mode<synchronous>, transform_indices = @transform_5, window_bounds = array<i64: 8, 16>}, {transform_indices = @transform_6, window_bounds = array<i64: 18, 9216>}, {transform_indices = @transform_7, window_bounds = array<i64: 1, 1024>}]} {
    %c0 = arith.constant 0 : index
    %c0_0 = arith.constant 0 : index
    %0 = vector.load %arg7[%c0, %c0_0] : memref<18x9216xbf16, #tpu.memory_space<vmem>>, vector<18x9216xbf16>
    %c0_1 = arith.constant 0 : index
    %c0_2 = arith.constant 0 : index
    %1 = vector.load %arg1[%c0_1, %c0_2] : memref<32x18xbf16, #tpu.memory_space<vmem>>, vector<32x18xbf16>
    %cst = arith.constant dense<0.000000e+00> : vector<32x9216xf32>
    %2 = tpu.matmul %1, %0, %cst {dimension_numbers = #tpu.dot_dimension_numbers<[1], [0], [0], [1], [0, 0, 1, 1], [], []>} : vector<32x18xbf16>, vector<18x9216xbf16>, vector<32x9216xf32> -> vector<32x9216xf32>
    %c0_3 = arith.constant 0 : index
    %c0_4 = arith.constant 0 : index
    %3 = vector.load %arg2[%c0_3, %c0_4] : memref<32x1xf32, #tpu.memory_space<vmem>>, vector<32x1xf32>
    %4 = vector.broadcast %3 : vector<32x1xf32> to vector<32x9216xf32>
    %5 = arith.addf %2, %4 : vector<32x9216xf32>
    %cst_5 = arith.constant 0.000000e+00 : f32
    %6 = vector.broadcast %cst_5 : f32 to vector<32x9216xf32>
    %7 = arith.maximumf %5, %6 : vector<32x9216xf32>
    %8 = arith.truncf %7 : vector<32x9216xf32> to vector<32x9216xbf16>
    %c0_6 = arith.constant 0 : index
    %c0_7 = arith.constant 0 : index
    %9 = vector.load %arg3[%c0_6, %c0_7] : memref<16x32xbf16, #tpu.memory_space<vmem>>, vector<16x32xbf16>
    %cst_8 = arith.constant dense<0.000000e+00> : vector<16x9216xf32>
    %10 = tpu.matmul %9, %8, %cst_8 {dimension_numbers = #tpu.dot_dimension_numbers<[1], [0], [0], [1], [0, 0, 1, 1], [], []>} : vector<16x32xbf16>, vector<32x9216xbf16>, vector<16x9216xf32> -> vector<16x9216xf32>
    %cst_9 = arith.constant 0.000000e+00 : f32
    %11 = vector.broadcast %cst_9 : f32 to vector<16x9216xf32>
    %12 = arith.maximumf %10, %11 : vector<16x9216xf32>
    %13 = vector.extract_strided_slice %12 {offsets = [0, 0], sizes = [8, 1024], strides = [1, 1]} : vector<16x9216xf32> to vector<8x1024xf32>
    %14 = vector.extract_strided_slice %12 {offsets = [0, 1024], sizes = [8, 1024], strides = [1, 1]} : vector<16x9216xf32> to vector<8x1024xf32>
    %15 = vector.extract_strided_slice %12 {offsets = [0, 2048], sizes = [8, 1024], strides = [1, 1]} : vector<16x9216xf32> to vector<8x1024xf32>
    %16 = vector.extract_strided_slice %12 {offsets = [0, 3072], sizes = [8, 1024], strides = [1, 1]} : vector<16x9216xf32> to vector<8x1024xf32>
    %17 = vector.extract_strided_slice %12 {offsets = [0, 4096], sizes = [8, 1024], strides = [1, 1]} : vector<16x9216xf32> to vector<8x1024xf32>
    %18 = vector.extract_strided_slice %12 {offsets = [0, 5120], sizes = [8, 1024], strides = [1, 1]} : vector<16x9216xf32> to vector<8x1024xf32>
    %19 = vector.extract_strided_slice %12 {offsets = [0, 6144], sizes = [8, 1024], strides = [1, 1]} : vector<16x9216xf32> to vector<8x1024xf32>
    %20 = vector.extract_strided_slice %12 {offsets = [0, 7168], sizes = [8, 1024], strides = [1, 1]} : vector<16x9216xf32> to vector<8x1024xf32>
    %21 = vector.extract_strided_slice %12 {offsets = [0, 8192], sizes = [8, 1024], strides = [1, 1]} : vector<16x9216xf32> to vector<8x1024xf32>
    %22 = vector.extract_strided_slice %12 {offsets = [8, 0], sizes = [8, 1024], strides = [1, 1]} : vector<16x9216xf32> to vector<8x1024xf32>
    %23 = tpu.concatenate %13, %14, %15, %16, %17, %18, %19, %20, %21, %22 in 0 : vector<8x1024xf32>, vector<8x1024xf32>, vector<8x1024xf32>, vector<8x1024xf32>, vector<8x1024xf32>, vector<8x1024xf32>, vector<8x1024xf32>, vector<8x1024xf32>, vector<8x1024xf32>, vector<8x1024xf32> -> vector<80x1024xf32>
    %c0_10 = arith.constant 0 : index
    %c0_11 = arith.constant 0 : index
    %24 = vector.load %arg4[%c0_10, %c0_11] : memref<16x80xf32, #tpu.memory_space<vmem>>, vector<16x80xf32>
    %cst_12 = arith.constant dense<0.000000e+00> : vector<16x1024xf32>
    %25 = tpu.matmul %24, %23, %cst_12 {dimension_numbers = #tpu.dot_dimension_numbers<[1], [0], [0], [1], [0, 0, 1, 1], [], []>} : vector<16x80xf32>, vector<80x1024xf32>, vector<16x1024xf32> -> vector<16x1024xf32>
    %cst_13 = arith.constant 0.000000e+00 : f32
    %26 = vector.broadcast %cst_13 : f32 to vector<16x1024xf32>
    %27 = arith.maximumf %25, %26 : vector<16x1024xf32>
    %c0_14 = arith.constant 0 : index
    %c0_15 = arith.constant 0 : index
    %28 = vector.load %arg5[%c0_14, %c0_15] : memref<16x16xf32, #tpu.memory_space<vmem>>, vector<16x16xf32>
    %cst_16 = arith.constant dense<0.000000e+00> : vector<16x1024xf32>
    %29 = tpu.matmul %28, %27, %cst_16 {dimension_numbers = #tpu.dot_dimension_numbers<[1], [0], [0], [1], [0, 0, 1, 1], [], []>} : vector<16x16xf32>, vector<16x1024xf32>, vector<16x1024xf32> -> vector<16x1024xf32>
    %cst_17 = arith.constant 0.000000e+00 : f32
    %30 = vector.broadcast %cst_17 : f32 to vector<16x1024xf32>
    %31 = arith.maximumf %29, %30 : vector<16x1024xf32>
    %c0_18 = arith.constant 0 : index
    %c0_19 = arith.constant 0 : index
    %32 = vector.load %arg6[%c0_18, %c0_19] : memref<8x16xf32, #tpu.memory_space<vmem>>, vector<8x16xf32>
    %cst_20 = arith.constant dense<0.000000e+00> : vector<8x1024xf32>
    %33 = tpu.matmul %32, %31, %cst_20 {dimension_numbers = #tpu.dot_dimension_numbers<[1], [0], [0], [1], [0, 0, 1, 1], [], []>} : vector<8x16xf32>, vector<16x1024xf32>, vector<8x1024xf32> -> vector<8x1024xf32>
    %34 = vector.extract_strided_slice %33 {offsets = [0, 0], sizes = [1, 1024], strides = [1, 1]} : vector<8x1024xf32> to vector<1x1024xf32>
    %35 = arith.negf %34 : vector<1x1024xf32>
    %36 = math.exp %35 : vector<1x1024xf32>
    %cst_21 = arith.constant 1.000000e+00 : f32
    %37 = vector.broadcast %cst_21 : f32 to vector<1x1024xf32>
    %38 = arith.addf %37, %36 : vector<1x1024xf32>
    %39 = arith.divf %37, %38 : vector<1x1024xf32>
    %c0_22 = arith.constant 0 : index
    %c0_23 = arith.constant 0 : index
    %40 = vector.load %arg8[%c0_22, %c0_23] : memref<1x1024xf32, #tpu.memory_space<vmem>>, vector<1x1024xf32>
    tpu.vector_store %arg8[%c0_22, %c0_23], %39 {strides = array<i32>} : memref<1x1024xf32, #tpu.memory_space<vmem>>, vector<1x1024xf32>,
    return
  }
  func.func @transform_0(%arg0: i32) -> (i32, i32) {
    %c0_i32 = arith.constant 0 : i32
    %c0_i32_0 = arith.constant 0 : i32
    %c0_i32_1 = arith.constant 0 : i32
    return %c0_i32, %c0_i32_0 : i32, i32
  }
  func.func @transform_1(%arg0: i32) -> (i32, i32) {
    %c0_i32 = arith.constant 0 : i32
    %c0_i32_0 = arith.constant 0 : i32
    %c0_i32_1 = arith.constant 0 : i32
    return %c0_i32, %c0_i32_0 : i32, i32
  }
  func.func @transform_2(%arg0: i32) -> (i32, i32) {
    %c0_i32 = arith.constant 0 : i32
    %c0_i32_0 = arith.constant 0 : i32
    %c0_i32_1 = arith.constant 0 : i32
    return %c0_i32, %c0_i32_0 : i32, i32
  }
  func.func @transform_3(%arg0: i32) -> (i32, i32) {
    %c0_i32 = arith.constant 0 : i32
    %c0_i32_0 = arith.constant 0 : i32
    %c0_i32_1 = arith.constant 0 : i32
    return %c0_i32, %c0_i32_0 : i32, i32
  }
  func.func @transform_4(%arg0: i32) -> (i32, i32) {
    %c0_i32 = arith.constant 0 : i32
    %c0_i32_0 = arith.constant 0 : i32
    %c0_i32_1 = arith.constant 0 : i32
    return %c0_i32, %c0_i32_0 : i32, i32
  }
  func.func @transform_5(%arg0: i32) -> (i32, i32) {
    %c0_i32 = arith.constant 0 : i32
    %c0_i32_0 = arith.constant 0 : i32
    %c0_i32_1 = arith.constant 0 : i32
    return %c0_i32, %c0_i32_0 : i32, i32
  }
  func.func @transform_6(%arg0: i32) -> (i32, i32) {
    %c0_i32 = arith.constant 0 : i32
    %c0_i32_0 = arith.constant 0 : i32
    return %c0_i32, %arg0 : i32, i32
  }
  func.func @transform_7(%arg0: i32) -> (i32, i32) {
    %c0_i32 = arith.constant 0 : i32
    %c0_i32_0 = arith.constant 0 : i32
    return %c0_i32, %arg0 : i32, i32
  }
}

</mosaic_0001>

<bundles_post_ra>
// kernel: tttq_forward_batched.1
= control target key start
LH: loop header
LB: loop body
LE: loop exit
PB: predicated region body
PF: predicated region fallthrough
CT: control target
= control target key end

     0   :  { %12 = vsyncpa [#allocation4], 0  ;;  %s9012_s0 = inlined_call_operand.vmem [shape: bf16[32,18], index: 0, kind: input, shape index: {}]   ;;  %s9013_s1 = inlined_call_operand.vmem [shape: f32[32,1], index: 1, kind: input, shape index: {}]   ;;  %s9014_s2 = inlined_call_operand.vmem [shape: bf16[16,32], index: 2, kind: input, shape index: {}]   ;;  %s9015_s3 = inlined_call_operand.vmem [shape: f32[16,80], index: 3, kind: input, shape index: {}]   ;;  %s9016_s4 = inlined_call_operand.vmem [shape: f32[16,16], index: 4, kind: input, shape index: {}]   ;;  %s9017_s5 = inlined_call_operand.vmem [shape: f32[8,16], index: 5, kind: input, shape index: {}]   ;;  %s9018_s6 = inlined_call_operand.vmem [shape: bf16[18,18432], index: 6, kind: input, shape index: {}]   ;;  %s9019_s7 = inlined_call_operand.hbm [shape: f32[1,2048], index: 7, kind: output, shape index: {}]  }
   0x1   :  { %14 = vsyncpa [#allocation4 + $0x1], 0  ;;  %s7074_s24 = smov 0   ;;  %s7076_s25 = smov 0  }
   0x2   :  { %s7078_s26 = smov 0   ;;  %s7080_s27 = smov 0  }
   0x3 LB: > { %s6479_s28 = sadd.s32 4294967295, %s7028_s27   ;;  %s6480_s29 = sadd.s32 4294967294, %s7028_s27   ;;  %s7028_s27 = sphi %s7080_s27, %s9125_s27   ;;  %s7024_s26 = sphi %s7078_s26, %s9124_s26   ;;  %s7020_s25 = sphi %s7076_s25, %s9123_s25   ;;  %s7016_s24 = sphi %s7074_s24, %s9122_s24  }
   0x4   : > { %s7097_s30 = sadd.s32 1, %s7028_s27   ;;  %s153_s8 = sadd.s32 1, %s7024_s26 }
   0x5   : > { %s150_s9 = ssub.s32 %s7028_s27, %s7097_s30  ;;  %p160_p0 = scmp.ne.s32.totalorder %s7024_s26, %s7020_s25 }
   0x6   : > { %p151_p1 = scmp.eq.s32.totalorder %s150_s9, 0  ;;  %p161_p2 = scmp.eq.s32.totalorder %s7028_s27, 0 }
   0x7   : > { %p190_p3 = scmp.eq.s32.totalorder %s6479_s28, 1  ;;  %p195_p4 = scmp.ne.s32.totalorder %s7020_s25, %s7016_s24 }
   0x8   : > { %s7110_s10 = scalar_select %p151_p1, %s7024_s26, %s153_s8  }
   0x9   : > { %p162_p5 = por %p161_p2, %p160_p0  ;;  %p7112_p6 = por %p190_p3, %p160_p0 }
   0xa   : > { %p196_p7 = scmp.eq.s32.totalorder %s6480_s29, 1  ;;  %p9024_p9 = scmp.ge.s32.totalorder %s7028_s27, 2 }
   0xc   : > { %p7116_p8 = por %p196_p7, %p195_p4  ;;  %230 = sbr.rel (%p9024_p9) target bundleno = 76 (0x4c), region = 40 }
  0x11   : > { %233 = sbr.rel (!%p162_p5) target bundleno = 76 (0x4c), region = 44  ;;  %s235_s13 = sand.u32 (%p162_p5), 1, %s7024_s26  }
  0x12   : > { %s6810_s14 = smul.u32 (%p162_p5), 288, %s7028_s27 }
  0x13   : > { %s6812_s15 = smul.u32 (%p162_p5), 864, %s235_s13 }
  0x14   : > { %s7128_s18 = scalar_lea.vmem (%p162_p5), %s9018_s6, %s6810_s14 }
  0x15   : > { %v253_v0 = vld [vmem:[%s7128_s18] sm:$0xff] (%p162_p5)  ;;  %v255_v1 = vld [vmem:[%s7128_s18 + $0x8] sm:$0xff] (%p162_p5)  ;;  %v257_v2 = vld [vmem:[%s7128_s18 + $0x10] sm:$0xff] (%p162_p5)  ;;  %s7133_s19 = scalar_lea.vmem (%p162_p5), [#allocation2], %s6812_s15 }
  0x16   : > { %254 = vst [vmem:[%s7133_s19] sm:$0xff] %v253_v0  ;;  %256 = vst [vmem:[%s7133_s19 + $0x8] sm:$0xff] %v255_v1  ;;  %v259_v3 = vld [vmem:[%s7128_s18 + $0x18] sm:$0xff]  ;;  %v261_v4 = vld [vmem:[%s7128_s18 + $0x20] sm:$0xff] }
  0x17   : > { %258 = vst [vmem:[%s7133_s19 + $0x10] sm:$0xff] %v257_v2  ;;  %v263_v5 = vld [vmem:[%s7128_s18 + $0x28] sm:$0xff]  ;;  %260 = vst [vmem:[%s7133_s19 + $0x18] sm:$0xff] %v259_v3  ;;  %v265_v6 = vld [vmem:[%s7128_s18 + $0x30] sm:$0xff] }
  0x18   : > { %262 = vst [vmem:[%s7133_s19 + $0x20] sm:$0xff] %v261_v4  ;;  %264 = vst [vmem:[%s7133_s19 + $0x28] sm:$0xff] %v263_v5  ;;  %v267_v7 = vld [vmem:[%s7128_s18 + $0x38] sm:$0xff]  ;;  %v269_v8 = vld [vmem:[%s7128_s18 + $0x40] sm:$0xff] }
  0x19   : > { %266 = vst [vmem:[%s7133_s19 + $0x30] sm:$0xff] %v265_v6  ;;  %268 = vst [vmem:[%s7133_s19 + $0x38] sm:$0xff] %v267_v7  ;;  %v271_v9 = vld [vmem:[%s7128_s18 + $0x48] sm:$0xff]  ;;  %v273_v10 = vld [vmem:[%s7128_s18 + $0x50] sm:$0xff] }
  0x1a   : > { %270 = vst [vmem:[%s7133_s19 + $0x40] sm:$0xff] %v269_v8  ;;  %v275_v11 = vld [vmem:[%s7128_s18 + $0x58] sm:$0xff]  ;;  %272 = vst [vmem:[%s7133_s19 + $0x48] sm:$0xff] %v271_v9  ;;  %v277_v12 = vld [vmem:[%s7128_s18 + $0x60] sm:$0xff] }
  0x1b   : > { %274 = vst [vmem:[%s7133_s19 + $0x50] sm:$0xff] %v273_v10  ;;  %276 = vst [vmem:[%s7133_s19 + $0x58] sm:$0xff] %v275_v11  ;;  %v279_v13 = vld [vmem:[%s7128_s18 + $0x68] sm:$0xff]  ;;  %v281_v14 = vld [vmem:[%s7128_s18 + $0x70] sm:$0xff] }
  0x1c   : > { %278 = vst [vmem:[%s7133_s19 + $0x60] sm:$0xff] %v277_v12  ;;  %280 = vst [vmem:[%s7133_s19 + $0x68] sm:$0xff] %v279_v13  ;;  %v283_v15 = vld [vmem:[%s7128_s18 + $0x78] sm:$0xff]  ;;  %v285_v16 = vld [vmem:[%s7128_s18 + $0x80] sm:$0xff] }
  0x1d   : > { %282 = vst [vmem:[%s7133_s19 + $0x70] sm:$0xff] %v281_v14  ;;  %v287_v17 = vld [vmem:[%s7128_s18 + $0x88] sm:$0xff]  ;;  %284 = vst [vmem:[%s7133_s19 + $0x78] sm:$0xff] %v283_v15  ;;  %v289_v18 = vld [vmem:[%s7128_s18 + $0x90] sm:$0xff] }
  0x1e   : > { %286 = vst [vmem:[%s7133_s19 + $0x80] sm:$0xff] %v285_v16  ;;  %288 = vst [vmem:[%s7133_s19 + $0x88] sm:$0xff] %v287_v17  ;;  %v291_v19 = vld [vmem:[%s7128_s18 + $0x98] sm:$0xff]  ;;  %v293_v20 = vld [vmem:[%s7128_s18 + $0xa0] sm:$0xff] }
  0x1f   : > { %290 = vst [vmem:[%s7133_s19 + $0x90] sm:$0xff] %v289_v18  ;;  %292 = vst [vmem:[%s7133_s19 + $0x98] sm:$0xff] %v291_v19  ;;  %v295_v21 = vld [vmem:[%s7128_s18 + $0xa8] sm:$0xff]  ;;  %v297_v22 = vld [vmem:[%s7128_s18 + $0xb0] sm:$0xff] }
  0x20   : > { %294 = vst [vmem:[%s7133_s19 + $0xa0] sm:$0xff] %v293_v20  ;;  %v299_v23 = vld [vmem:[%s7128_s18 + $0xb8] sm:$0xff]  ;;  %296 = vst [vmem:[%s7133_s19 + $0xa8] sm:$0xff] %v295_v21  ;;  %v301_v24 = vld [vmem:[%s7128_s18 + $0xc0] sm:$0xff] }
  0x21   : > { %298 = vst [vmem:[%s7133_s19 + $0xb0] sm:$0xff] %v297_v22  ;;  %300 = vst [vmem:[%s7133_s19 + $0xb8] sm:$0xff] %v299_v23  ;;  %v303_v25 = vld [vmem:[%s7128_s18 + $0xc8] sm:$0xff]  ;;  %v305_v26 = vld [vmem:[%s7128_s18 + $0xd0] sm:$0xff] }
  0x22   : > { %302 = vst [vmem:[%s7133_s19 + $0xc0] sm:$0xff] %v301_v24  ;;  %304 = vst [vmem:[%s7133_s19 + $0xc8] sm:$0xff] %v303_v25  ;;  %v307_v27 = vld [vmem:[%s7128_s18 + $0xd8] sm:$0xff]  ;;  %v309_v28 = vld [vmem:[%s7128_s18 + $0xe0] sm:$0xff] }
  0x23   : > { %306 = vst [vmem:[%s7133_s19 + $0xd0] sm:$0xff] %v305_v26  ;;  %v311_v29 = vld [vmem:[%s7128_s18 + $0xe8] sm:$0xff]  ;;  %308 = vst [vmem:[%s7133_s19 + $0xd8] sm:$0xff] %v307_v27  ;;  %v313_v30 = vld [vmem:[%s7128_s18 + $0xf0] sm:$0xff] }
  0x24   : > { %310 = vst [vmem:[%s7133_s19 + $0xe0] sm:$0xff] %v309_v28  ;;  %312 = vst [vmem:[%s7133_s19 + $0xe8] sm:$0xff] %v311_v29  ;;  %v315_v31 = vld [vmem:[%s7128_s18 + $0xf8] sm:$0xff]  ;;  %v317_v32 = vld [vmem:[%s7128_s18 + $0x100] sm:$0xff] }
  0x25   : > { %314 = vst [vmem:[%s7133_s19 + $0xf0] sm:$0xff] %v313_v30  ;;  %316 = vst [vmem:[%s7133_s19 + $0xf8] sm:$0xff] %v315_v31  ;;  %v319_v33 = vld [vmem:[%s7128_s18 + $0x108] sm:$0xff]  ;;  %v321_v34 = vld [vmem:[%s7128_s18 + $0x110] sm:$0xff] }
  0x26   : > { %318 = vst [vmem:[%s7133_s19 + $0x100] sm:$0xff] %v317_v32  ;;  %v323_v35 = vld [vmem:[%s7128_s18 + $0x118] sm:$0xff]  ;;  %320 = vst [vmem:[%s7133_s19 + $0x108] sm:$0xff] %v319_v33  ;;  %v325_v36 = vld [vmem:[%s7128_s18 + $0x240] sm:$0xff] }
  0x27   : > { %322 = vst [vmem:[%s7133_s19 + $0x110] sm:$0xff] %v321_v34  ;;  %324 = vst [vmem:[%s7133_s19 + $0x118] sm:$0xff] %v323_v35  ;;  %v327_v37 = vld [vmem:[%s7128_s18 + $0x248] sm:$0xff]  ;;  %v329_v38 = vld [vmem:[%s7128_s18 + $0x250] sm:$0xff] }
  0x28   : > { %326 = vst [vmem:[%s7133_s19 + $0x120] sm:$0xff] %v325_v36  ;;  %328 = vst [vmem:[%s7133_s19 + $0x128] sm:$0xff] %v327_v37  ;;  %v331_v39 = vld [vmem:[%s7128_s18 + $0x258] sm:$0xff]  ;;  %v333_v40 = vld [vmem:[%s7128_s18 + $0x260] sm:$0xff] }
  0x29   : > { %330 = vst [vmem:[%s7133_s19 + $0x130] sm:$0xff] %v329_v38  ;;  %v335_v41 = vld [vmem:[%s7128_s18 + $0x268] sm:$0xff]  ;;  %332 = vst [vmem:[%s7133_s19 + $0x138] sm:$0xff] %v331_v39  ;;  %v337_v42 = vld [vmem:[%s7128_s18 + $0x270] sm:$0xff] }
  0x2a   : > { %334 = vst [vmem:[%s7133_s19 + $0x140] sm:$0xff] %v333_v40  ;;  %336 = vst [vmem:[%s7133_s19 + $0x148] sm:$0xff] %v335_v41  ;;  %v339_v43 = vld [vmem:[%s7128_s18 + $0x278] sm:$0xff]  ;;  %v341_v44 = vld [vmem:[%s7128_s18 + $0x280] sm:$0xff] }
  0x2b   : > { %338 = vst [vmem:[%s7133_s19 + $0x150] sm:$0xff] %v337_v42  ;;  %340 = vst [vmem:[%s7133_s19 + $0x158] sm:$0xff] %v339_v43  ;;  %v343_v45 = vld [vmem:[%s7128_s18 + $0x288] sm:$0xff]  ;;  %v345_v46 = vld [vmem:[%s7128_s18 + $0x290] sm:$0xff] }
  0x2c   : > { %342 = vst [vmem:[%s7133_s19 + $0x160] sm:$0xff] %v341_v44  ;;  %v347_v47 = vld [vmem:[%s7128_s18 + $0x298] sm:$0xff]  ;;  %344 = vst [vmem:[%s7133_s19 + $0x168] sm:$0xff] %v343_v45  ;;  %v349_v48 = vld [vmem:[%s7128_s18 + $0x2a0] sm:$0xff] }
  0x2d   : > { %346 = vst [vmem:[%s7133_s19 + $0x170] sm:$0xff] %v345_v46  ;;  %348 = vst [vmem:[%s7133_s19 + $0x178] sm:$0xff] %v347_v47  ;;  %v351_v49 = vld [vmem:[%s7128_s18 + $0x2a8] sm:$0xff]  ;;  %v353_v50 = vld [vmem:[%s7128_s18 + $0x2b0] sm:$0xff] }
  0x2e   : > { %350 = vst [vmem:[%s7133_s19 + $0x180] sm:$0xff] %v349_v48  ;;  %352 = vst [vmem:[%s7133_s19 + $0x188] sm:$0xff] %v351_v49  ;;  %v355_v51 = vld [vmem:[%s7128_s18 + $0x2b8] sm:$0xff]  ;;  %v357_v52 = vld [vmem:[%s7128_s18 + $0x2c0] sm:$0xff] }
  0x2f   : > { %354 = vst [vmem:[%s7133_s19 + $0x190] sm:$0xff] %v353_v50  ;;  %v359_v53 = vld [vmem:[%s7128_s18 + $0x2c8] sm:$0xff]  ;;  %356 = vst [vmem:[%s7133_s19 + $0x198] sm:$0xff] %v355_v51  ;;  %v361_v54 = vld [vmem:[%s7128_s18 + $0x2d0] sm:$0xff] }
  0x30   : > { %358 = vst [vmem:[%s7133_s19 + $0x1a0] sm:$0xff] %v357_v52  ;;  %360 = vst [vmem:[%s7133_s19 + $0x1a8] sm:$0xff] %v359_v53  ;;  %v363_v55 = vld [vmem:[%s7128_s18 + $0x2d8] sm:$0xff]  ;;  %v365_v56 = vld [vmem:[%s7128_s18 + $0x2e0] sm:$0xff] }
  0x31   : > { %362 = vst [vmem:[%s7133_s19 + $0x1b0] sm:$0xff] %v361_v54  ;;  %364 = vst [vmem:[%s7133_s19 + $0x1b8] sm:$0xff] %v363_v55  ;;  %v367_v57 = vld [vmem:[%s7128_s18 + $0x2e8] sm:$0xff]  ;;  %v369_v58 = vld [vmem:[%s7128_s18 + $0x2f0] sm:$0xff] }
  0x32   : > { %366 = vst [vmem:[%s7133_s19 + $0x1c0] sm:$0xff] %v365_v56  ;;  %v371_v59 = vld [vmem:[%s7128_s18 + $0x2f8] sm:$0xff]  ;;  %368 = vst [vmem:[%s7133_s19 + $0x1c8] sm:$0xff] %v367_v57  ;;  %v373_v60 = vld [vmem:[%s7128_s18 + $0x300] sm:$0xff] }
  0x33   : > { %370 = vst [vmem:[%s7133_s19 + $0x1d0] sm:$0xff] %v369_v58  ;;  %372 = vst [vmem:[%s7133_s19 + $0x1d8] sm:$0xff] %v371_v59  ;;  %v375_v61 = vld [vmem:[%s7128_s18 + $0x308] sm:$0xff]  ;;  %v377_v62 = vld [vmem:[%s7128_s18 + $0x310] sm:$0xff] }
  0x34   : > { %374 = vst [vmem:[%s7133_s19 + $0x1e0] sm:$0xff] %v373_v60  ;;  %376 = vst [vmem:[%s7133_s19 + $0x1e8] sm:$0xff] %v375_v61  ;;  %v379_v63 = vld [vmem:[%s7128_s18 + $0x318] sm:$0xff]  ;;  %v381_v0 = vld [vmem:[%s7128_s18 + $0x320] sm:$0xff] }
  0x35   : > { %378 = vst [vmem:[%s7133_s19 + $0x1f0] sm:$0xff] %v377_v62  ;;  %v383_v1 = vld [vmem:[%s7128_s18 + $0x328] sm:$0xff]  ;;  %380 = vst [vmem:[%s7133_s19 + $0x1f8] sm:$0xff] %v379_v63  ;;  %v385_v2 = vld [vmem:[%s7128_s18 + $0x330] sm:$0xff] }
  0x36   : > { %382 = vst [vmem:[%s7133_s19 + $0x200] sm:$0xff] %v381_v0  ;;  %384 = vst [vmem:[%s7133_s19 + $0x208] sm:$0xff] %v383_v1  ;;  %v387_v3 = vld [vmem:[%s7128_s18 + $0x338] sm:$0xff]  ;;  %v389_v4 = vld [vmem:[%s7128_s18 + $0x340] sm:$0xff] }
  0x37   : > { %386 = vst [vmem:[%s7133_s19 + $0x210] sm:$0xff] %v385_v2  ;;  %388 = vst [vmem:[%s7133_s19 + $0x218] sm:$0xff] %v387_v3  ;;  %v391_v5 = vld [vmem:[%s7128_s18 + $0x348] sm:$0xff]  ;;  %v393_v6 = vld [vmem:[%s7128_s18 + $0x350] sm:$0xff] }
  0x38   : > { %390 = vst [vmem:[%s7133_s19 + $0x220] sm:$0xff] %v389_v4  ;;  %v395_v7 = vld [vmem:[%s7128_s18 + $0x358] sm:$0xff]  ;;  %392 = vst [vmem:[%s7133_s19 + $0x228] sm:$0xff] %v391_v5  ;;  %v397_v8 = vld [vmem:[%s7128_s18 + $0x480] sm:$0xff] }
  0x39   : > { %394 = vst [vmem:[%s7133_s19 + $0x230] sm:$0xff] %v393_v6  ;;  %396 = vst [vmem:[%s7133_s19 + $0x238] sm:$0xff] %v395_v7  ;;  %v399_v9 = vld [vmem:[%s7128_s18 + $0x488] sm:$0xff]  ;;  %v401_v10 = vld [vmem:[%s7128_s18 + $0x490] sm:$0xff] }
  0x3a   : > { %398 = vst [vmem:[%s7133_s19 + $0x240] sm:$0xff] %v397_v8  ;;  %400 = vst [vmem:[%s7133_s19 + $0x248] sm:$0xff] %v399_v9  ;;  %v403_v11 = vld [vmem:[%s7128_s18 + $0x498] sm:$0xff]  ;;  %v405_v12 = vld [vmem:[%s7128_s18 + $0x4a0] sm:$0xff] }
  0x3b   : > { %402 = vst [vmem:[%s7133_s19 + $0x250] sm:$0xff] %v401_v10  ;;  %v407_v13 = vld [vmem:[%s7128_s18 + $0x4a8] sm:$0xff]  ;;  %404 = vst [vmem:[%s7133_s19 + $0x258] sm:$0xff] %v403_v11  ;;  %v409_v14 = vld [vmem:[%s7128_s18 + $0x4b0] sm:$0xff] }
  0x3c   : > { %406 = vst [vmem:[%s7133_s19 + $0x260] sm:$0xff] %v405_v12  ;;  %408 = vst [vmem:[%s7133_s19 + $0x268] sm:$0xff] %v407_v13  ;;  %v411_v15 = vld [vmem:[%s7128_s18 + $0x4b8] sm:$0xff]  ;;  %v413_v16 = vld [vmem:[%s7128_s18 + $0x4c0] sm:$0xff] }
  0x3d   : > { %410 = vst [vmem:[%s7133_s19 + $0x270] sm:$0xff] %v409_v14  ;;  %412 = vst [vmem:[%s7133_s19 + $0x278] sm:$0xff] %v411_v15  ;;  %v415_v17 = vld [vmem:[%s7128_s18 + $0x4c8] sm:$0xff]  ;;  %v417_v18 = vld [vmem:[%s7128_s18 + $0x4d0] sm:$0xff] }
  0x3e   : > { %414 = vst [vmem:[%s7133_s19 + $0x280] sm:$0xff] %v413_v16  ;;  %v419_v19 = vld [vmem:[%s7128_s18 + $0x4d8] sm:$0xff]  ;;  %416 = vst [vmem:[%s7133_s19 + $0x288] sm:$0xff] %v415_v17  ;;  %v421_v20 = vld [vmem:[%s7128_s18 + $0x4e0] sm:$0xff] }
  0x3f   : > { %418 = vst [vmem:[%s7133_s19 + $0x290] sm:$0xff] %v417_v18  ;;  %420 = vst [vmem:[%s7133_s19 + $0x298] sm:$0xff] %v419_v19  ;;  %v423_v21 = vld [vmem:[%s7128_s18 + $0x4e8] sm:$0xff]  ;;  %v425_v22 = vld [vmem:[%s7128_s18 + $0x4f0] sm:$0xff] }
  0x40   : > { %422 = vst [vmem:[%s7133_s19 + $0x2a0] sm:$0xff] %v421_v20  ;;  %424 = vst [vmem:[%s7133_s19 + $0x2a8] sm:$0xff] %v423_v21  ;;  %v427_v23 = vld [vmem:[%s7128_s18 + $0x4f8] sm:$0xff]  ;;  %v429_v24 = vld [vmem:[%s7128_s18 + $0x500] sm:$0xff] }
  0x41   : > { %426 = vst [vmem:[%s7133_s19 + $0x2b0] sm:$0xff] %v425_v22  ;;  %v431_v25 = vld [vmem:[%s7128_s18 + $0x508] sm:$0xff]  ;;  %428 = vst [vmem:[%s7133_s19 + $0x2b8] sm:$0xff] %v427_v23  ;;  %v433_v26 = vld [vmem:[%s7128_s18 + $0x510] sm:$0xff] }
  0x42   : > { %430 = vst [vmem:[%s7133_s19 + $0x2c0] sm:$0xff] %v429_v24  ;;  %432 = vst [vmem:[%s7133_s19 + $0x2c8] sm:$0xff] %v431_v25  ;;  %v435_v27 = vld [vmem:[%s7128_s18 + $0x518] sm:$0xff]  ;;  %v437_v28 = vld [vmem:[%s7128_s18 + $0x520] sm:$0xff] }
  0x43   : > { %434 = vst [vmem:[%s7133_s19 + $0x2d0] sm:$0xff] %v433_v26  ;;  %436 = vst [vmem:[%s7133_s19 + $0x2d8] sm:$0xff] %v435_v27  ;;  %v439_v29 = vld [vmem:[%s7128_s18 + $0x528] sm:$0xff]  ;;  %v441_v30 = vld [vmem:[%s7128_s18 + $0x530] sm:$0xff] }
  0x44   : > { %438 = vst [vmem:[%s7133_s19 + $0x2e0] sm:$0xff] %v437_v28  ;;  %v443_v31 = vld [vmem:[%s7128_s18 + $0x538] sm:$0xff]  ;;  %440 = vst [vmem:[%s7133_s19 + $0x2e8] sm:$0xff] %v439_v29  ;;  %v445_v32 = vld [vmem:[%s7128_s18 + $0x540] sm:$0xff] }
  0x45   : > { %442 = vst [vmem:[%s7133_s19 + $0x2f0] sm:$0xff] %v441_v30  ;;  %444 = vst [vmem:[%s7133_s19 + $0x2f8] sm:$0xff] %v443_v31  ;;  %v447_v33 = vld [vmem:[%s7128_s18 + $0x548] sm:$0xff]  ;;  %v449_v34 = vld [vmem:[%s7128_s18 + $0x550] sm:$0xff] }
  0x46   : > { %446 = vst [vmem:[%s7133_s19 + $0x300] sm:$0xff] %v445_v32  ;;  %448 = vst [vmem:[%s7133_s19 + $0x308] sm:$0xff] %v447_v33  ;;  %v451_v35 = vld [vmem:[%s7128_s18 + $0x558] sm:$0xff]  ;;  %v453_v36 = vld [vmem:[%s7128_s18 + $0x560] sm:$0xff] }
  0x47   : > { %450 = vst [vmem:[%s7133_s19 + $0x310] sm:$0xff] %v449_v34  ;;  %v455_v37 = vld [vmem:[%s7128_s18 + $0x568] sm:$0xff]  ;;  %452 = vst [vmem:[%s7133_s19 + $0x318] sm:$0xff] %v451_v35  ;;  %v457_v38 = vld [vmem:[%s7128_s18 + $0x570] sm:$0xff] }
  0x48   : > { %454 = vst [vmem:[%s7133_s19 + $0x320] sm:$0xff] %v453_v36  ;;  %456 = vst [vmem:[%s7133_s19 + $0x328] sm:$0xff] %v455_v37  ;;  %v459_v39 = vld [vmem:[%s7128_s18 + $0x578] sm:$0xff]  ;;  %v461_v40 = vld [vmem:[%s7128_s18 + $0x580] sm:$0xff] }
  0x49   : > { %458 = vst [vmem:[%s7133_s19 + $0x330] sm:$0xff] %v457_v38  ;;  %460 = vst [vmem:[%s7133_s19 + $0x338] sm:$0xff] %v459_v39  ;;  %v463_v41 = vld [vmem:[%s7128_s18 + $0x588] sm:$0xff]  ;;  %v465_v42 = vld [vmem:[%s7128_s18 + $0x590] sm:$0xff] }
  0x4a   : > { %462 = vst [vmem:[%s7133_s19 + $0x340] sm:$0xff] %v461_v40  ;;  %v467_v43 = vld [vmem:[%s7128_s18 + $0x598] sm:$0xff]  ;;  %464 = vst [vmem:[%s7133_s19 + $0x348] sm:$0xff] %v463_v41 }
  0x4b   : > { %466 = vst [vmem:[%s7133_s19 + $0x350] sm:$0xff] %v465_v42  ;;  %468 = vst [vmem:[%s7133_s19 + $0x358] sm:$0xff] %v467_v43 }
  0x4c PF: > { %p6484_p10 = scmp.ge.s32.totalorder %s7028_s27, 1  ;;  %p473_p11 = scmp.lt.s32.totalorder %s7028_s27, 3 }
  0x4e   : > { %p474_p12 = pnand %p6484_p10, %p473_p11 }
  0x50   : > { %477 = sbr.rel (%p474_p12) target bundleno = 1477 (0x5c5), region = 67 }
  0x55   : > { %s7351_s20 = sand.u32 1, %s7020_s25   ;;  %v9020_v44 = vmov 0   ;;  %v626_v45 = vld [vmem:[%s9013_s1] sm:$0xff]  ;;  %v628_v46 = vld [vmem:[%s9013_s1 + $0x10] sm:$0xff]  ;;  %vm1207_vm0 = vcmask 1040384   ;;  %v627_v63 = vld [vmem:[%s9013_s1 + $0x8] sm:$0xff] }
  0x56   : > { %s6813_s21 = smul.u32 864, %s7351_s20  ;;  %1456 = vmatprep.mubr.bf16.mxu0 %v9020_v44  ;;  %1509 = vmatprep.mubr.bf16.mxu1 %v9020_v44  ;;  %v629_v0 = vld [vmem:[%s9013_s1 + $0x18] sm:$0xff]  ;;  %v7387_v7 = vld [vmem:[%s9012_s0] sm:$0xff]   ;;  %vm1200_vm1 = vcmask 146432   ;;  %v7408_v22 = vld [vmem:[%s9012_s0 + $0x8] sm:$0xff]   ;;  %vm3771_vm2 = vcmask 261120  }
  0x57   : > { %6857 = vset.pattern.permute.xlu1 %v9020_v44  ;;  %6856 = vset.pattern.permute.xlu0 %v9020_v44  ;;  %vm5341_vm3 = vcmask 654336   ;;  %vm5674_vm4 = vcmask 130048   ;;  %s6485_s13 = sshll.u32 %s7351_s20, 3  ;;  %s6811_s14 = sshll.u32 %s6479_s28, 7 }
  0x58   : > { %632 = vperm.xlu1 %6857, %v626_v45   ;;  %s7364_s9 = scalar_lea.vmem [#allocation2], %s6813_s21  ;;  %642 = vperm.xlu0 %6856, %v628_v46   ;;  %s510_s15 = scalar_lea.vmem [#allocation3], %s6485_s13 }
  0x59   : > { %v586_v47 = vld [vmem:[%s7364_s9 + $0x240] sm:$0x11]  ;;  %v587_v48 = vld [vmem:[%s7364_s9 + $0x248] sm:$0x11]  ;;  %v588_v59 = vld [vmem:[%s7364_s9 + $0x250] sm:$0x11]  ;;  %s6413_s19 = scalar_lea.hbm %s9019_s7, %s6811_s14 }
  0x5a   : > { %v514_v49 = vld [vmem:[%s7364_s9] sm:$0xff]  ;;  %v6561_v50 = vcombine.high %v586_v47, %v586_v47  ;;  %v6563_v51 = vcombine.high %v587_v48, %v587_v48  ;;  %v6560_v52 = vcombine.low %v586_v47, %v586_v47  ;;  %v6562_v53 = vcombine.low %v587_v48, %v587_v48  ;;  %v515_v55 = vld [vmem:[%s7364_s9 + $0x8] sm:$0xff]  ;;  %v589_v60 = vld [vmem:[%s7364_s9 + $0x258] sm:$0x11]  ;;  %s6415_s16 = sshll.u32 %s510_s15, 4  ;;  %s6401_s21 = scalar_lea.sflag [#allocation4], %s7351_s20  ;;  %s6416_s16 = int_to_ptr.vmem [resolvable:$true] %s6415_s16 }
  0x5b   : > { %v550_v54 = vld [vmem:[%s7364_s9 + $0x120] sm:$0xff]  ;;  %v551_v56 = vld [vmem:[%s7364_s9 + $0x128] sm:$0xff]  ;;  %v6565_v3 = vcombine.high %v588_v59, %v588_v59  ;;  %v6567_v4 = vcombine.high %v589_v60, %v589_v60  ;;  %v6564_v5 = vcombine.low %v588_v59, %v588_v59  ;;  %v6566_v6 = vcombine.low %v589_v60, %v589_v60  ;;  %v516_v8 = vld [vmem:[%s7364_s9 + $0x10] sm:$0xff]  ;;  %s6968_s22 = scalar_lea.vmem %s6416_s16, 128  ;;  %s7033_s23 = smov [#allocation3]  }
  0x5c   : > { %v6489_v57 = vcombine.high %v514_v49, %v550_v54  ;;  %v6491_v58 = vcombine.high %v515_v55, %v551_v56  ;;  %6632 = vmatprep.subr.msk.bf16.mxu0 %vm1207_vm0, %v6561_v50  ;;  %6635 = vmatprep.subr.msk.bf16.mxu1 %vm1207_vm0, %v6563_v51  ;;  %v1209_v61 = vsel %vm1207_vm0, %v6560_v52, 0  ;;  %v1215_v62 = vsel %vm1207_vm0, %v6562_v53, 0  ;;  %v552_v9 = vld [vmem:[%s7364_s9 + $0x130] sm:$0xff]  ;;  %v517_v10 = vld [vmem:[%s7364_s9 + $0x18] sm:$0xff]  ;;  %v590_v16 = vld [vmem:[%s7364_s9 + $0x260] sm:$0x11]  ;;  %p6969_p13 = scmp.ne.s32.totalorder %s6416_s16, %s6968_s22 }
  0x5d   : > { %1437 = vmatpush1.bf16.msra.mxu0 %v1209_v61  ;;  %1490 = vmatpush1.bf16.msra.mxu1 %v1215_v62  ;;  %v6488_v1 = vcombine.low %v514_v49, %v550_v54  ;;  %v6490_v2 = vcombine.low %v515_v55, %v551_v56  ;;  %v553_v11 = vld [vmem:[%s7364_s9 + $0x138] sm:$0xff]  ;;  %v1221_v12 = vsel %vm1207_vm0, %v6564_v5, 0  ;;  %v1227_v13 = vsel %vm1207_vm0, %v6566_v6, 0  ;;  %v591_v17 = vld [vmem:[%s7364_s9 + $0x268] sm:$0x11]  ;;  %v518_v25 = vld [vmem:[%s7364_s9 + $0x20] sm:$0xff] }
  0x5e   : > { %1438 = vmatprep.subr.bf16.mxu0 %v6489_v57  ;;  %1491 = vmatprep.subr.bf16.mxu1 %v6491_v58  ;;  %v6493_v14 = vcombine.high %v516_v8, %v552_v9  ;;  %v6495_v15 = vcombine.high %v517_v10, %v553_v11  ;;  %v6492_v18 = vcombine.low %v516_v8, %v552_v9  ;;  %v554_v26 = vld [vmem:[%s7364_s9 + $0x140] sm:$0xff]  ;;  %v519_v27 = vld [vmem:[%s7364_s9 + $0x28] sm:$0xff]  ;;  %v592_v33 = vld [vmem:[%s7364_s9 + $0x270] sm:$0x11]  ;;  %p6970_p0 = pnand %p6969_p13, %p7112_p6  ;;  %s6972_s29 = sshll.u32 %s7033_s23, 4  ;;  %s6973_s29 = int_to_ptr.vmem [resolvable:$false] %s6972_s29 }
  0x5f   : > { %637 = vperm.xlu1 %6857, %v627_v63   ;;  %647 = vperm.xlu0 %6856, %v629_v0   ;;  %v6494_v19 = vcombine.low %v517_v10, %v553_v11  ;;  %v6569_v20 = vcombine.high %v590_v16, %v590_v16  ;;  %v6571_v21 = vcombine.high %v591_v17, %v591_v17  ;;  %v555_v28 = vld [vmem:[%s7364_s9 + $0x148] sm:$0xff]  ;;  %v593_v34 = vld [vmem:[%s7364_s9 + $0x278] sm:$0x11]  ;;  %v520_v41 = vld [vmem:[%s7364_s9 + $0x30] sm:$0xff]  ;;  %s6974_s28 = scalar_lea.vmem %s6973_s29, 256  ;;  %p6975_p2 = scmp.lt.s32.totalorder %s6416_s16, %s6973_s29 }
  0x60   : > { %v6568_v23 = vcombine.low %v590_v16, %v590_v16  ;;  %v6570_v24 = vcombine.low %v591_v17, %v591_v17  ;;  %v6497_v31 = vcombine.high %v518_v25, %v554_v26  ;;  %v6499_v32 = vcombine.high %v519_v27, %v555_v28  ;;  %v556_v42 = vld [vmem:[%s7364_s9 + $0x150] sm:$0xff]  ;;  %v521_v43 = vld [vmem:[%s7364_s9 + $0x38] sm:$0xff]  ;;  %v594_v50 = vld [vmem:[%s7364_s9 + $0x280] sm:$0x11]  ;;  %p6971_p1 = pneg %p6970_p0  ;;  %p6976_p3 = scmp.lt.s32.totalorder %s6974_s28, %s6968_s22 }
  0x61   : > { %1439 = vmatpush1.bf16.msra.mxu0 %v6488_v1  ;;  %1492 = vmatpush1.bf16.msra.mxu1 %v6490_v2  ;;  %v6496_v35 = vcombine.low %v518_v25, %v554_v26  ;;  %v6498_v36 = vcombine.low %v519_v27, %v555_v28  ;;  %v6573_v37 = vcombine.high %v592_v33, %v592_v33  ;;  %v557_v45 = vld [vmem:[%s7364_s9 + $0x158] sm:$0xff]  ;;  %v595_v51 = vld [vmem:[%s7364_s9 + $0x288] sm:$0x11]  ;;  %v522_v58 = vld [vmem:[%s7364_s9 + $0x40] sm:$0xff] }
  0x62   : > { %6638 = vmatprep.subr.msk.bf16.mxu0 %vm1207_vm0, %v6565_v3  ;;  %6641 = vmatprep.subr.msk.bf16.mxu1 %vm1207_vm0, %v6567_v4  ;;  %v1233_v29 = vsel %vm1207_vm0, %v6568_v23, 0  ;;  %v1239_v30 = vsel %vm1207_vm0, %v6570_v24, 0  ;;  %v6575_v38 = vcombine.high %v593_v34, %v593_v34  ;;  %v6572_v39 = vcombine.low %v592_v33, %v592_v33  ;;  %v558_v59 = vld [vmem:[%s7364_s9 + $0x160] sm:$0xff]  ;;  %v523_v60 = vld [vmem:[%s7364_s9 + $0x48] sm:$0xff]  ;;  %v596_v2 = vld [vmem:[%s7364_s9 + $0x290] sm:$0x11]  ;;  %p6977_p4 = por %p6976_p3, %p6975_p2 }
  0x63   : > { %v6574_v40 = vcombine.low %v593_v34, %v593_v34  ;;  %v6501_v48 = vcombine.high %v520_v41, %v556_v42  ;;  %v6503_v49 = vcombine.high %v521_v43, %v557_v45  ;;  %v6500_v52 = vcombine.low %v520_v41, %v556_v42  ;;  %v559_v61 = vld [vmem:[%s7364_s9 + $0x168] sm:$0xff]  ;;  %v597_v3 = vld [vmem:[%s7364_s9 + $0x298] sm:$0x11]  ;;  %v524_v11 = vld [vmem:[%s7364_s9 + $0x50] sm:$0xff] }
  0x64   : > { %6633 = vmatmul.mubr.msk.bf16.vlgmr.msra.gmra.mxu0 %vm1200_vm1, %v7387_v7  ;;  %6636 = vmatmul.mubr.msk.bf16.vlgmr.msra.gmra.mxu1 %vm1200_vm1, %v7387_v7  ;;  %v1245_v46 = vsel %vm1207_vm0, %v6572_v39, 0  ;;  %v6502_v53 = vcombine.low %v521_v43, %v557_v45  ;;  %v6577_v54 = vcombine.high %v594_v50, %v594_v50  ;;  %v6579_v55 = vcombine.high %v595_v51, %v595_v51  ;;  %v526_v28 = vld [vmem:[%s7364_s9 + $0x60] sm:$0xff]  ;;  %v528_v45 = vld [vmem:[%s7364_s9 + $0x70] sm:$0xff]  ;;  %p6978_p5 = pnand %p6977_p4, %p6971_p1 }
  0x65   : > { %1543 = vmatpush1.bf16.msra.mxu0 %v1221_v12  ;;  %1596 = vmatpush1.bf16.msra.mxu1 %v1227_v13  ;;  %v1251_v47 = vsel %vm1207_vm0, %v6574_v40, 0  ;;  %v6576_v56 = vcombine.low %v594_v50, %v594_v50  ;;  %v6578_v57 = vcombine.low %v595_v51, %v595_v51  ;;  %v6505_v0 = vcombine.high %v522_v58, %v558_v59  ;;  %v560_v12 = vld [vmem:[%s7364_s9 + $0x170] sm:$0xff]  ;;  %v525_v13 = vld [vmem:[%s7364_s9 + $0x58] sm:$0xff] }
  0x66   : > { %1466 = vmatprep.mubr.bf16.mxu0 %v9020_v44  ;;  %1519 = vmatprep.mubr.bf16.mxu1 %v9020_v44  ;;  %v6507_v1 = vcombine.high %v523_v60, %v559_v61  ;;  %v6504_v4 = vcombine.low %v522_v58, %v558_v59  ;;  %v6506_v5 = vcombine.low %v523_v60, %v559_v61  ;;  %v530_v61 = vld [vmem:[%s7364_s9 + $0x80] sm:$0xff] }
  0x67   : > { %1544 = vmatprep.subr.bf16.mxu0 %v6493_v14  ;;  %1597 = vmatprep.subr.bf16.mxu1 %v6495_v15  ;;  %v1257_v62 = vsel %vm1207_vm0, %v6576_v56, 0  ;;  %v1263_v63 = vsel %vm1207_vm0, %v6578_v57, 0  ;;  %v6581_v6 = vcombine.high %v596_v2, %v596_v2  ;;  %v6583_v8 = vcombine.high %v597_v3, %v597_v3  ;;  %v561_v14 = vld [vmem:[%s7364_s9 + $0x178] sm:$0xff] }
  0x68   : > { %v6580_v9 = vcombine.low %v596_v2, %v596_v2  ;;  %v6582_v10 = vcombine.low %v597_v3, %v597_v3  ;;  %v6509_v17 = vcombine.high %v524_v11, %v560_v12  ;;  %v6510_v23 = vcombine.low %v525_v13, %v561_v14 }
  0x69   : > { %1545 = vmatpush1.bf16.msra.mxu0 %v6492_v18  ;;  %1598 = vmatpush1.bf16.msra.mxu1 %v6494_v19  ;;  %v6511_v18 = vcombine.high %v525_v13, %v561_v14  ;;  %v598_v19 = vld [vmem:[%s7364_s9 + $0x2a0] sm:$0x11]  ;;  %v532_v14 = vld [vmem:[%s7364_s9 + $0x90] sm:$0xff] }
  0x6a   : > { %6644 = vmatprep.subr.msk.bf16.mxu0 %vm1207_vm0, %v6569_v20  ;;  %6647 = vmatprep.subr.msk.bf16.mxu1 %vm1207_vm0, %v6571_v21  ;;  %v1269_v15 = vsel %vm1207_vm0, %v6580_v9, 0  ;;  %v1275_v16 = vsel %vm1207_vm0, %v6582_v10, 0  ;;  %v599_v20 = vld [vmem:[%s7364_s9 + $0x2a8] sm:$0x11]  ;;  %v6508_v21 = vcombine.low %v524_v11, %v560_v12  ;;  %v6585_v24 = vcombine.high %v598_v19, %v598_v19 }
  0x6b   : > { %v6587_v25 = vcombine.high %v599_v20, %v599_v20  ;;  %v6584_v26 = vcombine.low %v598_v19, %v598_v19  ;;  %v6586_v27 = vcombine.low %v599_v20, %v599_v20 }
  0x6c   : > { %6634 = vmatmul.mubr.msk.bf16.gmra.mxu0 %vm1200_vm1, %v7408_v22  ;;  %6637 = vmatmul.mubr.msk.bf16.gmra.mxu1 %vm1200_vm1, %v7408_v22 }
  0x6d   : > { %1562 = vmatprep.mubr.bf16.mxu0 %v9020_v44  ;;  %1615 = vmatprep.mubr.bf16.mxu1 %v9020_v44  ;;  %v1287_v33 = vsel %vm1207_vm0, %v6586_v27, 0 }
  0x74   : > { %6639 = vmatmul.mubr.msk.bf16.vlgmr.msra.gmra.mxu0 %vm1200_vm1, %v7387_v7  ;;  %6642 = vmatmul.mubr.msk.bf16.vlgmr.msra.gmra.mxu1 %vm1200_vm1, %v7387_v7 }
  0x75   : > { %1649 = vmatpush1.bf16.msra.mxu0 %v1233_v29  ;;  %1702 = vmatpush1.bf16.msra.mxu1 %v1239_v30  ;;  %v562_v29 = vld [vmem:[%s7364_s9 + $0x180] sm:$0xff]  ;;  %v527_v30 = vld [vmem:[%s7364_s9 + $0x68] sm:$0xff] }
  0x76   : > { %1572 = vmatprep.mubr.bf16.mxu0 %v9020_v44  ;;  %1625 = vmatprep.mubr.bf16.mxu1 %v9020_v44  ;;  %v6513_v34 = vcombine.high %v526_v28, %v562_v29 }
  0x77   : > { %1650 = vmatprep.subr.bf16.mxu0 %v6497_v31  ;;  %1703 = vmatprep.subr.bf16.mxu1 %v6499_v32  ;;  %v563_v31 = vld [vmem:[%s7364_s9 + $0x188] sm:$0xff]  ;;  %v1281_v32 = vsel %vm1207_vm0, %v6584_v26, 0 }
  0x78   : > { %v6514_v39 = vcombine.low %v527_v30, %v563_v31 }
  0x79   : > { %1651 = vmatpush1.bf16.msra.mxu0 %v6496_v35  ;;  %1704 = vmatpush1.bf16.msra.mxu1 %v6498_v36  ;;  %v6515_v35 = vcombine.high %v527_v30, %v563_v31  ;;  %v600_v36 = vld [vmem:[%s7364_s9 + $0x2b0] sm:$0x11]  ;;  %v534_v31 = vld [vmem:[%s7364_s9 + $0xa0] sm:$0xff] }
  0x7a   : > { %6650 = vmatprep.subr.msk.bf16.mxu0 %vm1207_vm0, %v6573_v37  ;;  %6653 = vmatprep.subr.msk.bf16.mxu1 %vm1207_vm0, %v6575_v38  ;;  %v601_v37 = vld [vmem:[%s7364_s9 + $0x2b8] sm:$0x11]  ;;  %v6512_v38 = vcombine.low %v526_v28, %v562_v29  ;;  %v6589_v40 = vcombine.high %v600_v36, %v600_v36  ;;  %v6588_v42 = vcombine.low %v600_v36, %v600_v36 }
  0x7b   : > { %v6591_v41 = vcombine.high %v601_v37, %v601_v37  ;;  %v6590_v43 = vcombine.low %v601_v37, %v601_v37 }
  0x7c   : > { %6640 = vmatmul.mubr.msk.bf16.gmra.mxu0 %vm1200_vm1, %v7408_v22  ;;  %6643 = vmatmul.mubr.msk.bf16.gmra.mxu1 %vm1200_vm1, %v7408_v22 }
  0x7d   : > { %1668 = vmatprep.mubr.bf16.mxu0 %v9020_v44  ;;  %1721 = vmatprep.mubr.bf16.mxu1 %v9020_v44  ;;  %v1299_v50 = vsel %vm1207_vm0, %v6590_v43, 0 }
  0x84   : > { %6645 = vmatmul.mubr.msk.bf16.vlgmr.msra.gmra.mxu0 %vm1200_vm1, %v7387_v7  ;;  %6648 = vmatmul.mubr.msk.bf16.vlgmr.msra.gmra.mxu1 %vm1200_vm1, %v7387_v7 }
  0x85   : > { %1755 = vmatpush1.bf16.msra.mxu0 %v1245_v46  ;;  %1808 = vmatpush1.bf16.msra.mxu1 %v1251_v47  ;;  %v564_v46 = vld [vmem:[%s7364_s9 + $0x190] sm:$0xff]  ;;  %v529_v47 = vld [vmem:[%s7364_s9 + $0x78] sm:$0xff] }
  0x86   : > { %1678 = vmatprep.mubr.bf16.mxu0 %v9020_v44  ;;  %1731 = vmatprep.mubr.bf16.mxu1 %v9020_v44  ;;  %v6517_v51 = vcombine.high %v528_v45, %v564_v46 }
  0x87   : > { %1756 = vmatprep.subr.bf16.mxu0 %v6501_v48  ;;  %1809 = vmatprep.subr.bf16.mxu1 %v6503_v49  ;;  %v565_v48 = vld [vmem:[%s7364_s9 + $0x198] sm:$0xff]  ;;  %v1293_v49 = vsel %vm1207_vm0, %v6588_v42, 0 }
  0x88   : > { %v6518_v56 = vcombine.low %v529_v47, %v565_v48 }
  0x89   : > { %1757 = vmatpush1.bf16.msra.mxu0 %v6500_v52  ;;  %1810 = vmatpush1.bf16.msra.mxu1 %v6502_v53  ;;  %v6519_v52 = vcombine.high %v529_v47, %v565_v48  ;;  %v602_v53 = vld [vmem:[%s7364_s9 + $0x2c0] sm:$0x11]  ;;  %v536_v48 = vld [vmem:[%s7364_s9 + $0xb0] sm:$0xff] }
  0x8a   : > { %6656 = vmatprep.subr.msk.bf16.mxu0 %vm1207_vm0, %v6577_v54  ;;  %6659 = vmatprep.subr.msk.bf16.mxu1 %vm1207_vm0, %v6579_v55  ;;  %v603_v54 = vld [vmem:[%s7364_s9 + $0x2c8] sm:$0x11]  ;;  %v6516_v55 = vcombine.low %v528_v45, %v564_v46  ;;  %v6593_v57 = vcombine.high %v602_v53, %v602_v53  ;;  %v6592_v59 = vcombine.low %v602_v53, %v602_v53 }
  0x8b   : > { %v6595_v58 = vcombine.high %v603_v54, %v603_v54  ;;  %v6594_v60 = vcombine.low %v603_v54, %v603_v54 }
  0x8c   : > { %6646 = vmatmul.mubr.msk.bf16.gmra.mxu0 %vm1200_vm1, %v7408_v22  ;;  %6649 = vmatmul.mubr.msk.bf16.gmra.mxu1 %vm1200_vm1, %v7408_v22 }
  0x8d   : > { %1774 = vmatprep.mubr.bf16.mxu0 %v9020_v44  ;;  %1827 = vmatprep.mubr.bf16.mxu1 %v9020_v44  ;;  %v1311_v2 = vsel %vm1207_vm0, %v6594_v60, 0 }
  0x94   : > { %6651 = vmatmul.mubr.msk.bf16.vlgmr.msra.gmra.mxu0 %vm1200_vm1, %v7387_v7  ;;  %6654 = vmatmul.mubr.msk.bf16.vlgmr.msra.gmra.mxu1 %vm1200_vm1, %v7387_v7 }
  0x95   : > { %1861 = vmatpush1.bf16.msra.mxu0 %v1257_v62  ;;  %1914 = vmatpush1.bf16.msra.mxu1 %v1263_v63  ;;  %v566_v62 = vld [vmem:[%s7364_s9 + $0x1a0] sm:$0xff]  ;;  %v531_v63 = vld [vmem:[%s7364_s9 + $0x88] sm:$0xff] }
  0x96   : > { %1784 = vmatprep.mubr.bf16.mxu0 %v9020_v44  ;;  %1837 = vmatprep.mubr.bf16.mxu1 %v9020_v44  ;;  %v6521_v3 = vcombine.high %v530_v61, %v566_v62 }
  0x97   : > { %1862 = vmatprep.subr.bf16.mxu0 %v6505_v0  ;;  %1915 = vmatprep.subr.bf16.mxu1 %v6507_v1  ;;  %v567_v0 = vld [vmem:[%s7364_s9 + $0x1a8] sm:$0xff]  ;;  %v1305_v1 = vsel %vm1207_vm0, %v6592_v59, 0 }
  0x98   : > { %v6522_v9 = vcombine.low %v531_v63, %v567_v0 }
  0x99   : > { %1863 = vmatpush1.bf16.msra.mxu0 %v6504_v4  ;;  %1916 = vmatpush1.bf16.msra.mxu1 %v6506_v5  ;;  %v6523_v4 = vcombine.high %v531_v63, %v567_v0  ;;  %v604_v5 = vld [vmem:[%s7364_s9 + $0x2d0] sm:$0x11]  ;;  %v538_v0 = vld [vmem:[%s7364_s9 + $0xc0] sm:$0xff] }
  0x9a   : > { %6662 = vmatprep.subr.msk.bf16.mxu0 %vm1207_vm0, %v6581_v6  ;;  %6665 = vmatprep.subr.msk.bf16.mxu1 %vm1207_vm0, %v6583_v8  ;;  %v605_v6 = vld [vmem:[%s7364_s9 + $0x2d8] sm:$0x11]  ;;  %v6520_v8 = vcombine.low %v530_v61, %v566_v62  ;;  %v6597_v10 = vcombine.high %v604_v5, %v604_v5  ;;  %v6596_v12 = vcombine.low %v604_v5, %v604_v5 }
  0x9b   : > { %v6599_v11 = vcombine.high %v605_v6, %v605_v6  ;;  %v6598_v13 = vcombine.low %v605_v6, %v605_v6 }
  0x9c   : > { %6652 = vmatmul.mubr.msk.bf16.gmra.mxu0 %vm1200_vm1, %v7408_v22  ;;  %6655 = vmatmul.mubr.msk.bf16.gmra.mxu1 %vm1200_vm1, %v7408_v22 }
  0x9d   : > { %1880 = vmatprep.mubr.bf16.mxu0 %v9020_v44  ;;  %1933 = vmatprep.mubr.bf16.mxu1 %v9020_v44  ;;  %v1323_v19 = vsel %vm1207_vm0, %v6598_v13, 0 }
  0xa4   : > { %6657 = vmatmul.mubr.msk.bf16.vlgmr.msra.gmra.mxu0 %vm1200_vm1, %v7387_v7  ;;  %6660 = vmatmul.mubr.msk.bf16.vlgmr.msra.gmra.mxu1 %vm1200_vm1, %v7387_v7 }
  0xa5   : > { %1967 = vmatpush1.bf16.msra.mxu0 %v1269_v15  ;;  %2020 = vmatpush1.bf16.msra.mxu1 %v1275_v16  ;;  %v568_v15 = vld [vmem:[%s7364_s9 + $0x1b0] sm:$0xff]  ;;  %v533_v16 = vld [vmem:[%s7364_s9 + $0x98] sm:$0xff] }
  0xa6   : > { %1890 = vmatprep.mubr.bf16.mxu0 %v9020_v44  ;;  %1943 = vmatprep.mubr.bf16.mxu1 %v9020_v44  ;;  %v6525_v20 = vcombine.high %v532_v14, %v568_v15 }
  0xa7   : > { %1968 = vmatprep.subr.bf16.mxu0 %v6509_v17  ;;  %2021 = vmatprep.subr.bf16.mxu1 %v6511_v18  ;;  %v569_v17 = vld [vmem:[%s7364_s9 + $0x1b8] sm:$0xff]  ;;  %v1317_v18 = vsel %vm1207_vm0, %v6596_v12, 0 }
  0xa8   : > { %v6526_v26 = vcombine.low %v533_v16, %v569_v17 }
  0xa9   : > { %1969 = vmatpush1.bf16.msra.mxu0 %v6508_v21  ;;  %2022 = vmatpush1.bf16.msra.mxu1 %v6510_v23  ;;  %v6527_v21 = vcombine.high %v533_v16, %v569_v17  ;;  %v606_v23 = vld [vmem:[%s7364_s9 + $0x2e0] sm:$0x11] }
  0xaa   : > { %6668 = vmatprep.subr.msk.bf16.mxu0 %vm1207_vm0, %v6585_v24  ;;  %6671 = vmatprep.subr.msk.bf16.mxu1 %vm1207_vm0, %v6587_v25  ;;  %v607_v24 = vld [vmem:[%s7364_s9 + $0x2e8] sm:$0x11]  ;;  %v6524_v25 = vcombine.low %v532_v14, %v568_v15  ;;  %v6601_v27 = vcombine.high %v606_v23, %v606_v23  ;;  %v6600_v29 = vcombine.low %v606_v23, %v606_v23 }
  0xab   : > { %v6603_v28 = vcombine.high %v607_v24, %v607_v24  ;;  %v6602_v30 = vcombine.low %v607_v24, %v607_v24 }
  0xac   : > { %6658 = vmatmul.mubr.msk.bf16.gmra.mxu0 %vm1200_vm1, %v7408_v22  ;;  %6661 = vmatmul.mubr.msk.bf16.gmra.mxu1 %vm1200_vm1, %v7408_v22 }
  0xad   : > { %1986 = vmatprep.mubr.bf16.mxu0 %v9020_v44  ;;  %2039 = vmatprep.mubr.bf16.mxu1 %v9020_v44  ;;  %v1335_v36 = vsel %vm1207_vm0, %v6602_v30, 0 }
  0xb4   : > { %6663 = vmatmul.mubr.msk.bf16.vlgmr.msra.gmra.mxu0 %vm1200_vm1, %v7387_v7  ;;  %6666 = vmatmul.mubr.msk.bf16.vlgmr.msra.gmra.mxu1 %vm1200_vm1, %v7387_v7 }
  0xb5   : > { %2073 = vmatpush1.bf16.msra.mxu0 %v1281_v32  ;;  %2126 = vmatpush1.bf16.msra.mxu1 %v1287_v33  ;;  %v570_v32 = vld [vmem:[%s7364_s9 + $0x1c0] sm:$0xff]  ;;  %v535_v33 = vld [vmem:[%s7364_s9 + $0xa8] sm:$0xff] }
  0xb6   : > { %1996 = vmatprep.mubr.bf16.mxu0 %v9020_v44  ;;  %2049 = vmatprep.mubr.bf16.mxu1 %v9020_v44  ;;  %v6529_v37 = vcombine.high %v534_v31, %v570_v32 }
  0xb7   : > { %2074 = vmatprep.subr.bf16.mxu0 %v6513_v34  ;;  %2127 = vmatprep.subr.bf16.mxu1 %v6515_v35  ;;  %v571_v34 = vld [vmem:[%s7364_s9 + $0x1c8] sm:$0xff]  ;;  %v1329_v35 = vsel %vm1207_vm0, %v6600_v29, 0 }
  0xb8   : > { %v6530_v42 = vcombine.low %v535_v33, %v571_v34 }
  0xb9   : > { %2075 = vmatpush1.bf16.msra.mxu0 %v6512_v38  ;;  %2128 = vmatpush1.bf16.msra.mxu1 %v6514_v39  ;;  %v6531_v38 = vcombine.high %v535_v33, %v571_v34  ;;  %v608_v39 = vld [vmem:[%s7364_s9 + $0x2f0] sm:$0x11] }
  0xba   : > { %6674 = vmatprep.subr.msk.bf16.mxu0 %vm1207_vm0, %v6589_v40  ;;  %6677 = vmatprep.subr.msk.bf16.mxu1 %vm1207_vm0, %v6591_v41  ;;  %v609_v40 = vld [vmem:[%s7364_s9 + $0x2f8] sm:$0x11]  ;;  %v6528_v41 = vcombine.low %v534_v31, %v570_v32  ;;  %v6605_v43 = vcombine.high %v608_v39, %v608_v39  ;;  %v6604_v46 = vcombine.low %v608_v39, %v608_v39 }
  0xbb   : > { %v6607_v45 = vcombine.high %v609_v40, %v609_v40  ;;  %v6606_v47 = vcombine.low %v609_v40, %v609_v40 }
  0xbc   : > { %6664 = vmatmul.mubr.msk.bf16.gmra.mxu0 %vm1200_vm1, %v7408_v22  ;;  %6667 = vmatmul.mubr.msk.bf16.gmra.mxu1 %vm1200_vm1, %v7408_v22 }
  0xbd   : > { %2092 = vmatprep.mubr.bf16.mxu0 %v9020_v44  ;;  %2145 = vmatprep.mubr.bf16.mxu1 %v9020_v44  ;;  %v1347_v53 = vsel %vm1207_vm0, %v6606_v47, 0 }
  0xc4   : > { %6669 = vmatmul.mubr.msk.bf16.vlgmr.msra.gmra.mxu0 %vm1200_vm1, %v7387_v7  ;;  %6672 = vmatmul.mubr.msk.bf16.vlgmr.msra.gmra.mxu1 %vm1200_vm1, %v7387_v7 }
  0xc5   : > { %2179 = vmatpush1.bf16.msra.mxu0 %v1293_v49  ;;  %2232 = vmatpush1.bf16.msra.mxu1 %v1299_v50  ;;  %v572_v49 = vld [vmem:[%s7364_s9 + $0x1d0] sm:$0xff]  ;;  %v537_v50 = vld [vmem:[%s7364_s9 + $0xb8] sm:$0xff] }
  0xc6   : > { %2102 = vmatprep.mubr.bf16.mxu0 %v9020_v44  ;;  %2155 = vmatprep.mubr.bf16.mxu1 %v9020_v44  ;;  %v6533_v54 = vcombine.high %v536_v48, %v572_v49 }
  0xc7   : > { %2180 = vmatprep.subr.bf16.mxu0 %v6517_v51  ;;  %2233 = vmatprep.subr.bf16.mxu1 %v6519_v52  ;;  %v573_v51 = vld [vmem:[%s7364_s9 + $0x1d8] sm:$0xff]  ;;  %v1341_v52 = vsel %vm1207_vm0, %v6604_v46, 0 }
  0xc8   : > { %v6534_v59 = vcombine.low %v537_v50, %v573_v51 }
  0xc9   : > { %2181 = vmatpush1.bf16.msra.mxu0 %v6516_v55  ;;  %2234 = vmatpush1.bf16.msra.mxu1 %v6518_v56  ;;  %v6535_v55 = vcombine.high %v537_v50, %v573_v51  ;;  %v610_v56 = vld [vmem:[%s7364_s9 + $0x300] sm:$0x11] }
  0xca   : > { %6680 = vmatprep.subr.msk.bf16.mxu0 %vm1207_vm0, %v6593_v57  ;;  %6683 = vmatprep.subr.msk.bf16.mxu1 %vm1207_vm0, %v6595_v58  ;;  %v611_v57 = vld [vmem:[%s7364_s9 + $0x308] sm:$0x11]  ;;  %v6532_v58 = vcombine.low %v536_v48, %v572_v49  ;;  %v6609_v60 = vcombine.high %v610_v56, %v610_v56  ;;  %v6608_v62 = vcombine.low %v610_v56, %v610_v56 }
  0xcb   : > { %v6611_v61 = vcombine.high %v611_v57, %v611_v57  ;;  %v6610_v63 = vcombine.low %v611_v57, %v611_v57 }
  0xcc   : > { %6670 = vmatmul.mubr.msk.bf16.gmra.mxu0 %vm1200_vm1, %v7408_v22  ;;  %6673 = vmatmul.mubr.msk.bf16.gmra.mxu1 %vm1200_vm1, %v7408_v22 }
  0xcd   : > { %2198 = vmatprep.mubr.bf16.mxu0 %v9020_v44  ;;  %2251 = vmatprep.mubr.bf16.mxu1 %v9020_v44  ;;  %v1359_v5 = vsel %vm1207_vm0, %v6610_v63, 0 }
  0xd3   : > { %v7660_v17 = vpop.permute.xlu1 %632 }
  0xd4   : > { %6675 = vmatmul.mubr.msk.bf16.vlgmr.msra.gmra.mxu0 %vm1200_vm1, %v7387_v7  ;;  %6678 = vmatmul.mubr.msk.bf16.vlgmr.msra.gmra.mxu1 %vm1200_vm1, %v7387_v7 }
  0xd5   : > { %2285 = vmatpush1.bf16.msra.mxu0 %v1305_v1  ;;  %2338 = vmatpush1.bf16.msra.mxu1 %v1311_v2  ;;  %v574_v1 = vld [vmem:[%s7364_s9 + $0x1e0] sm:$0xff]  ;;  %v539_v2 = vld [vmem:[%s7364_s9 + $0xc8] sm:$0xff] }
  0xd6   : > { %2208 = vmatprep.mubr.bf16.mxu0 %v9020_v44  ;;  %2261 = vmatprep.mubr.bf16.mxu1 %v9020_v44  ;;  %v6537_v6 = vcombine.high %v538_v0, %v574_v1 }
  0xd7   : > { %2286 = vmatprep.subr.bf16.mxu0 %v6521_v3  ;;  %2339 = vmatprep.subr.bf16.mxu1 %v6523_v4  ;;  %v575_v3 = vld [vmem:[%s7364_s9 + $0x1e8] sm:$0xff]  ;;  %v1353_v4 = vsel %vm1207_vm0, %v6608_v62, 0 }
  0xd8   : > { %v6538_v12 = vcombine.low %v539_v2, %v575_v3 }
  0xd9   : > { %2287 = vmatpush1.bf16.msra.mxu0 %v6520_v8  ;;  %2340 = vmatpush1.bf16.msra.mxu1 %v6522_v9  ;;  %v6539_v8 = vcombine.high %v539_v2, %v575_v3  ;;  %v612_v9 = vld [vmem:[%s7364_s9 + $0x310] sm:$0x11]  ;;  %v542_v3 = vld [vmem:[%s7364_s9 + $0xe0] sm:$0xff] }
  0xda   : > { %6686 = vmatprep.subr.msk.bf16.mxu0 %vm1207_vm0, %v6597_v10  ;;  %6689 = vmatprep.subr.msk.bf16.mxu1 %vm1207_vm0, %v6599_v11  ;;  %v613_v10 = vld [vmem:[%s7364_s9 + $0x318] sm:$0x11]  ;;  %v6536_v11 = vcombine.low %v538_v0, %v574_v1  ;;  %v6613_v13 = vcombine.high %v612_v9, %v612_v9  ;;  %v6612_v15 = vcombine.low %v612_v9, %v612_v9  ;;  %v7678_v31 = vpop.permute.xlu1 %637  ;;  %v578_v9 = vld [vmem:[%s7364_s9 + $0x200] sm:$0xff] }
  0xdb   : > { %v6615_v14 = vcombine.high %v613_v10, %v613_v10  ;;  %v6614_v16 = vcombine.low %v613_v10, %v613_v10  ;;  %v543_v10 = vld [vmem:[%s7364_s9 + $0xe8] sm:$0xff] }
  0xdc   : > { %6676 = vmatmul.mubr.msk.bf16.gmra.mxu0 %vm1200_vm1, %v7408_v22  ;;  %6679 = vmatmul.mubr.msk.bf16.gmra.mxu1 %vm1200_vm1, %v7408_v22  ;;  %v1365_v23 = vsel %vm1207_vm0, %v6612_v15, 0 }
  0xdd   : > { %2304 = vmatprep.mubr.bf16.mxu0 %v9020_v44  ;;  %2357 = vmatprep.mubr.bf16.mxu1 %v9020_v44  ;;  %v1371_v24 = vsel %vm1207_vm0, %v6614_v16, 0  ;;  %v7737_v16 = vld [vmem:[%s7364_s9 + $0x330] sm:$0x11] }
  0xe4   : > { %6681 = vmatmul.mubr.msk.bf16.vlgmr.msra.gmra.mxu0 %vm1200_vm1, %v7387_v7  ;;  %6684 = vmatmul.mubr.msk.bf16.vlgmr.msra.gmra.mxu1 %vm1200_vm1, %v7387_v7 }
  0xe5   : > { %2391 = vmatpush1.bf16.msra.mxu0 %v1317_v18  ;;  %2444 = vmatpush1.bf16.msra.mxu1 %v1323_v19  ;;  %v540_v18 = vld [vmem:[%s7364_s9 + $0xd0] sm:$0xff] }
  0xe6   : > { %2314 = vmatprep.mubr.bf16.mxu0 %v9020_v44  ;;  %2367 = vmatprep.mubr.bf16.mxu1 %v9020_v44  ;;  %v576_v19 = vld [vmem:[%s7364_s9 + $0x1f0] sm:$0xff] }
  0xe7   : > { %2392 = vmatprep.subr.bf16.mxu0 %v6525_v20  ;;  %2445 = vmatprep.subr.bf16.mxu1 %v6527_v21  ;;  %v541_v20 = vld [vmem:[%s7364_s9 + $0xd8] sm:$0xff]  ;;  %v6540_v32 = vcombine.low %v540_v18, %v576_v19 }
  0xe8   : > { %v577_v21 = vld [vmem:[%s7364_s9 + $0x1f8] sm:$0xff] }
  0xe9   : > { %2393 = vmatpush1.bf16.msra.mxu0 %v6524_v25  ;;  %2446 = vmatpush1.bf16.msra.mxu1 %v6526_v26  ;;  %v7669_v25 = vld [vmem:[%s7364_s9 + $0x320] sm:$0x11]  ;;  %v6541_v26 = vcombine.high %v540_v18, %v576_v19  ;;  %v6542_v33 = vcombine.low %v541_v20, %v577_v21  ;;  %v6545_v18 = vcombine.high %v542_v3, %v578_v9 }
  0xea   : > { %6692 = vmatprep.subr.msk.bf16.mxu0 %vm1207_vm0, %v6601_v27  ;;  %6695 = vmatprep.subr.msk.bf16.mxu1 %vm1207_vm0, %v6603_v28  ;;  %v6543_v27 = vcombine.high %v541_v20, %v577_v21  ;;  %v7672_v28 = vld [vmem:[%s7364_s9 + $0x328] sm:$0x11]  ;;  %v6617_v34 = vcombine.high %v7669_v25, %v7669_v25  ;;  %v6616_v1 = vcombine.low %v7669_v25, %v7669_v25  ;;  %v7740_v20 = vld [vmem:[%s7364_s9 + $0x338] sm:$0x11] }
  0xeb   : > { %v6619_v39 = vcombine.high %v7672_v28, %v7672_v28  ;;  %v6618_v2 = vcombine.low %v7672_v28, %v7672_v28 }
  0xec   : > { %6682 = vmatmul.mubr.msk.bf16.gmra.mxu0 %vm1200_vm1, %v7408_v22  ;;  %6685 = vmatmul.mubr.msk.bf16.gmra.mxu1 %vm1200_vm1, %v7408_v22 }
  0xed   : > { %2410 = vmatprep.mubr.bf16.mxu0 %v9020_v44  ;;  %2463 = vmatprep.mubr.bf16.mxu1 %v9020_v44  ;;  %v1383_v15 = vsel %vm1207_vm0, %v6618_v2, 0 }
  0xf4   : > { %6687 = vmatmul.mubr.msk.bf16.vlgmr.msra.gmra.mxu0 %vm1200_vm1, %v7387_v7  ;;  %6690 = vmatmul.mubr.msk.bf16.vlgmr.msra.gmra.mxu1 %vm1200_vm1, %v7387_v7 }
  0xf5   : > { %2497 = vmatpush1.bf16.msra.mxu0 %v1329_v35  ;;  %2550 = vmatpush1.bf16.msra.mxu1 %v1335_v36 }
  0xf6   : > { %2420 = vmatprep.mubr.bf16.mxu0 %v9020_v44  ;;  %2473 = vmatprep.mubr.bf16.mxu1 %v9020_v44 }
  0xf7   : > { %2498 = vmatprep.subr.bf16.mxu0 %v6529_v37  ;;  %2551 = vmatprep.subr.bf16.mxu1 %v6531_v38 }
  0xf9   : > { %2499 = vmatpush1.bf16.msra.mxu0 %v6528_v41  ;;  %2552 = vmatpush1.bf16.msra.mxu1 %v6530_v42 }
  0xfa   : > { %6698 = vmatprep.subr.msk.bf16.mxu0 %vm1207_vm0, %v6605_v43  ;;  %6701 = vmatprep.subr.msk.bf16.mxu1 %vm1207_vm0, %v6607_v45 }
  0xfc   : > { %6688 = vmatmul.mubr.msk.bf16.gmra.mxu0 %vm1200_vm1, %v7408_v22  ;;  %6691 = vmatmul.mubr.msk.bf16.gmra.mxu1 %vm1200_vm1, %v7408_v22 }
  0xfd   : > { %2516 = vmatprep.mubr.bf16.mxu0 %v9020_v44  ;;  %2569 = vmatprep.mubr.bf16.mxu1 %v9020_v44 }
 0x104   : > { %6693 = vmatmul.mubr.msk.bf16.vlgmr.msra.gmra.mxu0 %vm1200_vm1, %v7387_v7  ;;  %6696 = vmatmul.mubr.msk.bf16.vlgmr.msra.gmra.mxu1 %vm1200_vm1, %v7387_v7 }
 0x105   : > { %2603 = vmatpush1.bf16.msra.mxu0 %v1341_v52  ;;  %2656 = vmatpush1.bf16.msra.mxu1 %v1347_v53 }
 0x106   : > { %2526 = vmatprep.mubr.bf16.mxu0 %v9020_v44  ;;  %2579 = vmatprep.mubr.bf16.mxu1 %v9020_v44 }
 0x107   : > { %2604 = vmatprep.subr.bf16.mxu0 %v6533_v54  ;;  %2657 = vmatprep.subr.bf16.mxu1 %v6535_v55 }
 0x109   : > { %2605 = vmatpush1.bf16.msra.mxu0 %v6532_v58  ;;  %2658 = vmatpush1.bf16.msra.mxu1 %v6534_v59 }
 0x10a   : > { %6704 = vmatprep.subr.msk.bf16.mxu0 %vm1207_vm0, %v6609_v60  ;;  %6707 = vmatprep.subr.msk.bf16.mxu1 %vm1207_vm0, %v6611_v61 }
 0x10c   : > { %6694 = vmatmul.mubr.msk.bf16.gmra.mxu0 %vm1200_vm1, %v7408_v22  ;;  %6697 = vmatmul.mubr.msk.bf16.gmra.mxu1 %vm1200_vm1, %v7408_v22 }
 0x10d   : > { %2622 = vmatprep.mubr.bf16.mxu0 %v9020_v44  ;;  %2675 = vmatprep.mubr.bf16.mxu1 %v9020_v44 }
 0x114   : > { %6699 = vmatmul.mubr.msk.bf16.vlgmr.msra.gmra.mxu0 %vm1200_vm1, %v7387_v7  ;;  %6702 = vmatmul.mubr.msk.bf16.vlgmr.msra.gmra.mxu1 %vm1200_vm1, %v7387_v7 }
 0x115   : > { %2709 = vmatpush1.bf16.msra.mxu0 %v1353_v4  ;;  %2762 = vmatpush1.bf16.msra.mxu1 %v1359_v5 }
 0x116   : > { %2632 = vmatprep.mubr.bf16.mxu0 %v9020_v44  ;;  %2685 = vmatprep.mubr.bf16.mxu1 %v9020_v44 }
 0x117   : > { %2710 = vmatprep.subr.bf16.mxu0 %v6537_v6  ;;  %2763 = vmatprep.subr.bf16.mxu1 %v6539_v8 }
 0x119   : > { %2711 = vmatpush1.bf16.msra.mxu0 %v6536_v11  ;;  %2764 = vmatpush1.bf16.msra.mxu1 %v6538_v12  ;;  %v579_v11 = vld [vmem:[%s7364_s9 + $0x208] sm:$0xff] }
 0x11a   : > { %6710 = vmatprep.subr.msk.bf16.mxu0 %vm1207_vm0, %v6613_v13  ;;  %6713 = vmatprep.subr.msk.bf16.mxu1 %vm1207_vm0, %v6615_v14  ;;  %v1377_v14 = vsel %vm1207_vm0, %v6616_v1, 0  ;;  %v6547_v19 = vcombine.high %v543_v10, %v579_v11  ;;  %v6546_v25 = vcombine.low %v543_v10, %v579_v11  ;;  %v580_v10 = vld [vmem:[%s7364_s9 + $0x210] sm:$0xff]  ;;  %v545_v11 = vld [vmem:[%s7364_s9 + $0xf8] sm:$0xff] }
 0x11c   : > { %6700 = vmatmul.mubr.msk.bf16.gmra.mxu0 %vm1200_vm1, %v7408_v22  ;;  %6703 = vmatmul.mubr.msk.bf16.gmra.mxu1 %vm1200_vm1, %v7408_v22 }
 0x11d   : > { %2728 = vmatprep.mubr.bf16.mxu0 %v9020_v44  ;;  %2781 = vmatprep.mubr.bf16.mxu1 %v9020_v44 }
 0x124   : > { %v1458_v29 = vpop.f32.mrf.mxu0  ;;  %v1511_v30 = vpop.f32.mrf.mxu1  ;;  %6705 = vmatmul.mubr.msk.bf16.vlgmr.msra.gmra.mxu0 %vm1200_vm1, %v7387_v7  ;;  %6708 = vmatmul.mubr.msk.bf16.vlgmr.msra.gmra.mxu1 %vm1200_vm1, %v7387_v7 }
 0x125   : > { %2815 = vmatpush1.bf16.msra.mxu0 %v1365_v23  ;;  %2868 = vmatpush1.bf16.msra.mxu1 %v1371_v24  ;;  %v1459_v35 = vadd.f32 %v1458_v29, %v7660_v17  ;;  %v1512_v36 = vadd.f32 %v1511_v30, %v7660_v17  ;;  %v6544_v24 = vcombine.low %v542_v3, %v578_v9 }
 0x126   : > { %v1460_v37 = vpop.f32.mrf.mxu0  ;;  %v1513_v38 = vpop.f32.mrf.mxu1  ;;  %2738 = vmatprep.mubr.bf16.mxu0 %v9020_v44  ;;  %2791 = vmatprep.mubr.bf16.mxu1 %v9020_v44 }
 0x127   : > { %2816 = vmatprep.subr.bf16.mxu0 %v6541_v26  ;;  %2869 = vmatprep.subr.bf16.mxu1 %v6543_v27  ;;  %v1461_v40 = vadd.f32 %v1460_v37, %v7660_v17  ;;  %v1514_v41 = vadd.f32 %v1513_v38, %v7660_v17  ;;  %v3332_v47 = vmax.f32 %v1459_v35, 0.0  ;;  %v3334_v48 = vmax.f32 %v1512_v36, 0.0 }
 0x128   : > { %v1462_v42 = vpop.f32.mrf.mxu0  ;;  %v1515_v43 = vpop.f32.mrf.mxu1  ;;  %v6621_v26 = vcombine.high %v7737_v16, %v7737_v16 }
 0x129   : > { %v1463_v45 = vadd.f32 %v1462_v42, %v7678_v31  ;;  %v1516_v46 = vadd.f32 %v1515_v43, %v7678_v31  ;;  %2817 = vmatpush1.bf16.msra.mxu0 %v6540_v32  ;;  %2870 = vmatpush1.bf16.msra.mxu1 %v6542_v33  ;;  %v3333_v55 = vmax.f32 %v1461_v40, 0.0  ;;  %v3335_v56 = vmax.f32 %v1514_v41, 0.0 }
 0x12a   : > { %v1464_v49 = vpop.f32.mrf.mxu0  ;;  %v1517_v50 = vpop.f32.mrf.mxu1  ;;  %6716 = vmatprep.subr.msk.bf16.mxu0 %vm1207_vm0, %v6617_v34  ;;  %6719 = vmatprep.subr.msk.bf16.mxu1 %vm1207_vm0, %v6619_v39 }
 0x12b   : > { %v3404_v51 = vmax.f32 %v1463_v45, 0.0  ;;  %v3406_v52 = vmax.f32 %v1516_v46, 0.0  ;;  %v1465_v53 = vadd.f32 %v1464_v49, %v7678_v31  ;;  %v1518_v54 = vadd.f32 %v1517_v50, %v7678_v31 }
 0x12c   : > { %v7696_v57 = vpop.f32.mrf.mxu0  ;;  %v7698_v58 = vpop.f32.mrf.mxu1  ;;  %6706 = vmatmul.mubr.msk.bf16.gmra.mxu0 %vm1200_vm1, %v7408_v22  ;;  %6709 = vmatmul.mubr.msk.bf16.gmra.mxu1 %vm1200_vm1, %v7408_v22 }
 0x12d   : > { %v7704_v59 = vpack.c.bf16 %v3404_v51, %v3332_v47  ;;  %v7706_v60 = vpack.c.bf16 %v3406_v52, %v3334_v48  ;;  %v3405_v61 = vmax.f32 %v1465_v53, 0.0  ;;  %v3407_v62 = vmax.f32 %v1518_v54, 0.0  ;;  %2834 = vmatprep.mubr.bf16.mxu0 %v9020_v44  ;;  %2887 = vmatprep.mubr.bf16.mxu1 %v9020_v44 }
 0x12e   : > { %v7710_v63 = vpop.f32.mrf.mxu0  ;;  %v7712_v0 = vpop.f32.mrf.mxu1 }
 0x12f   : > { %v7719_v4 = vpack.c.bf16 %v3405_v61, %v3333_v55  ;;  %v7721_v5 = vpack.c.bf16 %v3407_v62, %v3335_v56  ;;  %v6622_v61 = vcombine.low %v7740_v20, %v7740_v20  ;;  %v544_v62 = vld [vmem:[%s7364_s9 + $0xf0] sm:$0xff] }
 0x130   : > { %v7723_v6 = vpop.f32.mrf.mxu0  ;;  %v7725_v8 = vpop.f32.mrf.mxu1 }
 0x132   : > { %v7730_v12 = vpop.f32.mrf.mxu0  ;;  %v7732_v13 = vpop.f32.mrf.mxu1 }
 0x134   : > { %v1564_v21 = vpop.f32.mrf.mxu0  ;;  %v1617_v23 = vpop.f32.mrf.mxu1  ;;  %6711 = vmatmul.mubr.msk.bf16.vlgmr.msra.gmra.mxu0 %vm1200_vm1, %v7387_v7  ;;  %6714 = vmatmul.mubr.msk.bf16.vlgmr.msra.gmra.mxu1 %vm1200_vm1, %v7387_v7  ;;  %v6623_v7 = vcombine.high %v7740_v20, %v7740_v20  ;;  %v6549_v20 = vcombine.high %v544_v62, %v580_v10 }
 0x135   : > { %2921 = vmatpush1.bf16.msra.mxu0 %v1377_v14  ;;  %2974 = vmatpush1.bf16.msra.mxu1 %v1383_v15  ;;  %v1565_v27 = vadd.f32 %v1564_v21, %v7660_v17  ;;  %v1618_v28 = vadd.f32 %v1617_v23, %v7660_v17  ;;  %v581_v14 = vld [vmem:[%s7364_s9 + $0x218] sm:$0xff]  ;;  %v618_v23 = vld [vmem:[%s7364_s9 + $0x340] sm:$0x11] }
 0x136   : > { %v1566_v29 = vpop.f32.mrf.mxu0  ;;  %v1619_v30 = vpop.f32.mrf.mxu1  ;;  %2844 = vmatprep.mubr.bf16.mxu0 %v9020_v44  ;;  %2897 = vmatprep.mubr.bf16.mxu1 %v9020_v44  ;;  %v6551_v21 = vcombine.high %v545_v11, %v581_v14 }
 0x137   : > { %2922 = vmatprep.subr.bf16.mxu0 %v6545_v18  ;;  %2975 = vmatprep.subr.bf16.mxu1 %v6547_v19  ;;  %v1567_v32 = vadd.f32 %v1566_v29, %v7660_v17  ;;  %v1620_v33 = vadd.f32 %v1619_v30, %v7660_v17  ;;  %v3336_v38 = vmax.f32 %v1565_v27, 0.0  ;;  %v3338_v39 = vmax.f32 %v1618_v28, 0.0  ;;  %v7807_v27 = vld [vmem:[%s9012_s0] sm:$0xff]  }
 0x138   : > { %v1568_v34 = vpop.f32.mrf.mxu0  ;;  %v1621_v35 = vpop.f32.mrf.mxu1  ;;  %v1395_v19 = vsel %vm1207_vm0, %v6622_v61, 0  ;;  %v6548_v28 = vcombine.low %v544_v62, %v580_v10  ;;  %v6550_v29 = vcombine.low %v545_v11, %v581_v14  ;;  %v6624_v10 = vcombine.low %v618_v23, %v618_v23  ;;  %v546_v14 = vld [vmem:[%s7364_s9 + $0x100] sm:$0xff] }
 0x139   : > { %v1569_v36 = vadd.f32 %v1568_v34, %v7678_v31  ;;  %v1622_v37 = vadd.f32 %v1621_v35, %v7678_v31  ;;  %2923 = vmatpush1.bf16.msra.mxu0 %v6544_v24  ;;  %2976 = vmatpush1.bf16.msra.mxu1 %v6546_v25  ;;  %v3337_v47 = vmax.f32 %v1567_v32, 0.0  ;;  %v3339_v48 = vmax.f32 %v1620_v33, 0.0  ;;  %v619_v24 = vld [vmem:[%s7364_s9 + $0x348] sm:$0x11] }
 0x13a   : > { %v1570_v40 = vpop.f32.mrf.mxu0  ;;  %v1623_v41 = vpop.f32.mrf.mxu1  ;;  %6722 = vmatprep.subr.msk.bf16.mxu0 %vm1207_vm0, %v6621_v26  ;;  %6725 = vmatprep.subr.msk.bf16.mxu1 %vm1207_vm0, %v6623_v7  ;;  %v6625_v32 = vcombine.high %v618_v23, %v618_v23  ;;  %v6627_v33 = vcombine.high %v619_v24, %v619_v24  ;;  %v6626_v11 = vcombine.low %v619_v24, %v619_v24  ;;  %v620_v23 = vld [vmem:[%s7364_s9 + $0x350] sm:$0x11]  ;;  %v621_v24 = vld [vmem:[%s7364_s9 + $0x358] sm:$0x11] }
 0x13b   : > { %v3408_v42 = vmax.f32 %v1569_v36, 0.0  ;;  %v3410_v43 = vmax.f32 %v1622_v37, 0.0  ;;  %v1571_v45 = vadd.f32 %v1570_v40, %v7678_v31  ;;  %v1624_v46 = vadd.f32 %v1623_v41, %v7678_v31 }
 0x13c   : > { %v7762_v49 = vpop.f32.mrf.mxu0  ;;  %v7764_v50 = vpop.f32.mrf.mxu1  ;;  %6712 = vmatmul.mubr.msk.bf16.gmra.mxu0 %vm1200_vm1, %v7408_v22  ;;  %6715 = vmatmul.mubr.msk.bf16.gmra.mxu1 %vm1200_vm1, %v7408_v22  ;;  %v6620_v22 = vcombine.low %v7737_v16, %v7737_v16 }
 0x13d   : > { %v7770_v51 = vpack.c.bf16 %v3408_v42, %v3336_v38  ;;  %v7772_v52 = vpack.c.bf16 %v3410_v43, %v3338_v39  ;;  %v3409_v53 = vmax.f32 %v1571_v45, 0.0  ;;  %v3411_v54 = vmax.f32 %v1624_v46, 0.0  ;;  %2940 = vmatprep.mubr.bf16.mxu0 %v9020_v44  ;;  %2993 = vmatprep.mubr.bf16.mxu1 %v9020_v44 }
 0x13e   : > { %v7776_v55 = vpop.f32.mrf.mxu0  ;;  %v7778_v56 = vpop.f32.mrf.mxu1  ;;  %v1389_v18 = vsel %vm1207_vm0, %v6620_v22, 0 }
 0x13f   : > { %9027 = vst [vmem:[#allocation6_spill] sm:$0xff] %v7770_v51  ;;  %9028 = vst [vmem:[#allocation7_spill] sm:$0xff] %v7772_v52  ;;  %v7785_v1 = vpack.c.bf16 %v3409_v53, %v3337_v47  ;;  %v7787_v2 = vpack.c.bf16 %v3411_v54, %v3339_v48  ;;  %v7836_v53 = vld [vmem:[%s9012_s0 + $0x8] sm:$0xff]  }
 0x140   : > { %v7789_v3 = vpop.f32.mrf.mxu0  ;;  %v7791_v9 = vpop.f32.mrf.mxu1 }
 0x141   : > { %9029 = vst [vmem:[#allocation8_spill] sm:$0xff] %v7785_v1  ;;  %9030 = vst [vmem:[#allocation9_spill] sm:$0xff] %v7787_v2 }
 0x142   : > { %v7796_v15 = vpop.f32.mrf.mxu0  ;;  %v7798_v16 = vpop.f32.mrf.mxu1 }
 0x144   : > { %v1670_v25 = vpop.f32.mrf.mxu0  ;;  %v1723_v26 = vpop.f32.mrf.mxu1  ;;  %6717 = vmatmul.mubr.msk.bf16.vlgmr.msra.gmra.mxu0 %vm1200_vm1, %v7807_v27  ;;  %6720 = vmatmul.mubr.msk.bf16.vlgmr.msra.gmra.mxu1 %vm1200_vm1, %v7807_v27 }
 0x145   : > { %3027 = vmatpush1.bf16.msra.mxu0 %v1389_v18  ;;  %3080 = vmatpush1.bf16.msra.mxu1 %v1395_v19  ;;  %v1671_v34 = vadd.f32 %v1670_v25, %v7660_v17  ;;  %v1724_v35 = vadd.f32 %v1723_v26, %v7660_v17  ;;  %v583_v25 = vld [vmem:[%s7364_s9 + $0x228] sm:$0xff] }
 0x146   : > { %v7813_v30 = vpop.f32.mrf.mxu0  ;;  %v7815_v7 = vpop.f32.mrf.mxu1  ;;  %2950 = vmatprep.mubr.bf16.mxu0 %v9020_v44  ;;  %3003 = vmatprep.mubr.bf16.mxu1 %v9020_v44 }
 0x147   : > { %3028 = vmatprep.subr.bf16.mxu0 %v6549_v20  ;;  %3081 = vmatprep.subr.bf16.mxu1 %v6551_v21  ;;  %v3340_v42 = vmax.f32 %v1671_v34, 0.0  ;;  %v3342_v43 = vmax.f32 %v1724_v35, 0.0  ;;  %v582_v20 = vld [vmem:[%s7364_s9 + $0x220] sm:$0xff]  ;;  %v547_v21 = vld [vmem:[%s7364_s9 + $0x108] sm:$0xff] }
 0x148   : > { %v1674_v36 = vpop.f32.mrf.mxu0  ;;  %v1727_v37 = vpop.f32.mrf.mxu1  ;;  %v6555_v34 = vcombine.high %v547_v21, %v583_v25 }
 0x149   : > { %v1675_v38 = vadd.f32 %v1674_v36, %v7678_v31  ;;  %v1728_v39 = vadd.f32 %v1727_v37, %v7678_v31  ;;  %3029 = vmatpush1.bf16.msra.mxu0 %v6548_v28  ;;  %3082 = vmatpush1.bf16.msra.mxu1 %v6550_v29  ;;  %v1401_v29 = vsel %vm1207_vm0, %v6624_v10, 0  ;;  %v6552_v37 = vcombine.low %v546_v14, %v582_v20 }
 0x14a   : > { %v7823_v40 = vpop.f32.mrf.mxu0  ;;  %v7825_v41 = vpop.f32.mrf.mxu1  ;;  %6728 = vmatprep.subr.msk.bf16.mxu0 %vm1207_vm0, %v6625_v32  ;;  %6731 = vmatprep.subr.msk.bf16.mxu1 %vm1207_vm0, %v6627_v33  ;;  %v1407_v32 = vsel %vm1207_vm0, %v6626_v11, 0  ;;  %v6553_v33 = vcombine.high %v546_v14, %v582_v20 }
 0x14b   : > { %v3412_v45 = vmax.f32 %v1675_v38, 0.0  ;;  %v3414_v46 = vmax.f32 %v1728_v39, 0.0  ;;  %v6554_v38 = vcombine.low %v547_v21, %v583_v25  ;;  %v7886_v11 = vpop.permute.xlu0 %642 }
 0x14c   : > { %v7829_v47 = vpop.f32.mrf.mxu0  ;;  %v7831_v48 = vpop.f32.mrf.mxu1  ;;  %6718 = vmatmul.mubr.msk.bf16.gmra.mxu0 %vm1200_vm1, %v7836_v53  ;;  %6721 = vmatmul.mubr.msk.bf16.gmra.mxu1 %vm1200_vm1, %v7836_v53  ;;  %v1471_v2 = vadd.f32 %v7710_v63, %v7886_v11  ;;  %v1524_v1 = vadd.f32 %v7712_v0, %v7886_v11 }
 0x14d   : > { %v7842_v54 = vpack.c.bf16 %v3412_v45, %v3340_v42  ;;  %v7844_v22 = vpack.c.bf16 %v3414_v46, %v3342_v43  ;;  %3046 = vmatprep.mubr.bf16.mxu0 %v9020_v44  ;;  %3099 = vmatprep.mubr.bf16.mxu1 %v9020_v44  ;;  %v6629_v43 = vcombine.high %v620_v23, %v620_v23 }
 0x14e   : > { %v7848_v61 = vpop.f32.mrf.mxu0  ;;  %v7850_v62 = vpop.f32.mrf.mxu1  ;;  %v6631_v45 = vcombine.high %v621_v24, %v621_v24 }
 0x14f   : > { %9031 = vst [vmem:[#allocation10_spill] sm:$0xff] %v7842_v54  ;;  %9032 = vst [vmem:[#allocation11_spill] sm:$0xff] %v7844_v22  ;;  %v585_v22 = vld [vmem:[%s7364_s9 + $0x238] sm:$0xff] }
 0x150   : > { %v7853_v18 = vpop.f32.mrf.mxu0  ;;  %v7855_v19 = vpop.f32.mrf.mxu1 }
 0x152   : > { %v7860_v26 = vpop.f32.mrf.mxu0  ;;  %v7862_v28 = vpop.f32.mrf.mxu1 }
 0x154   : > { %v7868_v35 = vpop.f32.mrf.mxu0  ;;  %v7870_v36 = vpop.f32.mrf.mxu1  ;;  %6723 = vmatmul.mubr.msk.bf16.vlgmr.msra.gmra.mxu0 %vm1200_vm1, %v7807_v27  ;;  %6726 = vmatmul.mubr.msk.bf16.vlgmr.msra.gmra.mxu1 %vm1200_vm1, %v7807_v27 }
 0x155   : > { %3133 = vmatpush1.bf16.msra.mxu0 %v1401_v29  ;;  %3186 = vmatpush1.bf16.msra.mxu1 %v1407_v32  ;;  %v6628_v29 = vcombine.low %v620_v23, %v620_v23  ;;  %v6630_v32 = vcombine.low %v621_v24, %v621_v24 }
 0x156   : > { %v7876_v39 = vpop.f32.mrf.mxu0  ;;  %v7878_v42 = vpop.f32.mrf.mxu1  ;;  %3056 = vmatprep.mubr.bf16.mxu0 %v9020_v44  ;;  %3109 = vmatprep.mubr.bf16.mxu1 %v9020_v44 }
 0x157   : > { %3134 = vmatprep.subr.bf16.mxu0 %v6553_v33  ;;  %3187 = vmatprep.subr.bf16.mxu1 %v6555_v34  ;;  %v1413_v24 = vsel %vm1207_vm0, %v6628_v29, 0  ;;  %v3477_v29 = vmax.f32 %v1471_v2, 0.0 }
 0x158   : > { %v7882_v46 = vpop.f32.mrf.mxu0  ;;  %v7884_v10 = vpop.f32.mrf.mxu1 }
 0x159   : > { %3135 = vmatpush1.bf16.msra.mxu0 %v6552_v37  ;;  %3188 = vmatpush1.bf16.msra.mxu1 %v6554_v38  ;;  %v548_v37 = vld [vmem:[%s7364_s9 + $0x110] sm:$0xff]  ;;  %v7909_v38 = vpop.permute.xlu0 %647 }
 0x15a   : > { %v7888_v14 = vpop.f32.mrf.mxu0  ;;  %v7890_v20 = vpop.f32.mrf.mxu1  ;;  %6734 = vmatprep.subr.msk.bf16.mxu0 %vm1207_vm0, %v6629_v43  ;;  %6737 = vmatprep.subr.msk.bf16.mxu1 %vm1207_vm0, %v6631_v45  ;;  %v584_v43 = vld [vmem:[%s7364_s9 + $0x230] sm:$0xff]  ;;  %v549_v45 = vld [vmem:[%s7364_s9 + $0x118] sm:$0xff]  ;;  %v1475_v54 = vadd.f32 %v7730_v12, %v7909_v38  ;;  %v1528_v52 = vadd.f32 %v7732_v13, %v7909_v38 }
 0x15b   : > { %v6559_v13 = vcombine.high %v549_v45, %v585_v22  ;;  %v6556_v63 = vcombine.low %v548_v37, %v584_v43  ;;  %v6558_v0 = vcombine.low %v549_v45, %v585_v22  ;;  %v1473_v22 = vadd.f32 %v7723_v6, %v7909_v38 }
 0x15c   : > { %v7894_v21 = vpop.f32.mrf.mxu0  ;;  %v7896_v25 = vpop.f32.mrf.mxu1  ;;  %6724 = vmatmul.mubr.msk.bf16.gmra.mxu0 %vm1200_vm1, %v7836_v53  ;;  %6727 = vmatmul.mubr.msk.bf16.gmra.mxu1 %vm1200_vm1, %v7836_v53 }
 0x15d   : > { %9033 = vst [vmem:[#allocation12_spill] sm:$0xff] %v7894_v21  ;;  %9034 = vst [vmem:[#allocation13_spill] sm:$0xff] %v7896_v25  ;;  %3152 = vmatprep.mubr.bf16.mxu0 %v9020_v44  ;;  %3205 = vmatprep.mubr.bf16.mxu1 %v9020_v44  ;;  %v1419_v44 = vsel %vm1207_vm0, %v6630_v32, 0  ;;  %v3549_v25 = vmax.f32 %v1475_v54, 0.0  ;;  %v3551_v21 = vmax.f32 %v1528_v52, 0.0  ;;  %v3479_v32 = vmax.f32 %v1524_v1, 0.0 }
 0x15e   : > { %v7904_v33 = vpop.f32.mrf.mxu0  ;;  %v7906_v34 = vpop.f32.mrf.mxu1  ;;  %v9042_v52 = vmov 0   ;;  %v3548_v45 = vmax.f32 %v1473_v22, 0.0  ;;  %v1630_v22 = vadd.f32 %v7778_v56, %v7886_v11 }
 0x15f   : > { %9035 = vst [vmem:[#allocation14_spill] sm:$0xff] %v7904_v33  ;;  %9036 = vst [vmem:[#allocation15_spill] sm:$0xff] %v7906_v34  ;;  %v6557_v33 = vcombine.high %v548_v37, %v584_v43  ;;  %v1469_v37 = vadd.f32 %v7696_v57, %v7886_v11  ;;  %v1579_v57 = vadd.f32 %v7789_v3, %v7909_v38 }
 0x160   : > { %v7918_v51 = vpop.f32.mrf.mxu0  ;;  %v7920_v23 = vpop.f32.mrf.mxu1 }
 0x161   : > { %9037 = vst [vmem:[#allocation16_spill] sm:$0xff] %v7918_v51  ;;  %9038 = vst [vmem:[#allocation17_spill] sm:$0xff] %v7920_v23 }
 0x162   : > { %v7928_v34 = vpop.f32.mrf.mxu0  ;;  %v7930_v12 = vpop.f32.mrf.mxu1 }
 0x163   : > { %9039 = vst [vmem:[#allocation18_spill] sm:$0xff] %v7930_v12 }
 0x164   : > { %v7932_v51 = vpop.f32.mrf.mxu0  ;;  %v7934_v23 = vpop.f32.mrf.mxu1  ;;  %6729 = vmatmul.mubr.msk.bf16.vlgmr.msra.gmra.mxu0 %vm1200_vm1, %v7807_v27  ;;  %6732 = vmatmul.mubr.msk.bf16.vlgmr.msra.gmra.mxu1 %vm1200_vm1, %v7807_v27 }
 0x165   : > { %9040 = vst [vmem:[#allocation19_spill] sm:$0xff] %v7932_v51  ;;  %9041 = vst [vmem:[#allocation20_spill] sm:$0xff] %v7934_v23  ;;  %3239 = vmatpush1.bf16.msra.mxu0 %v1413_v24  ;;  %3292 = vmatpush1.bf16.msra.mxu1 %v1419_v44  ;;  %v3693_v24 = vpack.c.bf16 %v3549_v25, %v3477_v29  ;;  %v3695_v44 = vpack.c.bf16 %v3551_v21, %v3479_v32 }
 0x166   : > { %v7940_v12 = vpop.f32.mrf.mxu0  ;;  %v7942_v54 = vpop.f32.mrf.mxu1  ;;  %3240 = vmatprep.subr.bf16.mxu0 %v6557_v33  ;;  %3293 = vmatprep.subr.bf16.mxu1 %v6559_v13  ;;  %v1526_v33 = vadd.f32 %v7725_v8, %v7909_v38  ;;  %v1522_v25 = vadd.f32 %v7698_v58, %v7886_v11  ;;  %v1575_v58 = vadd.f32 %v7762_v49, %v7886_v11 }
 0x167   : > { %3162 = vmatprep.mubr.bf16.mxu0 %v9042_v52  ;;  %3215 = vmatprep.mubr.bf16.mxu1 %v9042_v52  ;;  %v1634_v29 = vadd.f32 %v7798_v16, %v7909_v38  ;;  %v1677_v49 = vadd.f32 %v7823_v40, %v7678_v31  ;;  %v1730_v16 = vadd.f32 %v7825_v41, %v7678_v31 }
 0x168   : > { %v7946_v23 = vpop.f32.mrf.mxu0  ;;  %v7948_v51 = vpop.f32.mrf.mxu1  ;;  %v3550_v13 = vmax.f32 %v1526_v33, 0.0  ;;  %v3478_v3 = vmax.f32 %v1522_v25, 0.0  ;;  %v3552_v33 = vmax.f32 %v1579_v57, 0.0  ;;  %v1726_v40 = vadd.f32 %v7815_v7, %v7660_v17 }
 0x169   : > { %3241 = vmatpush1.bf16.msra.mxu0 %v6556_v63  ;;  %3294 = vmatpush1.bf16.msra.mxu1 %v6558_v0  ;;  %v1581_v63 = vadd.f32 %v7796_v15, %v7909_v38  ;;  %v3476_v0 = vmax.f32 %v1469_v37, 0.0  ;;  %v1632_v15 = vadd.f32 %v7791_v9, %v7909_v38  ;;  %v1673_v9 = vadd.f32 %v7813_v30, %v7660_v17 }
 0x16a   : > { %3787 = vmatprep.subr.bf16.mxu0 %v3693_v24  ;;  %3830 = vmatprep.subr.bf16.mxu1 %v3695_v44  ;;  %v7950_v1 = vpop.f32.mrf.mxu0  ;;  %v7952_v2 = vpop.f32.mrf.mxu1  ;;  %v1577_v44 = vadd.f32 %v7776_v55, %v7886_v11  ;;  %v1628_v55 = vadd.f32 %v7764_v50, %v7886_v11  ;;  %v3413_v30 = vmax.f32 %v1677_v49, 0.0  ;;  %v1685_v7 = vadd.f32 %v7853_v18, %v7909_v38 }
 0x16b   : > { %v3692_v25 = vpack.c.bf16 %v3548_v45, %v3476_v0  ;;  %v3553_v56 = vmax.f32 %v1581_v63, 0.0  ;;  %v3483_v45 = vmax.f32 %v1630_v22, 0.0  ;;  %v3415_v0 = vmax.f32 %v1730_v16, 0.0 }
 0x16c   : > { %v7960_v43 = vpop.f32.mrf.mxu0  ;;  %v7962_v21 = vpop.f32.mrf.mxu1  ;;  %6730 = vmatmul.mubr.msk.bf16.gmra.mxu0 %vm1200_vm1, %v7836_v53  ;;  %6733 = vmatmul.mubr.msk.bf16.gmra.mxu1 %vm1200_vm1, %v7836_v53  ;;  %v3481_v50 = vmax.f32 %v1577_v44, 0.0  ;;  %v3341_v18 = vmax.f32 %v1673_v9, 0.0  ;;  %v3556_v49 = vmax.f32 %v1685_v7, 0.0  ;;  %v1783_v9 = vadd.f32 %v7888_v14, %v7678_v31 }
 0x16d   : > { %9043 = vst [vmem:[#allocation21_spill] sm:$0xff] %v7962_v21  ;;  %3258 = vmatprep.mubr.bf16.mxu0 %v9042_v52  ;;  %3311 = vmatprep.mubr.bf16.mxu1 %v9042_v52  ;;  %v3555_v21 = vmax.f32 %v1634_v29, 0.0  ;;  %v1830_v14 = vadd.f32 %v7870_v36, %v7660_v17 }
 0x16e   : > { %v7974_v6 = vpop.f32.mrf.mxu0  ;;  %v7976_v8 = vpop.f32.mrf.mxu1 }
 0x16f   : > { %9044 = vst [vmem:[#allocation22_spill] sm:$0xff] %v7974_v6  ;;  %9045 = vst [vmem:[#allocation23_spill] sm:$0xff] %v7976_v8  ;;  %v3694_v6 = vpack.c.bf16 %v3550_v13, %v3478_v3  ;;  %v3554_v13 = vmax.f32 %v1632_v15, 0.0  ;;  %v1738_v3 = vadd.f32 %v7855_v19, %v7909_v38  ;;  %v3699_v15 = vpack.c.bf16 %v3555_v21, %v3483_v45 }
 0x170   : > { %v7984_v32 = vpop.f32.mrf.mxu0  ;;  %v7986_v24 = vpop.f32.mrf.mxu1  ;;  %v1734_v19 = vadd.f32 %v7831_v48, %v7886_v11 }
 0x171   : > { %9046 = vst [vmem:[#allocation24_spill] sm:$0xff] %v7986_v24  ;;  %v3480_v24 = vmax.f32 %v1575_v58, 0.0 }
 0x172   : > { %v7998_v37 = vpop.f32.mrf.mxu0  ;;  %v8000_v8 = vpop.f32.mrf.mxu1 }
 0x173   : > { %v8016_v63 = vpack.c.bf16 %v3552_v33, %v3480_v24  ;;  %v3697_v24 = vpack.c.bf16 %v3553_v56, %v3481_v50  ;;  %v1834_v56 = vadd.f32 %v7884_v10, %v7678_v31  ;;  %v1777_v10 = vadd.f32 %v7868_v35, %v7660_v17 }
 0x174   : > { %v8008_v57 = vpop.f32.mrf.mxu0  ;;  %v8010_v41 = vpop.f32.mrf.mxu1  ;;  %6735 = vmatmul.mubr.msk.bf16.vlgmr.msra.gmra.mxu0 %vm1200_vm1, %v7807_v27  ;;  %6738 = vmatmul.mubr.msk.bf16.vlgmr.msra.gmra.mxu1 %vm1200_vm1, %v7807_v27  ;;  %v3482_v27 = vmax.f32 %v1628_v55, 0.0 }
 0x175   : > { %3788 = vmatpush1.bf16.msra.mxu0 %v3692_v25  ;;  %3831 = vmatpush1.bf16.msra.mxu1 %v3694_v6  ;;  %v1687_v6 = vadd.f32 %v7860_v26, %v7909_v38  ;;  %v1683_v26 = vadd.f32 %v7848_v61, %v7886_v11  ;;  %v8052_v25 = vpack.c.bf16 %v3413_v30, %v3341_v18  ;;  %v3558_v61 = vmax.f32 %v1738_v3, 0.0 }
 0x176   : > { %3789 = vmatprep.subr.bf16.mxu0 %v7719_v4  ;;  %3832 = vmatprep.subr.bf16.mxu1 %v7721_v5  ;;  %v8022_v58 = vpop.f32.mrf.mxu0  ;;  %v8024_v29 = vpop.f32.mrf.mxu1  ;;  %v3343_v4 = vmax.f32 %v1726_v40, 0.0  ;;  %v1681_v5 = vadd.f32 %v7829_v47, %v7886_v11  ;;  %v8038_v33 = vpack.c.bf16 %v3554_v13, %v3482_v27  ;;  %v1736_v47 = vadd.f32 %v7850_v62, %v7886_v11 }
 0x177   : > { %3268 = vmatprep.mubr.bf16.mxu0 %v9042_v52  ;;  %3321 = vmatprep.mubr.bf16.mxu1 %v9042_v52  ;;  %v3557_v55 = vmax.f32 %v1687_v6, 0.0  ;;  %v1836_v40 = vadd.f32 %v7890_v20, %v7678_v31  ;;  %v1779_v30 = vadd.f32 %v7876_v39, %v7660_v17  ;;  %v3418_v6 = vmax.f32 %v1834_v56, 0.0 }
 0x178   : > { %v8034_v44 = vpop.f32.mrf.mxu0  ;;  %v8036_v22 = vpop.f32.mrf.mxu1  ;;  %v8054_v48 = vpack.c.bf16 %v3415_v0, %v3343_v4  ;;  %v3484_v62 = vmax.f32 %v1681_v5, 0.0  ;;  %v3487_v20 = vmax.f32 %v1736_v47, 0.0  ;;  %v9047_v4 = vld [vmem:[#allocation16_spill] sm:$0xff] }
 0x179   : > { %3790 = vmatpush1.bf16.msra.mxu0 %v7704_v59  ;;  %3833 = vmatpush1.bf16.msra.mxu1 %v7706_v60  ;;  %v1740_v59 = vadd.f32 %v7862_v28, %v7909_v38  ;;  %v1781_v60 = vadd.f32 %v7882_v46, %v7678_v31  ;;  %v3486_v28 = vmax.f32 %v1734_v19, 0.0  ;;  %v3485_v46 = vmax.f32 %v1683_v26, 0.0  ;;  %v9048_v47 = vld [vmem:[#allocation12_spill] sm:$0xff] }
 0x17a   : > { %3873 = vmatprep.subr.bf16.mxu0 %v3697_v24  ;;  %3916 = vmatprep.subr.bf16.mxu1 %v3699_v15  ;;  %v8048_v21 = vpop.f32.mrf.mxu0  ;;  %v8050_v16 = vpop.f32.mrf.mxu1  ;;  %v8080_v13 = vpack.c.bf16 %v3556_v49, %v3484_v62  ;;  %v3417_v24 = vmax.f32 %v1783_v9, 0.0  ;;  %v3419_v18 = vmax.f32 %v1836_v40, 0.0  ;;  %v1791_v5 = vadd.f32 %v9047_v4, %v7909_v38  ;;  %v9050_v62 = vld [vmem:[#allocation13_spill] sm:$0xff]  ;;  %v9052_v4 = vld [vmem:[#allocation15_spill] sm:$0xff] }
 0x17b   : > { %v8090_v35 = vpack.c.bf16 %v3558_v61, %v3486_v28  ;;  %v3559_v36 = vmax.f32 %v1740_v59, 0.0  ;;  %v3416_v27 = vmax.f32 %v1781_v60, 0.0  ;;  %v8092_v3 = vpack.c.bf16 %v3557_v55, %v3485_v46  ;;  %v9049_v61 = vld [vmem:[#allocation17_spill] sm:$0xff] }
 0x17c   : > { %v8066_v50 = vpop.f32.mrf.mxu0  ;;  %v8068_v45 = vpop.f32.mrf.mxu1  ;;  %6736 = vmatmul.mubr.msk.bf16.gmra.mxu0 %vm1200_vm1, %v7836_v53  ;;  %6739 = vmatmul.mubr.msk.bf16.gmra.mxu1 %vm1200_vm1, %v7836_v53  ;;  %v1832_v53 = vadd.f32 %v7878_v42, %v7660_v17  ;;  %v8103_v42 = vld [vmem:[%s9014_s2] sm:$0xff]   ;;  %v3344_v19 = vmax.f32 %v1777_v10, 0.0  ;;  %v3346_v26 = vmax.f32 %v1830_v14, 0.0  ;;  %v1787_v49 = vadd.f32 %v9048_v47, %v7886_v11  ;;  %v9051_v10 = vld [vmem:[#allocation14_spill] sm:$0xff] }
 0x17d   : > { %3807 = vmatprep.mubr.bf16.mxu0 %v9042_v52  ;;  %3850 = vmatprep.mubr.bf16.mxu1 %v9042_v52  ;;  %v1844_v55 = vadd.f32 %v9049_v61, %v7909_v38  ;;  %v3345_v59 = vmax.f32 %v1779_v30, 0.0  ;;  %v1840_v56 = vadd.f32 %v9050_v62, %v7886_v11  ;;  %v1793_v9 = vadd.f32 %v7928_v34, %v7909_v38 }
 0x17e   : > { %v8086_v0 = vpop.f32.mrf.mxu0  ;;  %v8088_v7 = vpop.f32.mrf.mxu1  ;;  %v3347_v60 = vmax.f32 %v1832_v53, 0.0  ;;  %v8117_v46 = vpack.c.bf16 %v3416_v27, %v3344_v19  ;;  %v1789_v14 = vadd.f32 %v9051_v10, %v7886_v11  ;;  %v8123_v47 = vadd.f32 %v9052_v4, %v7886_v11 }
 0x17f   : > { %v3703_v30 = vpack.c.bf16 %v3559_v36, %v3487_v20  ;;  %v8125_v53 = vpack.c.bf16 %v3418_v6, %v3346_v26  ;;  %v3560_v61 = vmax.f32 %v1791_v5, 0.0  ;;  %v8135_v27 = vpack.c.bf16 %v3417_v24, %v3345_v59  ;;  %v9054_v20 = vld [vmem:[#allocation18_spill] sm:$0xff] }
 0x180   : > { %v8096_v39 = vpop.f32.mrf.mxu0  ;;  %v8098_v15 = vpop.f32.mrf.mxu1  ;;  %v8137_v19 = vpack.c.bf16 %v3419_v18, %v3347_v60  ;;  %v3488_v10 = vmax.f32 %v1787_v49, 0.0  ;;  %v3562_v4 = vmax.f32 %v1844_v55, 0.0  ;;  %v1846_v36 = vadd.f32 %v9054_v20, %v7909_v38  ;;  %v9055_v49 = vld [vmem:[#allocation8_spill] sm:$0xff]  ;;  %v9056_v55 = vld [vmem:[#allocation9_spill] sm:$0xff] }
 0x181   : > { %v1887_v6 = vadd.f32 %v7946_v23, %v7678_v31  ;;  %v3490_v5 = vmax.f32 %v1840_v56, 0.0  ;;  %v3561_v26 = vmax.f32 %v1793_v9, 0.0  ;;  %v1940_v24 = vadd.f32 %v7948_v51, %v7678_v31  ;;  %v9060_v9 = vld [vmem:[#allocation20_spill] sm:$0xff] }
 0x182   : > { %v8113_v40 = vpop.f32.mrf.mxu0  ;;  %v8115_v28 = vpop.f32.mrf.mxu1  ;;  %v1889_v18 = vadd.f32 %v7950_v1, %v7678_v31  ;;  %v3489_v23 = vmax.f32 %v1789_v14, 0.0  ;;  %v1942_v51 = vadd.f32 %v7952_v2, %v7678_v31  ;;  %v8162_v1 = vpack.c.bf16 %v3560_v61, %v3488_v10 }
 0x183   : > { %v1936_v20 = vadd.f32 %v9060_v9, %v7660_v17  ;;  %v1885_v14 = vadd.f32 %v7940_v12, %v7660_v17  ;;  %v8174_v2 = vpack.c.bf16 %v3562_v4, %v3490_v5  ;;  %v1938_v61 = vadd.f32 %v7942_v54, %v7660_v17  ;;  %v9064_v9 = vld [vmem:[#allocation7_spill] sm:$0xff] }
 0x184   : > { %v8127_v62 = vpop.f32.mrf.mxu0  ;;  %v8129_v34 = vpop.f32.mrf.mxu1  ;;  %6741 = vmatmul.mubr.msk.bf16.vlgmr.msra.gmra.mxu0 %vm3771_vm2, %v8103_v42  ;;  %6742 = vmatmul.mubr.msk.bf16.vlgmr.msra.gmra.mxu1 %vm3771_vm2, %v8103_v42  ;;  %v3420_v10 = vmax.f32 %v1887_v6, 0.0  ;;  %v3421_v12 = vmax.f32 %v1889_v18, 0.0  ;;  %v3423_v54 = vmax.f32 %v1942_v51, 0.0  ;;  %v9065_v6 = vld [vmem:[#allocation21_spill] sm:$0xff] }
 0x185   : > { %9053 = vst [vmem:[#allocation16_spill] sm:$0xff] %v8129_v34  ;;  %3874 = vmatpush1.bf16.msra.mxu0 %v8016_v63  ;;  %3917 = vmatpush1.bf16.msra.mxu1 %v8038_v33  ;;  %v3491_v63 = vmax.f32 %v8123_v47, 0.0  ;;  %v9059_v33 = vld [vmem:[#allocation19_spill] sm:$0xff]  ;;  %v1897_v47 = vadd.f32 %v7984_v32, %v7909_v38  ;;  %v1893_v32 = vadd.f32 %v7960_v43, %v7886_v11  ;;  %v3350_v18 = vmax.f32 %v1936_v20, 0.0 }
 0x186   : > { %3875 = vmatprep.subr.bf16.mxu0 %v9055_v49  ;;  %3918 = vmatprep.subr.bf16.mxu1 %v9056_v55  ;;  %v8151_v59 = vpop.f32.mrf.mxu0  ;;  %v8153_v60 = vpop.f32.mrf.mxu1  ;;  %v1883_v56 = vadd.f32 %v9059_v33, %v7660_v17  ;;  %v3563_v33 = vmax.f32 %v1846_v36, 0.0  ;;  %v3705_v36 = vpack.c.bf16 %v3561_v26, %v3489_v23  ;;  %v1899_v43 = vadd.f32 %v7998_v37, %v7909_v38 }
 0x187   : > { %9057 = vst [vmem:[#allocation12_spill] sm:$0xff] %v8151_v59  ;;  %9058 = vst [vmem:[#allocation17_spill] sm:$0xff] %v8153_v60  ;;  %3893 = vmatprep.mubr.bf16.mxu0 %v9042_v52  ;;  %3936 = vmatprep.mubr.bf16.mxu1 %v9042_v52  ;;  %v9063_v60 = vld [vmem:[#allocation6_spill] sm:$0xff]  ;;  %v3422_v59 = vmax.f32 %v1940_v24, 0.0  ;;  %v3564_v34 = vmax.f32 %v1897_v47, 0.0  ;;  %v3351_v26 = vmax.f32 %v1938_v61, 0.0 }
 0x188   : > { %v8170_v49 = vpop.f32.mrf.mxu0  ;;  %v8172_v55 = vpop.f32.mrf.mxu1  ;;  %v3348_v5 = vmax.f32 %v1883_v56, 0.0  ;;  %v9067_v56 = vld [vmem:[#allocation22_spill] sm:$0xff]  ;;  %v3707_v37 = vpack.c.bf16 %v3563_v33, %v3491_v63  ;;  %v9068_v47 = vld [vmem:[#allocation23_spill] sm:$0xff]  ;;  %v1989_v63 = vadd.f32 %v8008_v57, %v7660_v17 }
 0x189   : > { %9061 = vst [vmem:[#allocation13_spill] sm:$0xff] %v8170_v49  ;;  %9062 = vst [vmem:[#allocation14_spill] sm:$0xff] %v8172_v55  ;;  %3876 = vmatpush1.bf16.msra.mxu0 %v9063_v60  ;;  %3919 = vmatpush1.bf16.msra.mxu1 %v9064_v9  ;;  %v1946_v60 = vadd.f32 %v9065_v6, %v7886_v11  ;;  %v9066_v9 = vld [vmem:[#allocation24_spill] sm:$0xff]  ;;  %v3349_v49 = vmax.f32 %v1885_v14, 0.0  ;;  %v1895_v51 = vadd.f32 %v9067_v56, %v7886_v11  ;;  %v9070_v57 = vld [vmem:[#allocation11_spill] sm:$0xff] }
 0x18a   : > { %3959 = vmatprep.subr.bf16.mxu0 %v8092_v3  ;;  %4000 = vmatprep.subr.bf16.mxu1 %v3703_v30  ;;  %v8183_v55 = vpop.f32.mrf.mxu0  ;;  %v8185_v4 = vpop.f32.mrf.mxu1  ;;  %v1950_v24 = vadd.f32 %v9066_v9, %v7909_v38  ;;  %v8201_v23 = vpack.c.bf16 %v3420_v10, %v3348_v5  ;;  %v8207_v20 = vpack.c.bf16 %v3422_v59, %v3350_v18  ;;  %v3492_v14 = vmax.f32 %v1893_v32, 0.0 }
 0x18b   : > { %v1948_v6 = vadd.f32 %v9068_v47, %v7886_v11  ;;  %v8217_v5 = vpack.c.bf16 %v3421_v12, %v3349_v49  ;;  %v8223_v59 = vpack.c.bf16 %v3423_v54, %v3351_v26  ;;  %v1993_v49 = vadd.f32 %v8034_v44, %v7678_v31 }
 0x18c   : > { %v8193_v3 = vpop.f32.mrf.mxu0  ;;  %v8195_v30 = vpop.f32.mrf.mxu1  ;;  %6743 = vmatmul.mubr.msk.bf16.vlgmr.msra.gmra.mxu0 %vm3771_vm2, %v8103_v42  ;;  %6744 = vmatmul.mubr.msk.bf16.vlgmr.msra.gmra.mxu1 %vm3771_vm2, %v8103_v42  ;;  %v3566_v9 = vmax.f32 %v1950_v24, 0.0  ;;  %v2042_v32 = vadd.f32 %v8010_v41, %v7660_v17  ;;  %v2046_v54 = vadd.f32 %v8036_v22, %v7678_v31  ;;  %v2048_v44 = vadd.f32 %v8050_v16, %v7678_v31 }
 0x18d   : > { %3960 = vmatpush1.bf16.msra.mxu0 %v8080_v13  ;;  %4001 = vmatpush1.bf16.msra.mxu1 %v8090_v35  ;;  %v3494_v13 = vmax.f32 %v1946_v60, 0.0  ;;  %v1952_v35 = vadd.f32 %v8000_v8, %v7909_v38  ;;  %v3493_v8 = vmax.f32 %v1895_v51, 0.0  ;;  %v9069_v60 = vld [vmem:[#allocation10_spill] sm:$0xff]  ;;  %v3495_v24 = vmax.f32 %v1948_v6, 0.0 }
 0x18e   : > { %3961 = vmatprep.subr.bf16.mxu0 %v8052_v25  ;;  %4002 = vmatprep.subr.bf16.mxu1 %v8054_v48  ;;  %v8213_v61 = vpop.f32.mrf.mxu0  ;;  %v8215_v10 = vpop.f32.mrf.mxu1  ;;  %v8225_v25 = vpack.c.bf16 %v3564_v34, %v3492_v14  ;;  %v3565_v48 = vmax.f32 %v1899_v43, 0.0  ;;  %v1995_v34 = vadd.f32 %v8048_v21, %v7678_v31  ;;  %v2003_v18 = vadd.f32 %v8096_v39, %v7909_v38 }
 0x18f   : > { %3979 = vmatprep.mubr.bf16.mxu0 %v9042_v52  ;;  %4020 = vmatprep.mubr.bf16.mxu1 %v9042_v52  ;;  %v2056_v41 = vadd.f32 %v8098_v15, %v7909_v38  ;;  %v8253_v21 = vpack.c.bf16 %v3566_v9, %v3494_v13  ;;  %v3567_v26 = vmax.f32 %v1952_v35, 0.0  ;;  %v1991_v56 = vadd.f32 %v8022_v58, %v7660_v17 }
 0x190   : > { %v8231_v33 = vpop.f32.mrf.mxu0  ;;  %v8233_v12 = vpop.f32.mrf.mxu1  ;;  %v2044_v16 = vadd.f32 %v8024_v29, %v7660_v17  ;;  %v3424_v51 = vmax.f32 %v1993_v49, 0.0  ;;  %v1999_v39 = vadd.f32 %v8066_v50, %v7886_v11  ;;  %v2052_v15 = vadd.f32 %v8068_v45, %v7886_v11 }
 0x191   : > { %3962 = vmatpush1.bf16.msra.mxu0 %v9069_v60  ;;  %4003 = vmatpush1.bf16.msra.mxu1 %v9070_v57  ;;  %v3709_v58 = vpack.c.bf16 %v3565_v48, %v3493_v8  ;;  %v3352_v14 = vmax.f32 %v1989_v63, 0.0  ;;  %v3354_v29 = vmax.f32 %v2042_v32, 0.0  ;;  %v3426_v47 = vmax.f32 %v2046_v54, 0.0 }
 0x192   : > { %4041 = vmatprep.subr.bf16.mxu0 %v3705_v36  ;;  %4082 = vmatprep.subr.bf16.mxu1 %v3707_v37  ;;  %v8249_v22 = vpop.f32.mrf.mxu0  ;;  %v8251_v43 = vpop.f32.mrf.mxu1  ;;  %v3425_v6 = vmax.f32 %v1995_v34, 0.0  ;;  %v3427_v50 = vmax.f32 %v2048_v44, 0.0  ;;  %v3568_v45 = vmax.f32 %v2003_v18, 0.0  ;;  %v3570_v13 = vmax.f32 %v2056_v41, 0.0 }
 0x193   : > { %v2005_v9 = vadd.f32 %v8113_v40, %v7909_v38  ;;  %v3353_v63 = vmax.f32 %v1991_v56, 0.0  ;;  %v3355_v49 = vmax.f32 %v2044_v16, 0.0  ;;  %v8285_v8 = vpack.c.bf16 %v3424_v51, %v3352_v14  ;;  %v9072_v56 = vld [vmem:[#allocation13_spill] sm:$0xff] }
 0x194   : > { %v8263_v36 = vpop.f32.mrf.mxu0  ;;  %v8265_v37 = vpop.f32.mrf.mxu1  ;;  %6745 = vmatmul.mubr.msk.bf16.vlgmr.msra.gmra.mxu0 %vm3771_vm2, %v8103_v42  ;;  %6746 = vmatmul.mubr.msk.bf16.vlgmr.msra.gmra.mxu1 %vm3771_vm2, %v8103_v42  ;;  %v3496_v40 = vmax.f32 %v1999_v39, 0.0  ;;  %v8293_v34 = vpack.c.bf16 %v3426_v47, %v3354_v29  ;;  %v2099_v16 = vadd.f32 %v9072_v56, %v7678_v31  ;;  %v9073_v39 = vld [vmem:[#allocation12_spill] sm:$0xff]  ;;  %v2101_v29 = vadd.f32 %v8183_v55, %v7678_v31 }
 0x195   : > { %4042 = vmatpush1.bf16.msra.mxu0 %v8162_v1  ;;  %4083 = vmatpush1.bf16.msra.mxu1 %v8174_v2  ;;  %v2058_v1 = vadd.f32 %v8115_v28, %v7909_v38  ;;  %v3711_v2 = vpack.c.bf16 %v3567_v26, %v3495_v24  ;;  %v2054_v28 = vadd.f32 %v8088_v7, %v7886_v11 }
 0x196   : > { %4043 = vmatprep.subr.bf16.mxu0 %v8135_v27  ;;  %4084 = vmatprep.subr.bf16.mxu1 %v8137_v19  ;;  %v8277_v35 = vpop.f32.mrf.mxu0  ;;  %v8279_v48 = vpop.f32.mrf.mxu1  ;;  %v3498_v27 = vmax.f32 %v2052_v15, 0.0  ;;  %v2001_v19 = vadd.f32 %v8086_v0, %v7886_v11  ;;  %v8299_v60 = vpack.c.bf16 %v3425_v6, %v3353_v63  ;;  %v8301_v57 = vpack.c.bf16 %v3568_v45, %v3496_v40 }
 0x197   : > { %4061 = vmatprep.mubr.bf16.mxu0 %v9042_v52  ;;  %4102 = vmatprep.mubr.bf16.mxu1 %v9042_v52  ;;  %v3569_v0 = vmax.f32 %v2005_v9, 0.0  ;;  %v8309_v41 = vpack.c.bf16 %v3427_v50, %v3355_v49  ;;  %v3571_v7 = vmax.f32 %v2058_v1, 0.0  ;;  %v2097_v15 = vadd.f32 %v9073_v39, %v7660_v17 }
 0x198   : > { %v8289_v32 = vpop.f32.mrf.mxu0  ;;  %v8291_v54 = vpop.f32.mrf.mxu1  ;;  %v8303_v24 = vpack.c.bf16 %v3570_v13, %v3498_v27  ;;  %v3497_v51 = vmax.f32 %v2001_v19, 0.0  ;;  %v2154_v50 = vadd.f32 %v8185_v4, %v7678_v31  ;;  %v2109_v45 = vadd.f32 %v8231_v33, %v7909_v38  ;;  %v9075_v13 = vld [vmem:[#allocation17_spill] sm:$0xff] }
 0x199   : > { %4044 = vmatpush1.bf16.msra.mxu0 %v8117_v46  ;;  %4085 = vmatpush1.bf16.msra.mxu1 %v8125_v53  ;;  %v2095_v46 = vadd.f32 %v8127_v62, %v7660_v17  ;;  %v9071_v53 = vld [vmem:[#allocation16_spill] sm:$0xff]  ;;  %v3499_v62 = vmax.f32 %v2054_v28, 0.0  ;;  %v2162_v55 = vadd.f32 %v8233_v12, %v7909_v38  ;;  %v2150_v9 = vadd.f32 %v9075_v13, %v7660_v17 }
 0x19a   : > { %4123 = vmatprep.subr.bf16.mxu0 %v3709_v58  ;;  %4164 = vmatprep.subr.bf16.mxu1 %v3711_v2  ;;  %v8305_v44 = vpop.f32.mrf.mxu0  ;;  %v8307_v18 = vpop.f32.mrf.mxu1  ;;  %v2148_v26 = vadd.f32 %v9071_v53, %v7660_v17  ;;  %v9074_v58 = vld [vmem:[#allocation14_spill] sm:$0xff]  ;;  %v2111_v63 = vadd.f32 %v8249_v22, %v7909_v38  ;;  %v3713_v49 = vpack.c.bf16 %v3569_v0, %v3497_v51  ;;  %v3428_v12 = vmax.f32 %v2099_v16, 0.0 }
 0x19b   : > { %v2152_v14 = vadd.f32 %v9074_v58, %v7678_v31  ;;  %v3715_v1 = vpack.c.bf16 %v3571_v7, %v3499_v62  ;;  %v3429_v22 = vmax.f32 %v2101_v29, 0.0  ;;  %v2164_v2 = vadd.f32 %v8251_v43, %v7909_v38 }
 0x19c   : > { %v8323_v47 = vpop.f32.mrf.mxu0  ;;  %v8325_v6 = vpop.f32.mrf.mxu1  ;;  %6747 = vmatmul.mubr.msk.bf16.vlgmr.msra.gmra.mxu0 %vm3771_vm2, %v8103_v42  ;;  %6748 = vmatmul.mubr.msk.bf16.vlgmr.msra.gmra.mxu1 %vm3771_vm2, %v8103_v42  ;;  %v3356_v19 = vmax.f32 %v2095_v46, 0.0  ;;  %v3572_v28 = vmax.f32 %v2109_v45, 0.0  ;;  %v3574_v0 = vmax.f32 %v2162_v55, 0.0  ;;  %v3357_v7 = vmax.f32 %v2097_v15, 0.0 }
 0x19d   : > { %4124 = vmatpush1.bf16.msra.mxu0 %v8225_v25  ;;  %4165 = vmatpush1.bf16.msra.mxu1 %v8253_v21  ;;  %v2105_v25 = vadd.f32 %v8193_v3, %v7886_v11  ;;  %v2158_v21 = vadd.f32 %v8195_v30, %v7886_v11  ;;  %v3431_v3 = vmax.f32 %v2154_v50, 0.0  ;;  %v3358_v30 = vmax.f32 %v2148_v26, 0.0 }
 0x19e   : > { %4125 = vmatprep.subr.bf16.mxu0 %v8217_v5  ;;  %4166 = vmatprep.subr.bf16.mxu1 %v8223_v59  ;;  %v8345_v4 = vpop.f32.mrf.mxu0  ;;  %v8347_v33 = vpop.f32.mrf.mxu1  ;;  %v3430_v5 = vmax.f32 %v2152_v14, 0.0  ;;  %v2107_v59 = vadd.f32 %v8213_v61, %v7886_v11  ;;  %v2160_v53 = vadd.f32 %v8215_v10, %v7886_v11  ;;  %v3573_v56 = vmax.f32 %v2111_v63, 0.0 }
 0x19f   : > { %4143 = vmatprep.mubr.bf16.mxu0 %v9042_v52  ;;  %4184 = vmatprep.mubr.bf16.mxu1 %v9042_v52  ;;  %v3359_v16 = vmax.f32 %v2150_v9, 0.0  ;;  %v8363_v51 = vpack.c.bf16 %v3428_v12, %v3356_v19  ;;  %v3500_v46 = vmax.f32 %v2105_v25, 0.0  ;;  %v3502_v39 = vmax.f32 %v2158_v21, 0.0 }
 0x1a0   : > { %v2214_v40 = vpop.f32.mrf.mxu0  ;;  %v2267_v27 = vpop.f32.mrf.mxu1  ;;  %v8365_v58 = vpack.c.bf16 %v3430_v5, %v3358_v30  ;;  %v3575_v14 = vmax.f32 %v2164_v2, 0.0  ;;  %v3645_v10 = vpack.c.bf16 %v3429_v22, %v3357_v7  ;;  %v3503_v50 = vmax.f32 %v2160_v53, 0.0 }
 0x1a1   : > { %4126 = vmatpush1.bf16.msra.mxu0 %v8201_v23  ;;  %4167 = vmatpush1.bf16.msra.mxu1 %v8207_v20  ;;  %v3501_v23 = vmax.f32 %v2107_v59, 0.0  ;;  %v3716_v15 = vpack.c.bf16 %v3572_v28, %v3500_v46  ;;  %v3718_v29 = vpack.c.bf16 %v3574_v0, %v3502_v39  ;;  %v3647_v62 = vpack.c.bf16 %v3431_v3, %v3359_v16 }
 0x1a2   : > { %4205 = vmatprep.subr.bf16.mxu0 %v3713_v49  ;;  %4246 = vmatprep.subr.bf16.mxu1 %v3715_v1  ;;  %v2216_v61 = vpop.f32.mrf.mxu0  ;;  %v2269_v43 = vpop.f32.mrf.mxu1  ;;  %v2201_v45 = vadd.f32 %v8263_v36, %v7660_v17  ;;  %v2254_v55 = vadd.f32 %v8265_v37, %v7660_v17  ;;  %v2207_v36 = vadd.f32 %v8305_v44, %v7678_v31 }
 0x1a3   : > { %v3717_v63 = vpack.c.bf16 %v3573_v56, %v3501_v23  ;;  %v2260_v37 = vadd.f32 %v8307_v18, %v7678_v31  ;;  %v3719_v12 = vpack.c.bf16 %v3575_v14, %v3503_v50  ;;  %v2256_v44 = vadd.f32 %v8279_v48, %v7660_v17 }
 0x1a4   : > { %v8367_v20 = vpop.f32.mrf.mxu0  ;;  %v8369_v26 = vpop.f32.mrf.mxu1  ;;  %6749 = vmatmul.mubr.msk.bf16.vlgmr.msra.gmra.mxu0 %vm3771_vm2, %v8103_v42  ;;  %6750 = vmatmul.mubr.msk.bf16.vlgmr.msra.gmra.mxu1 %vm3771_vm2, %v8103_v42  ;;  %v2215_v25 = vadd.f32 %v2214_v40, %v7909_v38  ;;  %v2213_v18 = vadd.f32 %v8345_v4, %v7886_v11  ;;  %v2266_v21 = vadd.f32 %v8347_v33, %v7886_v11  ;;  %v3433_v59 = vmax.f32 %v2207_v36, 0.0 }
 0x1a5   : > { %4206 = vmatpush1.bf16.msra.mxu0 %v8301_v57  ;;  %4247 = vmatpush1.bf16.msra.mxu1 %v8303_v24  ;;  %v2205_v57 = vadd.f32 %v8289_v32, %v7678_v31  ;;  %v2258_v24 = vadd.f32 %v8291_v54, %v7678_v31  ;;  %v2203_v54 = vadd.f32 %v8277_v35, %v7660_v17  ;;  %v3435_v2 = vmax.f32 %v2260_v37, 0.0 }
 0x1a6   : > { %4207 = vmatprep.subr.bf16.mxu0 %v8299_v60  ;;  %4248 = vmatprep.subr.bf16.mxu1 %v8309_v41  ;;  %v8383_v13 = vpop.f32.mrf.mxu0  ;;  %v8385_v9 = vpop.f32.mrf.mxu1  ;;  %v2217_v60 = vadd.f32 %v2216_v61, %v7909_v38  ;;  %v2270_v41 = vadd.f32 %v2269_v43, %v7909_v38  ;;  %v2268_v1 = vadd.f32 %v2267_v27, %v7909_v38  ;;  %v3360_v27 = vmax.f32 %v2201_v45, 0.0 }
 0x1a7   : > { %4225 = vmatprep.mubr.bf16.mxu0 %v9042_v52  ;;  %4266 = vmatprep.mubr.bf16.mxu1 %v9042_v52  ;;  %v3432_v22 = vmax.f32 %v2205_v57, 0.0  ;;  %v3434_v48 = vmax.f32 %v2258_v24, 0.0  ;;  %v3362_v3 = vmax.f32 %v2254_v55, 0.0  ;;  %v3361_v28 = vmax.f32 %v2203_v54, 0.0 }
 0x1a8   : > { %v8399_v49 = vpop.f32.mrf.mxu0  ;;  %v8401_v32 = vpop.f32.mrf.mxu1  ;;  %v3577_v4 = vmax.f32 %v2217_v60, 0.0  ;;  %v3579_v40 = vmax.f32 %v2270_v41, 0.0  ;;  %v3576_v0 = vmax.f32 %v2215_v25, 0.0  ;;  %v3505_v30 = vmax.f32 %v2213_v18, 0.0 }
 0x1a9   : > { %4208 = vmatpush1.bf16.msra.mxu0 %v8285_v8  ;;  %4249 = vmatpush1.bf16.msra.mxu1 %v8293_v34  ;;  %v2211_v8 = vadd.f32 %v8323_v47, %v7886_v11  ;;  %v2264_v34 = vadd.f32 %v8325_v6, %v7886_v11  ;;  %v3363_v47 = vmax.f32 %v2256_v44, 0.0  ;;  %v3507_v7 = vmax.f32 %v2266_v21, 0.0 }
 0x1aa   : > { %4287 = vmatprep.subr.bf16.mxu0 %v3717_v63  ;;  %4328 = vmatprep.subr.bf16.mxu1 %v3719_v12  ;;  %v2312_v35 = vpop.f32.mrf.mxu0  ;;  %v2365_v5 = vpop.f32.mrf.mxu1  ;;  %v3578_v6 = vmax.f32 %v2268_v1, 0.0  ;;  %v3648_v61 = vpack.c.bf16 %v3432_v22, %v3360_v27  ;;  %v3650_v43 = vpack.c.bf16 %v3434_v48, %v3362_v3  ;;  %v3649_v46 = vpack.c.bf16 %v3433_v59, %v3361_v28 }
 0x1ab   : > { %v3504_v16 = vmax.f32 %v2211_v8, 0.0  ;;  %v3506_v39 = vmax.f32 %v2264_v34, 0.0  ;;  %v3651_v50 = vpack.c.bf16 %v3435_v2, %v3363_v47  ;;  %v2309_v63 = vadd.f32 %v8383_v13, %v7660_v17 }
 0x1ac   : > { %v2316_v19 = vpop.f32.mrf.mxu0  ;;  %v2369_v33 = vpop.f32.mrf.mxu1  ;;  %6751 = vmatmul.mubr.msk.bf16.vlgmr.msra.gmra.mxu0 %vm3771_vm2, %v8103_v42  ;;  %6752 = vmatmul.mubr.msk.bf16.vlgmr.msra.gmra.mxu1 %vm3771_vm2, %v8103_v42  ;;  %v2313_v57 = vadd.f32 %v2312_v35, %v7678_v31  ;;  %v2362_v35 = vadd.f32 %v8385_v9, %v7660_v17  ;;  %v2364_v22 = vadd.f32 %v8401_v32, %v7678_v31 }
 0x1ad   : > { %4288 = vmatpush1.bf16.msra.mxu0 %v3716_v15  ;;  %4329 = vmatpush1.bf16.msra.mxu1 %v3718_v29  ;;  %v3721_v15 = vpack.c.bf16 %v3577_v4, %v3505_v30  ;;  %v3723_v29 = vpack.c.bf16 %v3579_v40, %v3507_v7  ;;  %v3720_v45 = vpack.c.bf16 %v3576_v0, %v3504_v16  ;;  %v3365_v28 = vmax.f32 %v2309_v63, 0.0 }
 0x1ae   : > { %4289 = vmatprep.subr.bf16.mxu0 %v3645_v10  ;;  %4330 = vmatprep.subr.bf16.mxu1 %v3647_v62  ;;  %v2318_v53 = vpop.f32.mrf.mxu0  ;;  %v2371_v56 = vpop.f32.mrf.mxu1  ;;  %v3722_v55 = vpack.c.bf16 %v3578_v6, %v3506_v39  ;;  %v2317_v12 = vadd.f32 %v2316_v19, %v7886_v11  ;;  %v2370_v13 = vadd.f32 %v2369_v33, %v7886_v11  ;;  %v3437_v40 = vmax.f32 %v2313_v57, 0.0 }
 0x1af   : > { %4307 = vmatprep.mubr.bf16.mxu0 %v9042_v52  ;;  %4348 = vmatprep.mubr.bf16.mxu1 %v9042_v52  ;;  %v2319_v10 = vadd.f32 %v2318_v53, %v7886_v11  ;;  %v2372_v62 = vadd.f32 %v2371_v56, %v7886_v11  ;;  %v2360_v32 = vadd.f32 %v8369_v26, %v7660_v17  ;;  %v3367_v0 = vmax.f32 %v2362_v35, 0.0 }
 0x1b0   : > { %v2320_v23 = vpop.f32.mrf.mxu0  ;;  %v2373_v14 = vpop.f32.mrf.mxu1  ;;  %v3508_v27 = vmax.f32 %v2317_v12, 0.0  ;;  %v3510_v3 = vmax.f32 %v2370_v13, 0.0  ;;  %v3438_v6 = vmax.f32 %v2364_v22, 0.0 }
 0x1b1   : > { %4290 = vmatpush1.bf16.msra.mxu0 %v8363_v51  ;;  %4331 = vmatpush1.bf16.msra.mxu1 %v8365_v58  ;;  %v2321_v37 = vadd.f32 %v2320_v23, %v7909_v38  ;;  %v2374_v60 = vadd.f32 %v2373_v14, %v7909_v38  ;;  %v2366_v58 = vadd.f32 %v2365_v5, %v7678_v31  ;;  %v3509_v25 = vmax.f32 %v2319_v10, 0.0 }
 0x1b2   : > { %4369 = vmatprep.subr.bf16.mxu0 %v3721_v15  ;;  %4410 = vmatprep.subr.bf16.mxu1 %v3723_v29  ;;  %v2322_v24 = vpop.f32.mrf.mxu0  ;;  %v2375_v36 = vpop.f32.mrf.mxu1  ;;  %v3511_v18 = vmax.f32 %v2372_v62, 0.0  ;;  %v2311_v5 = vadd.f32 %v8399_v49, %v7678_v31  ;;  %v2307_v49 = vadd.f32 %v8367_v20, %v7660_v17  ;;  %v3653_v20 = vpack.c.bf16 %v3437_v40, %v3365_v28 }
 0x1b3   : > { %v2323_v41 = vadd.f32 %v2322_v24, %v7909_v38  ;;  %v2376_v51 = vadd.f32 %v2375_v36, %v7909_v38  ;;  %v3580_v8 = vmax.f32 %v2321_v37, 0.0  ;;  %v3582_v2 = vmax.f32 %v2374_v60, 0.0 }
 0x1b4   : > { %v8439_v54 = vpop.f32.mrf.mxu0  ;;  %v8441_v44 = vpop.f32.mrf.mxu1  ;;  %6753 = vmatmul.mubr.msk.bf16.vlgmr.msra.gmra.mxu0 %vm3771_vm2, %v8103_v42  ;;  %6754 = vmatmul.mubr.msk.bf16.vlgmr.msra.gmra.mxu1 %vm3771_vm2, %v8103_v42  ;;  %v3439_v19 = vmax.f32 %v2366_v58, 0.0  ;;  %v3436_v7 = vmax.f32 %v2311_v5, 0.0 }
 0x1b5   : > { %v3581_v21 = vmax.f32 %v2323_v41, 0.0  ;;  %v3583_v1 = vmax.f32 %v2376_v51, 0.0  ;;  %4370 = vmatpush1.bf16.msra.mxu0 %v3720_v45  ;;  %4411 = vmatpush1.bf16.msra.mxu1 %v3722_v55  ;;  %v3724_v53 = vpack.c.bf16 %v3580_v8, %v3508_v27  ;;  %v3726_v56 = vpack.c.bf16 %v3582_v2, %v3510_v3 }
 0x1b6   : > { %4371 = vmatprep.subr.bf16.mxu0 %v3649_v46  ;;  %4412 = vmatprep.subr.bf16.mxu1 %v3651_v50  ;;  %v2414_v48 = vpop.f32.mrf.mxu0  ;;  %v2467_v59 = vpop.f32.mrf.mxu1  ;;  %v3655_v26 = vpack.c.bf16 %v3439_v19, %v3367_v0 }
 0x1b7   : > { %v3725_v34 = vpack.c.bf16 %v3581_v21, %v3509_v25  ;;  %v3727_v4 = vpack.c.bf16 %v3583_v1, %v3511_v18  ;;  %4389 = vmatprep.mubr.bf16.mxu0 %v9042_v52  ;;  %4430 = vmatprep.mubr.bf16.mxu1 %v9042_v52  ;;  %v2415_v24 = vadd.f32 %v2414_v48, %v7660_v17 }
 0x1b8   : > { %v2416_v33 = vpop.f32.mrf.mxu0  ;;  %v2469_v9 = vpop.f32.mrf.mxu1  ;;  %v2468_v36 = vadd.f32 %v2467_v59, %v7660_v17 }
 0x1b9   : > { %4372 = vmatpush1.bf16.msra.mxu0 %v3648_v61  ;;  %4413 = vmatpush1.bf16.msra.mxu1 %v3650_v43  ;;  %v3364_v61 = vmax.f32 %v2307_v49, 0.0  ;;  %v3366_v43 = vmax.f32 %v2360_v32, 0.0  ;;  %v2417_v58 = vadd.f32 %v2416_v33, %v7678_v31  ;;  %v2470_v12 = vadd.f32 %v2469_v9, %v7678_v31 }
 0x1ba   : > { %4451 = vmatprep.subr.bf16.mxu0 %v3725_v34  ;;  %4492 = vmatprep.subr.bf16.mxu1 %v3727_v4  ;;  %v2418_v47 = vpop.f32.mrf.mxu0  ;;  %v2471_v30 = vpop.f32.mrf.mxu1  ;;  %v2413_v34 = vadd.f32 %v8439_v54, %v7660_v17  ;;  %v2466_v4 = vadd.f32 %v8441_v44, %v7660_v17  ;;  %v3369_v49 = vmax.f32 %v2415_v24, 0.0  ;;  %v3371_v32 = vmax.f32 %v2468_v36, 0.0 }
 0x1bb   : > { %v3652_v14 = vpack.c.bf16 %v3436_v7, %v3364_v61  ;;  %v3654_v15 = vpack.c.bf16 %v3438_v6, %v3366_v43  ;;  %v2419_v29 = vadd.f32 %v2418_v47, %v7678_v31  ;;  %v2472_v50 = vadd.f32 %v2471_v30, %v7678_v31 }
 0x1bc   : > { %v2422_v16 = vpop.f32.mrf.mxu0  ;;  %v2475_v46 = vpop.f32.mrf.mxu1  ;;  %6755 = vmatmul.mubr.msk.bf16.vlgmr.msra.gmra.mxu0 %vm3771_vm2, %v8103_v42  ;;  %6756 = vmatmul.mubr.msk.bf16.vlgmr.msra.gmra.mxu1 %vm3771_vm2, %v8103_v42  ;;  %v3440_v28 = vmax.f32 %v2417_v58, 0.0  ;;  %v3442_v0 = vmax.f32 %v2470_v12, 0.0  ;;  %v3370_v44 = vmax.f32 %v2466_v4, 0.0 }
 0x1bd   : > { %4452 = vmatpush1.bf16.msra.mxu0 %v3724_v53  ;;  %4493 = vmatpush1.bf16.msra.mxu1 %v3726_v56  ;;  %v2423_v37 = vadd.f32 %v2422_v16, %v7886_v11  ;;  %v2476_v60 = vadd.f32 %v2475_v46, %v7886_v11  ;;  %v3441_v18 = vmax.f32 %v2419_v29, 0.0  ;;  %v3443_v21 = vmax.f32 %v2472_v50, 0.0 }
 0x1be   : > { %4453 = vmatprep.subr.bf16.mxu0 %v3653_v20  ;;  %4494 = vmatprep.subr.bf16.mxu1 %v3655_v26  ;;  %v2424_v39 = vpop.f32.mrf.mxu0  ;;  %v2477_v23 = vpop.f32.mrf.mxu1  ;;  %v3368_v56 = vmax.f32 %v2413_v34, 0.0  ;;  %v3658_v26 = vpack.c.bf16 %v3442_v0, %v3370_v44 }
 0x1bf   : > { %4471 = vmatprep.mubr.bf16.mxu0 %v9042_v52  ;;  %4512 = vmatprep.mubr.bf16.mxu1 %v9042_v52  ;;  %v2425_v45 = vadd.f32 %v2424_v39, %v7886_v11  ;;  %v2478_v55 = vadd.f32 %v2477_v23, %v7886_v11  ;;  %v3512_v40 = vmax.f32 %v2423_v37, 0.0  ;;  %v3514_v19 = vmax.f32 %v2476_v60, 0.0 }
 0x1c0   : > { %v2426_v10 = vpop.f32.mrf.mxu0  ;;  %v2479_v62 = vpop.f32.mrf.mxu1  ;;  %v3657_v54 = vpack.c.bf16 %v3441_v18, %v3369_v49  ;;  %v3659_v53 = vpack.c.bf16 %v3443_v21, %v3371_v32  ;;  %v3656_v20 = vpack.c.bf16 %v3440_v28, %v3368_v56 }
 0x1c1   : > { %v2427_v63 = vadd.f32 %v2426_v10, %v7909_v38  ;;  %v2480_v57 = vadd.f32 %v2479_v62, %v7909_v38  ;;  %4454 = vmatpush1.bf16.msra.mxu0 %v3652_v14  ;;  %4495 = vmatpush1.bf16.msra.mxu1 %v3654_v15  ;;  %v3513_v48 = vmax.f32 %v2425_v45, 0.0  ;;  %v3515_v59 = vmax.f32 %v2478_v55, 0.0 }
 0x1c2   : > { %v2428_v41 = vpop.f32.mrf.mxu0  ;;  %v2481_v51 = vpop.f32.mrf.mxu1 }
 0x1c3   : > { %v2429_v13 = vadd.f32 %v2428_v41, %v7909_v38  ;;  %v2482_v25 = vadd.f32 %v2481_v51, %v7909_v38  ;;  %v3584_v1 = vmax.f32 %v2427_v63, 0.0  ;;  %v3586_v35 = vmax.f32 %v2480_v57, 0.0 }
 0x1c4   : > { %v8479_v5 = vpop.f32.mrf.mxu0  ;;  %v8481_v22 = vpop.f32.mrf.mxu1  ;;  %6757 = vmatmul.mubr.msk.bf16.vlgmr.msra.gmra.mxu0 %vm3771_vm2, %v8103_v42  ;;  %6758 = vmatmul.mubr.msk.bf16.vlgmr.msra.gmra.mxu1 %vm3771_vm2, %v8103_v42 }
 0x1c5   : > { %v3585_v8 = vmax.f32 %v2429_v13, 0.0  ;;  %v3587_v2 = vmax.f32 %v2482_v25, 0.0  ;;  %4553 = vmatprep.mubr.bf16.mxu0 %v9042_v52  ;;  %4594 = vmatprep.mubr.bf16.mxu1 %v9042_v52  ;;  %v3728_v47 = vpack.c.bf16 %v3584_v1, %v3512_v40  ;;  %v3730_v30 = vpack.c.bf16 %v3586_v35, %v3514_v19 }
 0x1c6   : > { %v2520_v33 = vpop.f32.mrf.mxu0  ;;  %v2573_v9 = vpop.f32.mrf.mxu1  ;;  %v2572_v34 = vadd.f32 %v8481_v22, %v7660_v17 }
 0x1c7   : > { %v3729_v27 = vpack.c.bf16 %v3585_v8, %v3513_v48  ;;  %v3731_v3 = vpack.c.bf16 %v3587_v2, %v3515_v59  ;;  %v2521_v14 = vadd.f32 %v2520_v33, %v7660_v17  ;;  %v2574_v57 = vadd.f32 %v2573_v9, %v7660_v17 }
 0x1c8   : > { %v2522_v7 = vpop.f32.mrf.mxu0  ;;  %v2575_v6 = vpop.f32.mrf.mxu1  ;;  %v2519_v2 = vadd.f32 %v8479_v5, %v7660_v17  ;;  %v3374_v22 = vmax.f32 %v2572_v34, 0.0 }
 0x1c9   : > { %4533 = vmatprep.subr.bf16.mxu0 %v3729_v27  ;;  %4574 = vmatprep.subr.bf16.mxu1 %v3731_v3  ;;  %v2523_v41 = vadd.f32 %v2522_v7, %v7678_v31  ;;  %v2576_v51 = vadd.f32 %v2575_v6, %v7678_v31  ;;  %v3373_v9 = vmax.f32 %v2521_v14, 0.0  ;;  %v3375_v49 = vmax.f32 %v2574_v57, 0.0 }
 0x1ca   : > { %v2524_v16 = vpop.f32.mrf.mxu0  ;;  %v2577_v46 = vpop.f32.mrf.mxu1  ;;  %4534 = vmatpush1.bf16.msra.mxu0 %v3728_v47  ;;  %4575 = vmatpush1.bf16.msra.mxu1 %v3730_v30 }
 0x1cb   : > { %4535 = vmatprep.subr.bf16.mxu0 %v3657_v54  ;;  %4576 = vmatprep.subr.bf16.mxu1 %v3659_v53  ;;  %v2525_v15 = vadd.f32 %v2524_v16, %v7678_v31  ;;  %v2578_v29 = vadd.f32 %v2577_v46, %v7678_v31  ;;  %v3444_v3 = vmax.f32 %v2523_v41, 0.0  ;;  %v3446_v28 = vmax.f32 %v2576_v51, 0.0 }
 0x1cc   : > { %v2528_v61 = vpop.f32.mrf.mxu0  ;;  %v2581_v43 = vpop.f32.mrf.mxu1  ;;  %v3372_v54 = vmax.f32 %v2519_v2, 0.0 }
 0x1cd   : > { %v2529_v24 = vadd.f32 %v2528_v61, %v7886_v11  ;;  %v2582_v36 = vadd.f32 %v2581_v43, %v7886_v11  ;;  %v3445_v12 = vmax.f32 %v2525_v15, 0.0  ;;  %v3447_v13 = vmax.f32 %v2578_v29, 0.0 }
 0x1ce   : > { %v2530_v39 = vpop.f32.mrf.mxu0  ;;  %v2583_v23 = vpop.f32.mrf.mxu1  ;;  %4536 = vmatpush1.bf16.msra.mxu0 %v3656_v20  ;;  %4577 = vmatpush1.bf16.msra.mxu1 %v3658_v26  ;;  %v3660_v44 = vpack.c.bf16 %v3444_v3, %v3372_v54  ;;  %v3662_v16 = vpack.c.bf16 %v3446_v28, %v3374_v22 }
 0x1cf   : > { %v2531_v50 = vadd.f32 %v2530_v39, %v7886_v11  ;;  %v2584_v62 = vadd.f32 %v2583_v23, %v7886_v11  ;;  %v3516_v4 = vmax.f32 %v2529_v24, 0.0  ;;  %v3518_v40 = vmax.f32 %v2582_v36, 0.0 }
 0x1d0   : > { %v2532_v45 = vpop.f32.mrf.mxu0  ;;  %v2585_v10 = vpop.f32.mrf.mxu1  ;;  %v3661_v5 = vpack.c.bf16 %v3445_v12, %v3373_v9  ;;  %v3663_v6 = vpack.c.bf16 %v3447_v13, %v3375_v49 }
 0x1d1   : > { %v2533_v55 = vadd.f32 %v2532_v45, %v7909_v38  ;;  %v2586_v63 = vadd.f32 %v2585_v10, %v7909_v38  ;;  %6759 = vmatmul.mubr.msk.bf16.vlgmr.msra.gmra.mxu0 %vm3771_vm2, %v8103_v42  ;;  %6760 = vmatmul.mubr.msk.bf16.vlgmr.msra.gmra.mxu1 %vm3771_vm2, %v8103_v42  ;;  %v3517_v35 = vmax.f32 %v2531_v50, 0.0  ;;  %v3519_v48 = vmax.f32 %v2584_v62, 0.0  ;;  %v8531_v62 = vld [vmem:[%s9014_s2] sm:$0xff]  }
 0x1d2   : > { %v2534_v37 = vpop.f32.mrf.mxu0  ;;  %v2587_v60 = vpop.f32.mrf.mxu1  ;;  %4635 = vmatprep.mubr.bf16.mxu0 %v9042_v52  ;;  %4676 = vmatprep.mubr.bf16.mxu1 %v9042_v52 }
 0x1d3   : > { %v2535_v58 = vadd.f32 %v2534_v37, %v7909_v38  ;;  %v2588_v42 = vadd.f32 %v2587_v60, %v7909_v38  ;;  %v3588_v25 = vmax.f32 %v2533_v55, 0.0  ;;  %v3590_v18 = vmax.f32 %v2586_v63, 0.0 }
 0x1d4   : > { %v8513_v21 = vpop.f32.mrf.mxu0  ;;  %v8515_v1 = vpop.f32.mrf.mxu1 }
 0x1d5   : > { %v3589_v59 = vmax.f32 %v2535_v58, 0.0  ;;  %v3591_v8 = vmax.f32 %v2588_v42, 0.0  ;;  %v3732_v0 = vpack.c.bf16 %v3588_v25, %v3516_v4  ;;  %v3734_v47 = vpack.c.bf16 %v3590_v18, %v3518_v40 }
 0x1d6   : > { %v2626_v19 = vpop.f32.mrf.mxu0  ;;  %v2679_v33 = vpop.f32.mrf.mxu1  ;;  %v2625_v2 = vadd.f32 %v8513_v21, %v7660_v17  ;;  %v2678_v34 = vadd.f32 %v8515_v1, %v7660_v17 }
 0x1d7   : > { %v3733_v32 = vpack.c.bf16 %v3589_v59, %v3517_v35  ;;  %v3735_v27 = vpack.c.bf16 %v3591_v8, %v3519_v48  ;;  %v2627_v43 = vadd.f32 %v2626_v19, %v7660_v17  ;;  %v2680_v55 = vadd.f32 %v2679_v33, %v7660_v17 }
 0x1d8   : > { %v2628_v30 = vpop.f32.mrf.mxu0  ;;  %v2681_v7 = vpop.f32.mrf.mxu1  ;;  %v3378_v1 = vmax.f32 %v2678_v34, 0.0 }
 0x1d9   : > { %4615 = vmatprep.subr.bf16.mxu0 %v3733_v32  ;;  %4656 = vmatprep.subr.bf16.mxu1 %v3735_v27  ;;  %v2629_v37 = vadd.f32 %v2628_v30, %v7678_v31  ;;  %v2682_v60 = vadd.f32 %v2681_v7, %v7678_v31  ;;  %v3377_v9 = vmax.f32 %v2627_v43, 0.0  ;;  %v3379_v49 = vmax.f32 %v2680_v55, 0.0 }
 0x1da   : > { %v2630_v53 = vpop.f32.mrf.mxu0  ;;  %v2683_v56 = vpop.f32.mrf.mxu1  ;;  %4616 = vmatpush1.bf16.msra.mxu0 %v3732_v0  ;;  %4657 = vmatpush1.bf16.msra.mxu1 %v3734_v47 }
 0x1db   : > { %4617 = vmatprep.subr.bf16.mxu0 %v3661_v5  ;;  %4658 = vmatprep.subr.bf16.mxu1 %v3663_v6  ;;  %v2631_v39 = vadd.f32 %v2630_v53, %v7678_v31  ;;  %v2684_v23 = vadd.f32 %v2683_v56, %v7678_v31  ;;  %v3448_v3 = vmax.f32 %v2629_v37, 0.0  ;;  %v3450_v28 = vmax.f32 %v2682_v60, 0.0 }
 0x1dc   : > { %v2634_v46 = vpop.f32.mrf.mxu0  ;;  %v2687_v20 = vpop.f32.mrf.mxu1  ;;  %v3376_v6 = vmax.f32 %v2625_v2, 0.0 }
 0x1dd   : > { %v2635_v63 = vadd.f32 %v2634_v46, %v7886_v11  ;;  %v2688_v57 = vadd.f32 %v2687_v20, %v7886_v11  ;;  %v3449_v58 = vmax.f32 %v2631_v39, 0.0  ;;  %v3451_v42 = vmax.f32 %v2684_v23, 0.0 }
 0x1de   : > { %v2636_v26 = vpop.f32.mrf.mxu0  ;;  %v2689_v61 = vpop.f32.mrf.mxu1  ;;  %4618 = vmatpush1.bf16.msra.mxu0 %v3660_v44  ;;  %4659 = vmatpush1.bf16.msra.mxu1 %v3662_v16  ;;  %v3664_v53 = vpack.c.bf16 %v3448_v3, %v3376_v6  ;;  %v3666_v56 = vpack.c.bf16 %v3450_v28, %v3378_v1 }
 0x1df   : > { %v2637_v14 = vadd.f32 %v2636_v26, %v7886_v11  ;;  %v2690_v50 = vadd.f32 %v2689_v61, %v7886_v11  ;;  %v3520_v4 = vmax.f32 %v2635_v63, 0.0  ;;  %v3522_v40 = vmax.f32 %v2688_v57, 0.0 }
 0x1e0   : > { %v2638_v15 = vpop.f32.mrf.mxu0  ;;  %v2691_v29 = vpop.f32.mrf.mxu1  ;;  %v3665_v21 = vpack.c.bf16 %v3449_v58, %v3377_v9  ;;  %v3667_v5 = vpack.c.bf16 %v3451_v42, %v3379_v49 }
 0x1e1   : > { %v2639_v45 = vadd.f32 %v2638_v15, %v7909_v38  ;;  %v2692_v10 = vadd.f32 %v2691_v29, %v7909_v38  ;;  %6761 = vmatmul.mubr.msk.bf16.vlgmr.msra.gmra.mxu0 %vm3771_vm2, %v8531_v62  ;;  %6762 = vmatmul.mubr.msk.bf16.vlgmr.msra.gmra.mxu1 %vm3771_vm2, %v8531_v62  ;;  %v3521_v35 = vmax.f32 %v2637_v14, 0.0  ;;  %v3523_v48 = vmax.f32 %v2690_v50, 0.0 }
 0x1e2   : > { %v2640_v24 = vpop.f32.mrf.mxu0  ;;  %v2693_v36 = vpop.f32.mrf.mxu1  ;;  %4717 = vmatprep.mubr.bf16.mxu0 %v9042_v52  ;;  %4758 = vmatprep.mubr.bf16.mxu1 %v9042_v52 }
 0x1e3   : > { %v2641_v41 = vadd.f32 %v2640_v24, %v7909_v38  ;;  %v2694_v51 = vadd.f32 %v2693_v36, %v7909_v38  ;;  %v3592_v12 = vmax.f32 %v2639_v45, 0.0  ;;  %v3594_v13 = vmax.f32 %v2692_v10, 0.0 }
 0x1e4   : > { %v8546_v25 = vpop.f32.mrf.mxu0  ;;  %v8548_v18 = vpop.f32.mrf.mxu1 }
 0x1e5   : > { %v3593_v59 = vmax.f32 %v2641_v41, 0.0  ;;  %v3595_v8 = vmax.f32 %v2694_v51, 0.0  ;;  %v3736_v0 = vpack.c.bf16 %v3592_v12, %v3520_v4  ;;  %v3738_v47 = vpack.c.bf16 %v3594_v13, %v3522_v40 }
 0x1e6   : > { %v2732_v19 = vpop.f32.mrf.mxu0  ;;  %v2785_v33 = vpop.f32.mrf.mxu1  ;;  %v2731_v2 = vadd.f32 %v8546_v25, %v7660_v17  ;;  %v2784_v34 = vadd.f32 %v8548_v18, %v7660_v17 }
 0x1e7   : > { %v3737_v32 = vpack.c.bf16 %v3593_v59, %v3521_v35  ;;  %v3739_v27 = vpack.c.bf16 %v3595_v8, %v3523_v48  ;;  %v2733_v26 = vadd.f32 %v2732_v19, %v7660_v17  ;;  %v2786_v45 = vadd.f32 %v2785_v33, %v7660_v17 }
 0x1e8   : > { %v2734_v30 = vpop.f32.mrf.mxu0  ;;  %v2787_v7 = vpop.f32.mrf.mxu1  ;;  %v3382_v18 = vmax.f32 %v2784_v34, 0.0 }
 0x1e9   : > { %4697 = vmatprep.subr.bf16.mxu0 %v3737_v32  ;;  %4738 = vmatprep.subr.bf16.mxu1 %v3739_v27  ;;  %v2735_v24 = vadd.f32 %v2734_v30, %v7678_v31  ;;  %v2788_v36 = vadd.f32 %v2787_v7, %v7678_v31  ;;  %v3381_v9 = vmax.f32 %v2733_v26, 0.0  ;;  %v3383_v49 = vmax.f32 %v2786_v45, 0.0 }
 0x1ea   : > { %v2736_v54 = vpop.f32.mrf.mxu0  ;;  %v2789_v22 = vpop.f32.mrf.mxu1  ;;  %4698 = vmatpush1.bf16.msra.mxu0 %v3736_v0  ;;  %4739 = vmatpush1.bf16.msra.mxu1 %v3738_v47 }
 0x1eb   : > { %4699 = vmatprep.subr.bf16.mxu0 %v3665_v21  ;;  %4740 = vmatprep.subr.bf16.mxu1 %v3667_v5  ;;  %v2737_v61 = vadd.f32 %v2736_v54, %v7678_v31  ;;  %v2790_v43 = vadd.f32 %v2789_v22, %v7678_v31  ;;  %v3452_v3 = vmax.f32 %v2735_v24, 0.0  ;;  %v3454_v28 = vmax.f32 %v2788_v36, 0.0 }
 0x1ec   : > { %v2740_v44 = vpop.f32.mrf.mxu0  ;;  %v2793_v16 = vpop.f32.mrf.mxu1  ;;  %v3380_v5 = vmax.f32 %v2731_v2, 0.0 }
 0x1ed   : > { %v2741_v10 = vadd.f32 %v2740_v44, %v7886_v11  ;;  %v2794_v55 = vadd.f32 %v2793_v16, %v7886_v11  ;;  %v3453_v41 = vmax.f32 %v2737_v61, 0.0  ;;  %v3455_v51 = vmax.f32 %v2790_v43, 0.0 }
 0x1ee   : > { %v2742_v46 = vpop.f32.mrf.mxu0  ;;  %v2795_v20 = vpop.f32.mrf.mxu1  ;;  %4700 = vmatpush1.bf16.msra.mxu0 %v3664_v53  ;;  %4741 = vmatpush1.bf16.msra.mxu1 %v3666_v56  ;;  %v3668_v54 = vpack.c.bf16 %v3452_v3, %v3380_v5  ;;  %v3670_v22 = vpack.c.bf16 %v3454_v28, %v3382_v18 }
 0x1ef   : > { %v2743_v39 = vadd.f32 %v2742_v46, %v7886_v11  ;;  %v2796_v15 = vadd.f32 %v2795_v20, %v7886_v11  ;;  %v3524_v4 = vmax.f32 %v2741_v10, 0.0  ;;  %v3526_v40 = vmax.f32 %v2794_v55, 0.0 }
 0x1f0   : > { %v2744_v23 = vpop.f32.mrf.mxu0  ;;  %v2797_v14 = vpop.f32.mrf.mxu1  ;;  %v3669_v25 = vpack.c.bf16 %v3453_v41, %v3381_v9  ;;  %v3671_v21 = vpack.c.bf16 %v3455_v51, %v3383_v49 }
 0x1f1   : > { %v2745_v29 = vadd.f32 %v2744_v23, %v7909_v38  ;;  %v2798_v50 = vadd.f32 %v2797_v14, %v7909_v38  ;;  %6763 = vmatmul.mubr.msk.bf16.vlgmr.msra.gmra.mxu0 %vm3771_vm2, %v8531_v62  ;;  %6764 = vmatmul.mubr.msk.bf16.vlgmr.msra.gmra.mxu1 %vm3771_vm2, %v8531_v62  ;;  %v3525_v35 = vmax.f32 %v2743_v39, 0.0  ;;  %v3527_v48 = vmax.f32 %v2796_v15, 0.0 }
 0x1f2   : > { %v2746_v63 = vpop.f32.mrf.mxu0  ;;  %v2799_v57 = vpop.f32.mrf.mxu1  ;;  %4799 = vmatprep.mubr.bf16.mxu0 %v9042_v52  ;;  %4840 = vmatprep.mubr.bf16.mxu1 %v9042_v52 }
 0x1f3   : > { %v2747_v37 = vadd.f32 %v2746_v63, %v7909_v38  ;;  %v2800_v60 = vadd.f32 %v2799_v57, %v7909_v38  ;;  %v3596_v58 = vmax.f32 %v2745_v29, 0.0  ;;  %v3598_v42 = vmax.f32 %v2798_v50, 0.0 }
 0x1f4   : > { %v8574_v12 = vpop.f32.mrf.mxu0  ;;  %v8576_v13 = vpop.f32.mrf.mxu1 }
 0x1f5   : > { %v3597_v59 = vmax.f32 %v2747_v37, 0.0  ;;  %v3599_v8 = vmax.f32 %v2800_v60, 0.0  ;;  %v3740_v0 = vpack.c.bf16 %v3596_v58, %v3524_v4  ;;  %v3742_v47 = vpack.c.bf16 %v3598_v42, %v3526_v40 }
 0x1f6   : > { %v2838_v19 = vpop.f32.mrf.mxu0  ;;  %v2891_v33 = vpop.f32.mrf.mxu1  ;;  %v2837_v2 = vadd.f32 %v8574_v12, %v7660_v17  ;;  %v2890_v34 = vadd.f32 %v8576_v13, %v7660_v17 }
 0x1f7   : > { %v3741_v32 = vpack.c.bf16 %v3597_v59, %v3525_v35  ;;  %v3743_v27 = vpack.c.bf16 %v3599_v8, %v3527_v48  ;;  %v2839_v46 = vadd.f32 %v2838_v19, %v7660_v17  ;;  %v2892_v29 = vadd.f32 %v2891_v33, %v7660_v17 }
 0x1f8   : > { %v2840_v30 = vpop.f32.mrf.mxu0  ;;  %v2893_v7 = vpop.f32.mrf.mxu1  ;;  %v3386_v13 = vmax.f32 %v2890_v34, 0.0 }
 0x1f9   : > { %4779 = vmatprep.subr.bf16.mxu0 %v3741_v32  ;;  %4820 = vmatprep.subr.bf16.mxu1 %v3743_v27  ;;  %v2841_v63 = vadd.f32 %v2840_v30, %v7678_v31  ;;  %v2894_v57 = vadd.f32 %v2893_v7, %v7678_v31  ;;  %v3385_v9 = vmax.f32 %v2839_v46, 0.0  ;;  %v3387_v49 = vmax.f32 %v2892_v29, 0.0 }
 0x1fa   : > { %v2842_v6 = vpop.f32.mrf.mxu0  ;;  %v2895_v1 = vpop.f32.mrf.mxu1  ;;  %4780 = vmatpush1.bf16.msra.mxu0 %v3740_v0  ;;  %4821 = vmatpush1.bf16.msra.mxu1 %v3742_v47 }
 0x1fb   : > { %4781 = vmatprep.subr.bf16.mxu0 %v3669_v25  ;;  %4822 = vmatprep.subr.bf16.mxu1 %v3671_v21  ;;  %v2843_v20 = vadd.f32 %v2842_v6, %v7678_v31  ;;  %v2896_v26 = vadd.f32 %v2895_v1, %v7678_v31  ;;  %v3456_v3 = vmax.f32 %v2841_v63, 0.0  ;;  %v3458_v28 = vmax.f32 %v2894_v57, 0.0 }
 0x1fc   : > { %v2846_v53 = vpop.f32.mrf.mxu0  ;;  %v2899_v56 = vpop.f32.mrf.mxu1  ;;  %v3384_v21 = vmax.f32 %v2837_v2, 0.0 }
 0x1fd   : > { %v2847_v50 = vadd.f32 %v2846_v53, %v7886_v11  ;;  %v2900_v45 = vadd.f32 %v2899_v56, %v7886_v11  ;;  %v3457_v37 = vmax.f32 %v2843_v20, 0.0  ;;  %v3459_v60 = vmax.f32 %v2896_v26, 0.0 }
 0x1fe   : > { %v2848_v44 = vpop.f32.mrf.mxu0  ;;  %v2901_v16 = vpop.f32.mrf.mxu1  ;;  %4782 = vmatpush1.bf16.msra.mxu0 %v3668_v54  ;;  %4823 = vmatpush1.bf16.msra.mxu1 %v3670_v22  ;;  %v3672_v6 = vpack.c.bf16 %v3456_v3, %v3384_v21  ;;  %v3674_v1 = vpack.c.bf16 %v3458_v28, %v3386_v13 }
 0x1ff   : > { %v2849_v61 = vadd.f32 %v2848_v44, %v7886_v11  ;;  %v2902_v23 = vadd.f32 %v2901_v16, %v7886_v11  ;;  %v3528_v4 = vmax.f32 %v2847_v50, 0.0  ;;  %v3530_v40 = vmax.f32 %v2900_v45, 0.0 }
 0x200   : > { %v2850_v43 = vpop.f32.mrf.mxu0  ;;  %v2903_v39 = vpop.f32.mrf.mxu1  ;;  %v3673_v12 = vpack.c.bf16 %v3457_v37, %v3385_v9  ;;  %v3675_v25 = vpack.c.bf16 %v3459_v60, %v3387_v49 }
 0x201   : > { %v2851_v14 = vadd.f32 %v2850_v43, %v7909_v38  ;;  %v2904_v15 = vadd.f32 %v2903_v39, %v7909_v38  ;;  %6765 = vmatmul.mubr.msk.bf16.vlgmr.msra.gmra.mxu0 %vm3771_vm2, %v8531_v62  ;;  %6766 = vmatmul.mubr.msk.bf16.vlgmr.msra.gmra.mxu1 %vm3771_vm2, %v8531_v62  ;;  %v3529_v35 = vmax.f32 %v2849_v61, 0.0  ;;  %v3531_v48 = vmax.f32 %v2902_v23, 0.0 }
 0x202   : > { %v2852_v10 = vpop.f32.mrf.mxu0  ;;  %v2905_v55 = vpop.f32.mrf.mxu1  ;;  %4881 = vmatprep.mubr.bf16.mxu0 %v9042_v52  ;;  %4922 = vmatprep.mubr.bf16.mxu1 %v9042_v52 }
 0x203   : > { %v2853_v24 = vadd.f32 %v2852_v10, %v7909_v38  ;;  %v2906_v36 = vadd.f32 %v2905_v55, %v7909_v38  ;;  %v3600_v41 = vmax.f32 %v2851_v14, 0.0  ;;  %v3602_v51 = vmax.f32 %v2904_v15, 0.0 }
 0x204   : > { %v8602_v58 = vpop.f32.mrf.mxu0  ;;  %v8604_v42 = vpop.f32.mrf.mxu1 }
 0x205   : > { %v3601_v59 = vmax.f32 %v2853_v24, 0.0  ;;  %v3603_v8 = vmax.f32 %v2906_v36, 0.0  ;;  %v3744_v0 = vpack.c.bf16 %v3600_v41, %v3528_v4  ;;  %v3746_v47 = vpack.c.bf16 %v3602_v51, %v3530_v40 }
 0x206   : > { %v2944_v19 = vpop.f32.mrf.mxu0  ;;  %v2997_v33 = vpop.f32.mrf.mxu1  ;;  %v2943_v2 = vadd.f32 %v8602_v58, %v7660_v17  ;;  %v2996_v34 = vadd.f32 %v8604_v42, %v7660_v17 }
 0x207   : > { %v3745_v32 = vpack.c.bf16 %v3601_v59, %v3529_v35  ;;  %v3747_v27 = vpack.c.bf16 %v3603_v8, %v3531_v48  ;;  %v2945_v44 = vadd.f32 %v2944_v19, %v7660_v17  ;;  %v2998_v14 = vadd.f32 %v2997_v33, %v7660_v17 }
 0x208   : > { %v2946_v30 = vpop.f32.mrf.mxu0  ;;  %v2999_v7 = vpop.f32.mrf.mxu1  ;;  %v3390_v42 = vmax.f32 %v2996_v34, 0.0 }
 0x209   : > { %4861 = vmatprep.subr.bf16.mxu0 %v3745_v32  ;;  %4902 = vmatprep.subr.bf16.mxu1 %v3747_v27  ;;  %v2947_v10 = vadd.f32 %v2946_v30, %v7678_v31  ;;  %v3000_v55 = vadd.f32 %v2999_v7, %v7678_v31  ;;  %v3389_v9 = vmax.f32 %v2945_v44, 0.0  ;;  %v3391_v49 = vmax.f32 %v2998_v14, 0.0 }
 0x20a   : > { %v2948_v5 = vpop.f32.mrf.mxu0  ;;  %v3001_v18 = vpop.f32.mrf.mxu1  ;;  %4862 = vmatpush1.bf16.msra.mxu0 %v3744_v0  ;;  %4903 = vmatpush1.bf16.msra.mxu1 %v3746_v47 }
 0x20b   : > { %4863 = vmatprep.subr.bf16.mxu0 %v3673_v12  ;;  %4904 = vmatprep.subr.bf16.mxu1 %v3675_v25  ;;  %v2949_v16 = vadd.f32 %v2948_v5, %v7678_v31  ;;  %v3002_v46 = vadd.f32 %v3001_v18, %v7678_v31  ;;  %v3460_v3 = vmax.f32 %v2947_v10, 0.0  ;;  %v3462_v28 = vmax.f32 %v3000_v55, 0.0 }
 0x20c   : > { %v2952_v54 = vpop.f32.mrf.mxu0  ;;  %v3005_v22 = vpop.f32.mrf.mxu1  ;;  %v3388_v25 = vmax.f32 %v2943_v2, 0.0 }
 0x20d   : > { %v2953_v15 = vadd.f32 %v2952_v54, %v7886_v11  ;;  %v3006_v29 = vadd.f32 %v3005_v22, %v7886_v11  ;;  %v3461_v24 = vmax.f32 %v2949_v16, 0.0  ;;  %v3463_v36 = vmax.f32 %v3002_v46, 0.0 }
 0x20e   : > { %v2954_v53 = vpop.f32.mrf.mxu0  ;;  %v3007_v56 = vpop.f32.mrf.mxu1  ;;  %4864 = vmatpush1.bf16.msra.mxu0 %v3672_v6  ;;  %4905 = vmatpush1.bf16.msra.mxu1 %v3674_v1  ;;  %v3676_v5 = vpack.c.bf16 %v3460_v3, %v3388_v25  ;;  %v3678_v18 = vpack.c.bf16 %v3462_v28, %v3390_v42 }
 0x20f   : > { %v2955_v20 = vadd.f32 %v2954_v53, %v7886_v11  ;;  %v3008_v43 = vadd.f32 %v3007_v56, %v7886_v11  ;;  %v3532_v4 = vmax.f32 %v2953_v15, 0.0  ;;  %v3534_v40 = vmax.f32 %v3006_v29, 0.0 }
 0x210   : > { %v2956_v26 = vpop.f32.mrf.mxu0  ;;  %v3009_v61 = vpop.f32.mrf.mxu1  ;;  %v3677_v58 = vpack.c.bf16 %v3461_v24, %v3389_v9  ;;  %v3679_v12 = vpack.c.bf16 %v3463_v36, %v3391_v49 }
 0x211   : > { %v2957_v39 = vadd.f32 %v2956_v26, %v7909_v38  ;;  %v3010_v23 = vadd.f32 %v3009_v61, %v7909_v38  ;;  %6767 = vmatmul.mubr.msk.bf16.vlgmr.msra.gmra.mxu0 %vm3771_vm2, %v8531_v62  ;;  %6768 = vmatmul.mubr.msk.bf16.vlgmr.msra.gmra.mxu1 %vm3771_vm2, %v8531_v62  ;;  %v3533_v35 = vmax.f32 %v2955_v20, 0.0  ;;  %v3535_v48 = vmax.f32 %v3008_v43, 0.0 }
 0x212   : > { %v2958_v50 = vpop.f32.mrf.mxu0  ;;  %v3011_v45 = vpop.f32.mrf.mxu1  ;;  %4963 = vmatprep.mubr.bf16.mxu0 %v9042_v52  ;;  %5004 = vmatprep.mubr.bf16.mxu1 %v9042_v52 }
 0x213   : > { %v2959_v63 = vadd.f32 %v2958_v50, %v7909_v38  ;;  %v3012_v57 = vadd.f32 %v3011_v45, %v7909_v38  ;;  %v3604_v37 = vmax.f32 %v2957_v39, 0.0  ;;  %v3606_v60 = vmax.f32 %v3010_v23, 0.0 }
 0x214   : > { %v8630_v41 = vpop.f32.mrf.mxu0  ;;  %v8632_v51 = vpop.f32.mrf.mxu1 }
 0x215   : > { %v3605_v59 = vmax.f32 %v2959_v63, 0.0  ;;  %v3607_v8 = vmax.f32 %v3012_v57, 0.0  ;;  %v3748_v0 = vpack.c.bf16 %v3604_v37, %v3532_v4  ;;  %v3750_v47 = vpack.c.bf16 %v3606_v60, %v3534_v40 }
 0x216   : > { %v3050_v19 = vpop.f32.mrf.mxu0  ;;  %v3103_v33 = vpop.f32.mrf.mxu1  ;;  %v3049_v2 = vadd.f32 %v8630_v41, %v7660_v17  ;;  %v3102_v34 = vadd.f32 %v8632_v51, %v7660_v17 }
 0x217   : > { %v3749_v32 = vpack.c.bf16 %v3605_v59, %v3533_v35  ;;  %v3751_v27 = vpack.c.bf16 %v3607_v8, %v3535_v48  ;;  %v3051_v53 = vadd.f32 %v3050_v19, %v7660_v17  ;;  %v3104_v39 = vadd.f32 %v3103_v33, %v7660_v17 }
 0x218   : > { %v3052_v30 = vpop.f32.mrf.mxu0  ;;  %v3105_v7 = vpop.f32.mrf.mxu1  ;;  %v3394_v51 = vmax.f32 %v3102_v34, 0.0 }
 0x219   : > { %4943 = vmatprep.subr.bf16.mxu0 %v3749_v32  ;;  %4984 = vmatprep.subr.bf16.mxu1 %v3751_v27  ;;  %v3053_v50 = vadd.f32 %v3052_v30, %v7678_v31  ;;  %v3106_v45 = vadd.f32 %v3105_v7, %v7678_v31  ;;  %v3393_v9 = vmax.f32 %v3051_v53, 0.0  ;;  %v3395_v49 = vmax.f32 %v3104_v39, 0.0 }
 0x21a   : > { %v3054_v21 = vpop.f32.mrf.mxu0  ;;  %v3107_v13 = vpop.f32.mrf.mxu1  ;;  %4944 = vmatpush1.bf16.msra.mxu0 %v3748_v0  ;;  %4985 = vmatpush1.bf16.msra.mxu1 %v3750_v47 }
 0x21b   : > { %4945 = vmatprep.subr.bf16.mxu0 %v3677_v58  ;;  %4986 = vmatprep.subr.bf16.mxu1 %v3679_v12  ;;  %v3055_v56 = vadd.f32 %v3054_v21, %v7678_v31  ;;  %v3108_v44 = vadd.f32 %v3107_v13, %v7678_v31  ;;  %v3464_v3 = vmax.f32 %v3053_v50, 0.0  ;;  %v3466_v28 = vmax.f32 %v3106_v45, 0.0 }
 0x21c   : > { %v3058_v6 = vpop.f32.mrf.mxu0  ;;  %v3111_v1 = vpop.f32.mrf.mxu1  ;;  %v3392_v12 = vmax.f32 %v3049_v2, 0.0 }
 0x21d   : > { %v3059_v23 = vadd.f32 %v3058_v6, %v7886_v11  ;;  %v3112_v14 = vadd.f32 %v3111_v1, %v7886_v11  ;;  %v3465_v63 = vmax.f32 %v3055_v56, 0.0  ;;  %v3467_v57 = vmax.f32 %v3108_v44, 0.0 }
 0x21e   : > { %v3060_v54 = vpop.f32.mrf.mxu0  ;;  %v3113_v22 = vpop.f32.mrf.mxu1  ;;  %4946 = vmatpush1.bf16.msra.mxu0 %v3676_v5  ;;  %4987 = vmatpush1.bf16.msra.mxu1 %v3678_v18  ;;  %v3680_v21 = vpack.c.bf16 %v3464_v3, %v3392_v12  ;;  %v3682_v13 = vpack.c.bf16 %v3466_v28, %v3394_v51 }
 0x21f   : > { %v3061_v16 = vadd.f32 %v3060_v54, %v7886_v11  ;;  %v3114_v26 = vadd.f32 %v3113_v22, %v7886_v11  ;;  %v3536_v4 = vmax.f32 %v3059_v23, 0.0  ;;  %v3538_v40 = vmax.f32 %v3112_v14, 0.0 }
 0x220   : > { %v3062_v46 = vpop.f32.mrf.mxu0  ;;  %v3115_v20 = vpop.f32.mrf.mxu1  ;;  %v3681_v41 = vpack.c.bf16 %v3465_v63, %v3393_v9  ;;  %v3683_v58 = vpack.c.bf16 %v3467_v57, %v3395_v49 }
 0x221   : > { %v3063_v61 = vadd.f32 %v3062_v46, %v7909_v38  ;;  %v3116_v43 = vadd.f32 %v3115_v20, %v7909_v38  ;;  %6769 = vmatmul.mubr.msk.bf16.vlgmr.msra.gmra.mxu0 %vm3771_vm2, %v8531_v62  ;;  %6770 = vmatmul.mubr.msk.bf16.vlgmr.msra.gmra.mxu1 %vm3771_vm2, %v8531_v62  ;;  %v3537_v35 = vmax.f32 %v3061_v16, 0.0  ;;  %v3539_v48 = vmax.f32 %v3114_v26, 0.0 }
 0x222   : > { %v3064_v15 = vpop.f32.mrf.mxu0  ;;  %v3117_v29 = vpop.f32.mrf.mxu1  ;;  %5045 = vmatprep.mubr.bf16.mxu0 %v9042_v52  ;;  %5086 = vmatprep.mubr.bf16.mxu1 %v9042_v52 }
 0x223   : > { %v3065_v10 = vadd.f32 %v3064_v15, %v7909_v38  ;;  %v3118_v55 = vadd.f32 %v3117_v29, %v7909_v38  ;;  %v3608_v24 = vmax.f32 %v3063_v61, 0.0  ;;  %v3610_v36 = vmax.f32 %v3116_v43, 0.0 }
 0x224   : > { %v8658_v37 = vpop.f32.mrf.mxu0  ;;  %v8660_v60 = vpop.f32.mrf.mxu1 }
 0x225   : > { %v3609_v59 = vmax.f32 %v3065_v10, 0.0  ;;  %v3611_v8 = vmax.f32 %v3118_v55, 0.0  ;;  %v3752_v0 = vpack.c.bf16 %v3608_v24, %v3536_v4  ;;  %v3754_v47 = vpack.c.bf16 %v3610_v36, %v3538_v40 }
 0x226   : > { %v3156_v19 = vpop.f32.mrf.mxu0  ;;  %v3209_v33 = vpop.f32.mrf.mxu1  ;;  %v3155_v2 = vadd.f32 %v8658_v37, %v7660_v17  ;;  %v3208_v34 = vadd.f32 %v8660_v60, %v7660_v17 }
 0x227   : > { %v3753_v32 = vpack.c.bf16 %v3609_v59, %v3537_v35  ;;  %v3755_v27 = vpack.c.bf16 %v3611_v8, %v3539_v48  ;;  %v3157_v54 = vadd.f32 %v3156_v19, %v7660_v17  ;;  %v3210_v61 = vadd.f32 %v3209_v33, %v7660_v17 }
 0x228   : > { %v3158_v30 = vpop.f32.mrf.mxu0  ;;  %v3211_v7 = vpop.f32.mrf.mxu1  ;;  %v3396_v37 = vmax.f32 %v3155_v2, 0.0  ;;  %v3398_v60 = vmax.f32 %v3208_v34, 0.0 }
 0x229   : > { %5025 = vmatprep.subr.bf16.mxu0 %v3753_v32  ;;  %5066 = vmatprep.subr.bf16.mxu1 %v3755_v27  ;;  %v3159_v15 = vadd.f32 %v3158_v30, %v7678_v31  ;;  %v3212_v29 = vadd.f32 %v3211_v7, %v7678_v31  ;;  %v3397_v9 = vmax.f32 %v3157_v54, 0.0  ;;  %v3399_v49 = vmax.f32 %v3210_v61, 0.0 }
 0x22a   : > { %v3160_v25 = vpop.f32.mrf.mxu0  ;;  %v3213_v42 = vpop.f32.mrf.mxu1  ;;  %5026 = vmatpush1.bf16.msra.mxu0 %v3752_v0  ;;  %5067 = vmatpush1.bf16.msra.mxu1 %v3754_v47 }
 0x22b   : > { %5027 = vmatprep.subr.bf16.mxu0 %v3681_v41  ;;  %5068 = vmatprep.subr.bf16.mxu1 %v3683_v58  ;;  %v3161_v22 = vadd.f32 %v3160_v25, %v7678_v31  ;;  %v3214_v53 = vadd.f32 %v3213_v42, %v7678_v31  ;;  %v3468_v3 = vmax.f32 %v3159_v15, 0.0  ;;  %v3470_v28 = vmax.f32 %v3212_v29, 0.0 }
 0x22c   : > { %v3164_v5 = vpop.f32.mrf.mxu0  ;;  %v3217_v18 = vpop.f32.mrf.mxu1 }
 0x22d   : > { %v3165_v43 = vadd.f32 %v3164_v5, %v7886_v11  ;;  %v3218_v39 = vadd.f32 %v3217_v18, %v7886_v11  ;;  %v3469_v10 = vmax.f32 %v3161_v22, 0.0  ;;  %v3471_v55 = vmax.f32 %v3214_v53, 0.0 }
 0x22e   : > { %v3166_v6 = vpop.f32.mrf.mxu0  ;;  %v3219_v1 = vpop.f32.mrf.mxu1  ;;  %5028 = vmatpush1.bf16.msra.mxu0 %v3680_v21  ;;  %5069 = vmatpush1.bf16.msra.mxu1 %v3682_v13  ;;  %v3684_v25 = vpack.c.bf16 %v3468_v3, %v3396_v37  ;;  %v3686_v42 = vpack.c.bf16 %v3470_v28, %v3398_v60 }
 0x22f   : > { %v3167_v56 = vadd.f32 %v3166_v6, %v7886_v11  ;;  %v3220_v46 = vadd.f32 %v3219_v1, %v7886_v11  ;;  %v3540_v4 = vmax.f32 %v3165_v43, 0.0  ;;  %v3542_v40 = vmax.f32 %v3218_v39, 0.0 }
 0x230   : > { %v3168_v44 = vpop.f32.mrf.mxu0  ;;  %v3221_v16 = vpop.f32.mrf.mxu1  ;;  %v3685_v41 = vpack.c.bf16 %v3469_v10, %v3397_v9  ;;  %v3687_v58 = vpack.c.bf16 %v3471_v55, %v3399_v49 }
 0x231   : > { %v3169_v20 = vadd.f32 %v3168_v44, %v7909_v38  ;;  %v3222_v26 = vadd.f32 %v3221_v16, %v7909_v38  ;;  %6771 = vmatmul.mubr.msk.bf16.vlgmr.msra.gmra.mxu0 %vm3771_vm2, %v8531_v62  ;;  %6772 = vmatmul.mubr.msk.bf16.vlgmr.msra.gmra.mxu1 %vm3771_vm2, %v8531_v62  ;;  %v3541_v35 = vmax.f32 %v3167_v56, 0.0  ;;  %v3543_v48 = vmax.f32 %v3220_v46, 0.0 }
 0x232   : > { %v3170_v23 = vpop.f32.mrf.mxu0  ;;  %v3223_v14 = vpop.f32.mrf.mxu1  ;;  %5127 = vmatprep.mubr.bf16.mxu0 %v9042_v52  ;;  %5168 = vmatprep.mubr.bf16.mxu1 %v9042_v52 }
 0x233   : > { %v3171_v50 = vadd.f32 %v3170_v23, %v7909_v38  ;;  %v3224_v45 = vadd.f32 %v3223_v14, %v7909_v38  ;;  %v3612_v63 = vmax.f32 %v3169_v20, 0.0  ;;  %v3614_v57 = vmax.f32 %v3222_v26, 0.0 }
 0x234   : > { %v8686_v24 = vpop.f32.mrf.mxu0  ;;  %v8688_v36 = vpop.f32.mrf.mxu1 }
 0x235   : > { %v3613_v59 = vmax.f32 %v3171_v50, 0.0  ;;  %v3615_v8 = vmax.f32 %v3224_v45, 0.0  ;;  %v3756_v0 = vpack.c.bf16 %v3612_v63, %v3540_v4  ;;  %v3758_v47 = vpack.c.bf16 %v3614_v57, %v3542_v40 }
 0x236   : > { %v3262_v19 = vpop.f32.mrf.mxu0  ;;  %v3315_v33 = vpop.f32.mrf.mxu1 }
 0x237   : > { %v3757_v32 = vpack.c.bf16 %v3613_v59, %v3541_v35  ;;  %v3759_v27 = vpack.c.bf16 %v3615_v8, %v3543_v48  ;;  %v3263_v6 = vadd.f32 %v3262_v19, %v7660_v17  ;;  %v3316_v20 = vadd.f32 %v3315_v33, %v7660_v17 }
 0x238   : > { %v3264_v30 = vpop.f32.mrf.mxu0  ;;  %v3317_v7 = vpop.f32.mrf.mxu1  ;;  %v3261_v59 = vadd.f32 %v8686_v24, %v7660_v17 }
 0x239   : > { %5107 = vmatprep.subr.bf16.mxu0 %v3757_v32  ;;  %5148 = vmatprep.subr.bf16.mxu1 %v3759_v27  ;;  %v3265_v23 = vadd.f32 %v3264_v30, %v7678_v31  ;;  %v3318_v14 = vadd.f32 %v3317_v7, %v7678_v31  ;;  %v3401_v4 = vmax.f32 %v3263_v6, 0.0  ;;  %v3403_v40 = vmax.f32 %v3316_v20, 0.0 }
 0x23a   : > { %v3266_v12 = vpop.f32.mrf.mxu0  ;;  %v3319_v51 = vpop.f32.mrf.mxu1  ;;  %5108 = vmatpush1.bf16.msra.mxu0 %v3756_v0  ;;  %5149 = vmatpush1.bf16.msra.mxu1 %v3758_v47 }
 0x23b   : > { %5109 = vmatprep.subr.bf16.mxu0 %v3685_v41  ;;  %5150 = vmatprep.subr.bf16.mxu1 %v3687_v58  ;;  %v3267_v1 = vadd.f32 %v3266_v12, %v7678_v31  ;;  %v3320_v54 = vadd.f32 %v3319_v51, %v7678_v31  ;;  %v3314_v31 = vadd.f32 %v8688_v36, %v7660_v17  ;;  %v3472_v9 = vmax.f32 %v3265_v23, 0.0 }
 0x23c   : > { %v3270_v21 = vpop.f32.mrf.mxu0  ;;  %v3323_v13 = vpop.f32.mrf.mxu1  ;;  %v3474_v49 = vmax.f32 %v3318_v14, 0.0  ;;  %v3400_v17 = vmax.f32 %v3261_v59, 0.0 }
 0x23d   : > { %v3271_v26 = vadd.f32 %v3270_v21, %v7886_v11  ;;  %v3324_v61 = vadd.f32 %v3323_v13, %v7886_v11  ;;  %v3473_v50 = vmax.f32 %v3267_v1, 0.0  ;;  %v3475_v45 = vmax.f32 %v3320_v54, 0.0 }
 0x23e   : > { %v3272_v5 = vpop.f32.mrf.mxu0  ;;  %v3325_v18 = vpop.f32.mrf.mxu1  ;;  %5110 = vmatpush1.bf16.msra.mxu0 %v3684_v25  ;;  %5151 = vmatpush1.bf16.msra.mxu1 %v3686_v42  ;;  %v3402_v36 = vmax.f32 %v3314_v31, 0.0  ;;  %v3688_v58 = vpack.c.bf16 %v3472_v9, %v3400_v17 }
 0x23f   : > { %v3273_v22 = vadd.f32 %v3272_v5, %v7886_v11  ;;  %v3326_v44 = vadd.f32 %v3325_v18, %v7886_v11  ;;  %v3544_v8 = vmax.f32 %v3271_v26, 0.0  ;;  %v3689_v24 = vpack.c.bf16 %v3473_v50, %v3401_v4 }
 0x240   : > { %v3274_v53 = vpop.f32.mrf.mxu0  ;;  %v3327_v56 = vpop.f32.mrf.mxu1  ;;  %v3691_v0 = vpack.c.bf16 %v3475_v45, %v3403_v40  ;;  %v3690_v37 = vpack.c.bf16 %v3474_v49, %v3402_v36 }
 0x241   : > { %v3275_v16 = vadd.f32 %v3274_v53, %v7909_v38  ;;  %v3328_v46 = vadd.f32 %v3327_v56, %v7909_v38  ;;  %6773 = vmatmul.mubr.msk.bf16.vlgmr.msra.gmra.mxu0 %vm3771_vm2, %v8531_v62  ;;  %6774 = vmatmul.mubr.msk.bf16.vlgmr.msra.gmra.mxu1 %vm3771_vm2, %v8531_v62  ;;  %v3545_v57 = vmax.f32 %v3273_v22, 0.0  ;;  %v3547_v35 = vmax.f32 %v3326_v44, 0.0 }
 0x242   : > { %v3276_v43 = vpop.f32.mrf.mxu0  ;;  %v3329_v39 = vpop.f32.mrf.mxu1  ;;  %5209 = vmatprep.mubr.bf16.mxu0 %v9042_v52  ;;  %5250 = vmatprep.mubr.bf16.mxu1 %v9042_v52 }
 0x243   : > { %v3277_v15 = vadd.f32 %v3276_v43, %v7909_v38  ;;  %v3330_v29 = vadd.f32 %v3329_v39, %v7909_v38  ;;  %v3616_v10 = vmax.f32 %v3275_v16, 0.0  ;;  %v3618_v55 = vmax.f32 %v3328_v46, 0.0 }
 0x244   : > { %v8714_v63 = vpop.f32.mrf.mxu0  ;;  %v8716_v11 = vpop.f32.mrf.mxu1  ;;  %v3546_v38 = vmax.f32 %v3324_v61, 0.0 }
 0x245   : > { %v3617_v48 = vmax.f32 %v3277_v15, 0.0  ;;  %v3619_v52 = vmax.f32 %v3330_v29, 0.0  ;;  %v3760_v32 = vpack.c.bf16 %v3616_v10, %v3544_v8 }
 0x246   : > { %v8722_v2 = vpop.f32.mrf.mxu0  ;;  %v8724_v34 = vpop.f32.mrf.mxu1  ;;  %v3762_v27 = vpack.c.bf16 %v3618_v55, %v3546_v38 }
 0x247   : > { %v3761_v19 = vpack.c.bf16 %v3617_v48, %v3545_v57  ;;  %v3763_v33 = vpack.c.bf16 %v3619_v52, %v3547_v35 }
 0x248   : > { %v3813_v3 = vpop.f32.mrf.mxu0  ;;  %v3856_v28 = vpop.f32.mrf.mxu1 }
 0x249   : > { %5189 = vmatprep.subr.bf16.mxu0 %v3761_v19  ;;  %5230 = vmatprep.subr.bf16.mxu1 %v3763_v33  ;;  %v5331_v51 = vmax.f32 %v3813_v3, 0.0  ;;  %v5333_v25 = vmax.f32 %v3856_v28, 0.0 }
 0x24a   : > { %5190 = vmatpush1.bf16.msra.mxu0 %v3760_v32  ;;  %5231 = vmatpush1.bf16.msra.mxu1 %v3762_v27  ;;  %v3815_v47 = vpop.f32.mrf.mxu0  ;;  %v3858_v30 = vpop.f32.mrf.mxu1 }
 0x24b   : > { %5191 = vmatprep.subr.bf16.mxu0 %v3689_v24  ;;  %5232 = vmatprep.subr.bf16.mxu1 %v3691_v0  ;;  %v5332_v7 = vmax.f32 %v3815_v47, 0.0  ;;  %v5334_v41 = vmax.f32 %v3858_v30, 0.0 }
 0x24c   : > { %v8726_v60 = vpop.f32.mrf.mxu0  ;;  %v8728_v12 = vpop.f32.mrf.mxu1 }
 0x24d   : > { %9076 = vst [vmem:[#allocation15_spill] sm:$0xff] %v8726_v60  ;;  %9077 = vst [vmem:[#allocation18_spill] sm:$0xff] %v8728_v12 }
 0x24e   : > { %5192 = vmatpush1.bf16.msra.mxu0 %v3688_v58  ;;  %5233 = vmatpush1.bf16.msra.mxu1 %v3690_v37  ;;  %v8730_v42 = vpop.f32.mrf.mxu0  ;;  %v8732_v21 = vpop.f32.mrf.mxu1 }
 0x24f   : > { %9078 = vst [vmem:[#allocation8_spill] sm:$0xff] %v8730_v42  ;;  %9079 = vst [vmem:[#allocation9_spill] sm:$0xff] %v8732_v21  ;;  %5360 = vmatprep.subr.mxu0 %v5332_v7  ;;  %5437 = vmatprep.subr.mxu1 %v5334_v41 }
 0x250   : > { %v8734_v13 = vpop.f32.mrf.mxu0  ;;  %v8736_v5 = vpop.f32.mrf.mxu1 }
 0x251   : > { %6775 = vmatmul.mubr.msk.bf16.vlgmr.msra.gmra.mxu0 %vm3771_vm2, %v8531_v62  ;;  %6776 = vmatmul.mubr.msk.bf16.vlgmr.msra.gmra.mxu1 %vm3771_vm2, %v8531_v62 }
 0x252   : > { %5361 = vmatpush1.msra.mxu0 %v5331_v51  ;;  %5438 = vmatpush1.msra.mxu1 %v5333_v25  ;;  %v8742_v18 = vpop.f32.mrf.mxu0  ;;  %v8744_v6 = vpop.f32.mrf.mxu1 }
 0x254   : > { %v8746_v1 = vpop.f32.mrf.mxu0  ;;  %v8748_v54 = vpop.f32.mrf.mxu1 }
 0x256   : > { %v8750_v22 = vpop.f32.mrf.mxu0  ;;  %v8752_v53 = vpop.f32.mrf.mxu1 }
 0x258   : > { %v3985_v56 = vpop.f32.mrf.mxu0  ;;  %v4026_v44 = vpop.f32.mrf.mxu1 }
 0x25a   : > { %v3986_v16 = vpop.f32.mrf.mxu0  ;;  %v4027_v46 = vpop.f32.mrf.mxu1 }
 0x25c   : > { %v8754_v20 = vpop.f32.mrf.mxu0  ;;  %v8756_v62 = vpop.f32.mrf.mxu1 }
 0x25d   : > { %9080 = vst [vmem:[#allocation19_spill] sm:$0xff] %v8754_v20  ;;  %9081 = vst [vmem:[#allocation20_spill] sm:$0xff] %v8756_v62 }
 0x25e   : > { %v8758_v26 = vpop.f32.mrf.mxu0  ;;  %v8760_v61 = vpop.f32.mrf.mxu1 }
 0x25f   : > { %9082 = vst [vmem:[#allocation6_spill] sm:$0xff] %v8758_v26  ;;  %9083 = vst [vmem:[#allocation7_spill] sm:$0xff] %v8760_v61 }
 0x260   : > { %v4067_v43 = vpop.f32.mrf.mxu0  ;;  %v4108_v39 = vpop.f32.mrf.mxu1 }
 0x262   : > { %v4068_v23 = vpop.f32.mrf.mxu0  ;;  %v4109_v14 = vpop.f32.mrf.mxu1 }
 0x264   : > { %v8762_v15 = vpop.f32.mrf.mxu0  ;;  %v8764_v29 = vpop.f32.mrf.mxu1 }
 0x266   : > { %v8766_v50 = vpop.f32.mrf.mxu0  ;;  %v8768_v45 = vpop.f32.mrf.mxu1 }
 0x268   : > { %v4149_v10 = vpop.f32.mrf.mxu0  ;;  %v4190_v55 = vpop.f32.mrf.mxu1 }
 0x26a   : > { %v4150_v57 = vpop.f32.mrf.mxu0  ;;  %v4191_v35 = vpop.f32.mrf.mxu1 }
 0x26c   : > { %v8770_v48 = vpop.f32.mrf.mxu0  ;;  %v8772_v52 = vpop.f32.mrf.mxu1 }
 0x26d   : > { %9084 = vst [vmem:[#allocation21_spill] sm:$0xff] %v8770_v48  ;;  %9085 = vst [vmem:[#allocation24_spill] sm:$0xff] %v8772_v52 }
 0x26e   : > { %v8774_v59 = vpop.f32.mrf.mxu0  ;;  %v8776_v31 = vpop.f32.mrf.mxu1 }
 0x26f   : > { %9086 = vst [vmem:[#allocation22_spill] sm:$0xff] %v8774_v59  ;;  %9087 = vst [vmem:[#allocation23_spill] sm:$0xff] %v8776_v31 }
 0x270   : > { %v4231_v8 = vpop.f32.mrf.mxu0  ;;  %v4272_v38 = vpop.f32.mrf.mxu1 }
 0x271   : > { %v9022_v8 = vmov 0.0  }
 0x272   : > { %v4232_v4 = vpop.f32.mrf.mxu0  ;;  %v4273_v40 = vpop.f32.mrf.mxu1  ;;  %5412 = vmatprep.mubr.f32.mxu0 %v9022_v8  ;;  %5489 = vmatprep.mubr.f32.mxu1 %v9022_v8 }
 0x274   : > { %v8778_v19 = vpop.f32.mrf.mxu0  ;;  %v8780_v33 = vpop.f32.mrf.mxu1 }
 0x276   : > { %v8782_v9 = vpop.f32.mrf.mxu0  ;;  %v8784_v49 = vpop.f32.mrf.mxu1 }
 0x278   : > { %v4313_v32 = vpop.f32.mrf.mxu0  ;;  %v4354_v27 = vpop.f32.mrf.mxu1 }
 0x27a   : > { %v4314_v3 = vpop.f32.mrf.mxu0  ;;  %v4355_v28 = vpop.f32.mrf.mxu1 }
 0x27c   : > { %v8786_v24 = vpop.f32.mrf.mxu0  ;;  %v8788_v0 = vpop.f32.mrf.mxu1 }
 0x27d   : > { %9088 = vst [vmem:[#allocation10_spill] sm:$0xff] %v8786_v24  ;;  %9089 = vst [vmem:[#allocation11_spill] sm:$0xff] %v8788_v0 }
 0x27e   : > { %v8790_v17 = vpop.f32.mrf.mxu0  ;;  %v8792_v36 = vpop.f32.mrf.mxu1 }
 0x27f   : > { %9090 = vst [vmem:[#allocation16_spill] sm:$0xff] %v8790_v17  ;;  %9091 = vst [vmem:[#allocation13_spill] sm:$0xff] %v8792_v36 }
 0x280   : > { %v4395_v47 = vpop.f32.mrf.mxu0  ;;  %v4436_v30 = vpop.f32.mrf.mxu1 }
 0x282   : > { %v4396_v7 = vpop.f32.mrf.mxu0  ;;  %v4437_v41 = vpop.f32.mrf.mxu1 }
 0x284   : > { %v8794_v58 = vpop.f32.mrf.mxu0  ;;  %v8796_v37 = vpop.f32.mrf.mxu1 }
 0x286   : > { %v8798_v51 = vpop.f32.mrf.mxu0  ;;  %v8800_v25 = vpop.f32.mrf.mxu1 }
 0x288   : > { %v4477_v56 = vpop.f32.mrf.mxu0  ;;  %v4518_v44 = vpop.f32.mrf.mxu1 }
 0x28a   : > { %v4478_v16 = vpop.f32.mrf.mxu0  ;;  %v4519_v46 = vpop.f32.mrf.mxu1 }
 0x291   : > { %v8802_v43 = vpop.f32.mrf.mxu0  ;;  %v8804_v39 = vpop.f32.mrf.mxu1 }
 0x292   : > { %9092 = vst [vmem:[#allocation12_spill] sm:$0xff] %v8802_v43  ;;  %9093 = vst [vmem:[#allocation14_spill] sm:$0xff] %v8804_v39 }
 0x293   : > { %v8806_v23 = vpop.f32.mrf.mxu0  ;;  %v8808_v14 = vpop.f32.mrf.mxu1 }
 0x294   : > { %9094 = vst [vmem:[#allocation17_spill] sm:$0xff] %v8806_v23  ;;  %9095 = vst [vmem:[#allocation25_spill] sm:$0xff] %v8808_v14 }
 0x295   : > { %v4559_v10 = vpop.f32.mrf.mxu0  ;;  %v4600_v55 = vpop.f32.mrf.mxu1 }
 0x297   : > { %v4560_v57 = vpop.f32.mrf.mxu0  ;;  %v4601_v35 = vpop.f32.mrf.mxu1 }
 0x2a1   : > { %v8812_v38 = vpop.f32.mrf.mxu0  ;;  %v8814_v4 = vpop.f32.mrf.mxu1 }
 0x2a3   : > { %v8816_v40 = vpop.f32.mrf.mxu0  ;;  %v8818_v32 = vpop.f32.mrf.mxu1 }
 0x2a5   : > { %v4641_v27 = vpop.f32.mrf.mxu0  ;;  %v4682_v3 = vpop.f32.mrf.mxu1 }
 0x2a7   : > { %v4642_v28 = vpop.f32.mrf.mxu0  ;;  %v4683_v47 = vpop.f32.mrf.mxu1 }
 0x2b1   : > { %v8820_v30 = vpop.f32.mrf.mxu0  ;;  %v8822_v7 = vpop.f32.mrf.mxu1 }
 0x2b2   : > { %9096 = vst [vmem:[#allocation26_spill] sm:$0xff] %v8820_v30  ;;  %9097 = vst [vmem:[#allocation27_spill] sm:$0xff] %v8822_v7 }
 0x2b3   : > { %v8824_v41 = vpop.f32.mrf.mxu0  ;;  %v8826_v56 = vpop.f32.mrf.mxu1 }
 0x2b5   : > { %v4723_v44 = vpop.f32.mrf.mxu0  ;;  %v4764_v16 = vpop.f32.mrf.mxu1 }
 0x2b7   : > { %v4724_v46 = vpop.f32.mrf.mxu0  ;;  %v4765_v10 = vpop.f32.mrf.mxu1 }
 0x2c1   : > { %v8828_v55 = vpop.f32.mrf.mxu0  ;;  %v8830_v57 = vpop.f32.mrf.mxu1 }
 0x2c3   : > { %v4803_v35 = vpop.f32.mrf.mxu0  ;;  %v4844_v27 = vpop.f32.mrf.mxu1 }
 0x2c5   : > { %v4805_v3 = vpop.f32.mrf.mxu0  ;;  %v4846_v28 = vpop.f32.mrf.mxu1 }
 0x2c7   : > { %v4806_v47 = vpop.f32.mrf.mxu0  ;;  %v4847_v8 = vpop.f32.mrf.mxu1 }
 0x2d1   : > { %v8832_v12 = vpop.f32.mrf.mxu0  ;;  %v8834_v60 = vpop.f32.mrf.mxu1 }
 0x2d3   : > { %v8836_v21 = vpop.f32.mrf.mxu0  ;;  %v8838_v44 = vpop.f32.mrf.mxu1 }
 0x2d5   : > { %v4887_v16 = vpop.f32.mrf.mxu0  ;;  %v4928_v46 = vpop.f32.mrf.mxu1 }
 0x2d7   : > { %v4888_v10 = vpop.f32.mrf.mxu0  ;;  %v4929_v42 = vpop.f32.mrf.mxu1 }
 0x2e1   : > { %v4965_v62 = vpop.f32.mrf.mxu0  ;;  %v5006_v20 = vpop.f32.mrf.mxu1 }
 0x2e2   : > { %v5315_v7 = vmax.f32 %v4965_v62, 0.0  ;;  %v5317_v30 = vmax.f32 %v5006_v20, 0.0  ;;  %v5299_v20 = vmax.f32 %v8812_v38, 0.0  ;;  %v5301_v62 = vmax.f32 %v8814_v4, 0.0 }
 0x2e3   : > { %v4967_v61 = vpop.f32.mrf.mxu0  ;;  %v5008_v26 = vpop.f32.mrf.mxu1  ;;  %v5283_v38 = vmax.f32 %v8778_v19, 0.0  ;;  %v5268_v19 = vmax.f32 %v8750_v22, 0.0  ;;  %v5259_v22 = vmax.f32 %v8714_v63, 0.0 }
 0x2e4   : > { %v5316_v14 = vmax.f32 %v4967_v61, 0.0  ;;  %v5318_v23 = vmax.f32 %v5008_v26, 0.0  ;;  %v5300_v26 = vmax.f32 %v8816_v40, 0.0  ;;  %v5302_v61 = vmax.f32 %v8818_v32, 0.0 }
 0x2e5   : > { %v4969_v3 = vpop.f32.mrf.mxu0  ;;  %v5010_v28 = vpop.f32.mrf.mxu1 }
 0x2e7   : > { %v4970_v47 = vpop.f32.mrf.mxu0  ;;  %v5011_v8 = vpop.f32.mrf.mxu1 }
 0x2f1   : > { %v8840_v52 = vpop.f32.mrf.mxu0  ;;  %v8842_v48 = vpop.f32.mrf.mxu1 }
 0x2f3   : > { %v8844_v31 = vpop.f32.mrf.mxu0  ;;  %v8846_v59 = vpop.f32.mrf.mxu1 }
 0x2f5   : > { %v5051_v16 = vpop.f32.mrf.mxu0  ;;  %v5092_v46 = vpop.f32.mrf.mxu1 }
 0x2f7   : > { %v5052_v10 = vpop.f32.mrf.mxu0  ;;  %v5093_v42 = vpop.f32.mrf.mxu1 }
 0x2f8   : > { %v5308_v10 = vmax.f32 %v4803_v35, 0.0  ;;  %v5310_v42 = vmax.f32 %v4844_v27, 0.0  ;;  %v5320_v27 = vmax.f32 %v8844_v31, 0.0  ;;  %v5313_v31 = vmax.f32 %v8834_v60, 0.0  ;;  %v9103_v60 = vld [vmem:[#allocation12_spill] sm:$0xff] }
 0x301   : > { %v5129_v0 = vpop.f32.mrf.mxu0  ;;  %v5170_v24 = vpop.f32.mrf.mxu1 }
 0x302   : > { %v5323_v47 = vmax.f32 %v5129_v0, 0.0  ;;  %v5325_v8 = vmax.f32 %v5170_v24, 0.0  ;;  %v5309_v24 = vmax.f32 %v8830_v57, 0.0  ;;  %v5292_v0 = vmax.f32 %v8798_v51, 0.0 }
 0x303   : > { %v5131_v36 = vpop.f32.mrf.mxu0  ;;  %v5172_v17 = vpop.f32.mrf.mxu1  ;;  %v5285_v51 = vmax.f32 %v8780_v33, 0.0  ;;  %v5270_v33 = vmax.f32 %v8752_v53, 0.0  ;;  %v5261_v53 = vmax.f32 %v8716_v11, 0.0  ;;  %v5335_v11 = vmax.f32 %v8734_v13, 0.0  ;;  %v8890_v13 = vld [vmem:[%s9015_s3 + $0x8] sm:$0xff] }
 0x304   : > { %v5324_v3 = vmax.f32 %v5131_v36, 0.0  ;;  %v5326_v28 = vmax.f32 %v5172_v17, 0.0  ;;  %v5307_v17 = vmax.f32 %v8828_v55, 0.0  ;;  %v5294_v36 = vmax.f32 %v8800_v25, 0.0 }
 0x305   : > { %v5133_v39 = vpop.f32.mrf.mxu0  ;;  %v5174_v43 = vpop.f32.mrf.mxu1  ;;  %v5276_v25 = vmax.f32 %v8766_v50, 0.0  ;;  %v5267_v50 = vmax.f32 %v8746_v1, 0.0  ;;  %v8877_v1 = vld [vmem:[%s9015_s3] sm:$0xff]  ;;  %v5337_v55 = vmax.f32 %v8736_v5, 0.0  ;;  %v9098_v5 = vmov 0.0  }
 0x306   : > { %5362 = vmatprep.subr.mxu0 %v5324_v3  ;;  %5439 = vmatprep.subr.mxu1 %v5326_v28  ;;  %v5291_v43 = vmax.f32 %v8794_v58, 0.0  ;;  %v5293_v39 = vmax.f32 %v8796_v37, 0.0  ;;  %v5278_v58 = vmax.f32 %v8768_v45, 0.0  ;;  %v5275_v37 = vmax.f32 %v8762_v15, 0.0 }
 0x307   : > { %v5134_v16 = vpop.f32.mrf.mxu0  ;;  %v5175_v46 = vpop.f32.mrf.mxu1  ;;  %5363 = vmatpush1.msra.mxu0 %v5323_v47  ;;  %5440 = vmatpush1.msra.mxu1 %v5325_v8  ;;  %v5269_v45 = vmax.f32 %v8748_v54, 0.0  ;;  %v5260_v15 = vmax.f32 %v8722_v2, 0.0  ;;  %v5336_v2 = vmax.f32 %v8742_v18, 0.0  ;;  %v5322_v3 = vmax.f32 %v8846_v59, 0.0 }
 0x308   : > { %5364 = vmatprep.subr.mxu0 %v5316_v14  ;;  %5441 = vmatprep.subr.mxu1 %v5318_v23  ;;  %v5284_v23 = vmax.f32 %v8782_v9, 0.0  ;;  %v5286_v14 = vmax.f32 %v8784_v49, 0.0  ;;  %v5277_v9 = vmax.f32 %v8764_v29, 0.0  ;;  %v5262_v29 = vmax.f32 %v8724_v34, 0.0  ;;  %v9099_v46 = vld [vmem:[#allocation26_spill] sm:$0xff] }
 0x309   : > { %5365 = vmatpush1.msra.mxu0 %v5315_v7  ;;  %5442 = vmatpush1.msra.mxu1 %v5317_v30  ;;  %v5338_v34 = vmax.f32 %v8744_v6, 0.0  ;;  %v5319_v28 = vmax.f32 %v8840_v52, 0.0  ;;  %v5321_v47 = vmax.f32 %v8842_v48, 0.0  ;;  %v5312_v8 = vmax.f32 %v8836_v21, 0.0 }
 0x30a   : > { %5366 = vmatprep.subr.mxu0 %v5308_v10  ;;  %5443 = vmatprep.subr.mxu1 %v5310_v42  ;;  %v5314_v16 = vmax.f32 %v8838_v44, 0.0  ;;  %v5311_v59 = vmax.f32 %v8832_v12, 0.0  ;;  %v5304_v48 = vmax.f32 %v8824_v41, 0.0  ;;  %v5306_v52 = vmax.f32 %v8826_v56, 0.0  ;;  %v9100_v42 = vld [vmem:[#allocation27_spill] sm:$0xff]  ;;  %v9101_v44 = vld [vmem:[#allocation17_spill] sm:$0xff] }
 0x30b   : > { %5367 = vmatpush1.msra.mxu0 %v5307_v17  ;;  %5444 = vmatpush1.msra.mxu1 %v5309_v24  ;;  %v5303_v10 = vmax.f32 %v9099_v46, 0.0  ;;  %v5305_v21 = vmax.f32 %v9100_v42, 0.0  ;;  %v5296_v17 = vmax.f32 %v9101_v44, 0.0  ;;  %v9102_v24 = vld [vmem:[#allocation25_spill] sm:$0xff]  ;;  %v9105_v56 = vld [vmem:[#allocation16_spill] sm:$0xff] }
 0x30c   : > { %5368 = vmatprep.subr.mxu0 %v5300_v26  ;;  %5445 = vmatprep.subr.mxu1 %v5302_v61  ;;  %v5298_v12 = vmax.f32 %v9102_v24, 0.0  ;;  %v5295_v26 = vmax.f32 %v9103_v60, 0.0  ;;  %v9104_v61 = vld [vmem:[#allocation14_spill] sm:$0xff] }
 0x30d   : > { %5369 = vmatpush1.msra.mxu0 %v5299_v20  ;;  %5446 = vmatpush1.msra.mxu1 %v5301_v62  ;;  %v5297_v41 = vmax.f32 %v9104_v61, 0.0  ;;  %v5288_v20 = vmax.f32 %v9105_v56, 0.0  ;;  %v9106_v62 = vld [vmem:[#allocation13_spill] sm:$0xff] }
 0x30e   : > { %5370 = vmatprep.subr.mxu0 %v5292_v0  ;;  %5447 = vmatprep.subr.mxu1 %v5294_v36  ;;  %v5290_v0 = vmax.f32 %v9106_v62, 0.0  ;;  %v9107_v36 = vld [vmem:[#allocation10_spill] sm:$0xff] }
 0x30f   : > { %5371 = vmatpush1.msra.mxu0 %v5291_v43  ;;  %5448 = vmatpush1.msra.mxu1 %v5293_v39  ;;  %v5287_v43 = vmax.f32 %v9107_v36, 0.0  ;;  %v9108_v39 = vld [vmem:[#allocation11_spill] sm:$0xff] }
 0x310   : > { %5372 = vmatprep.subr.mxu0 %v5284_v23  ;;  %5449 = vmatprep.subr.mxu1 %v5286_v14  ;;  %v5289_v23 = vmax.f32 %v9108_v39, 0.0  ;;  %v9109_v14 = vld [vmem:[#allocation22_spill] sm:$0xff] }
 0x311   : > { %v5211_v4 = vpop.f32.mrf.mxu0  ;;  %v5252_v49 = vpop.f32.mrf.mxu1  ;;  %5373 = vmatpush1.msra.mxu0 %v5283_v38  ;;  %5450 = vmatpush1.msra.mxu1 %v5285_v51  ;;  %v5280_v38 = vmax.f32 %v9109_v14, 0.0  ;;  %v9110_v51 = vld [vmem:[#allocation23_spill] sm:$0xff] }
 0x312   : > { %5374 = vmatprep.subr.mxu0 %v5276_v25  ;;  %5451 = vmatprep.subr.mxu1 %v5278_v58  ;;  %v5327_v18 = vmax.f32 %v5211_v4, 0.0  ;;  %v5329_v6 = vmax.f32 %v5252_v49, 0.0  ;;  %v5282_v25 = vmax.f32 %v9110_v51, 0.0  ;;  %v9111_v58 = vld [vmem:[#allocation21_spill] sm:$0xff]  ;;  %v9113_v49 = vld [vmem:[#allocation6_spill] sm:$0xff] }
 0x313   : > { %v5213_v40 = vpop.f32.mrf.mxu0  ;;  %v5254_v32 = vpop.f32.mrf.mxu1  ;;  %5375 = vmatpush1.msra.mxu0 %v5275_v37  ;;  %5452 = vmatpush1.msra.mxu1 %v5277_v9  ;;  %v5279_v37 = vmax.f32 %v9111_v58, 0.0  ;;  %v9112_v9 = vld [vmem:[#allocation24_spill] sm:$0xff] }
 0x314   : > { %5376 = vmatprep.subr.mxu0 %v5268_v19  ;;  %5453 = vmatprep.subr.mxu1 %v5270_v33  ;;  %v5328_v57 = vmax.f32 %v5213_v40, 0.0  ;;  %v5330_v35 = vmax.f32 %v5254_v32, 0.0  ;;  %v5281_v4 = vmax.f32 %v9112_v9, 0.0  ;;  %v5272_v19 = vmax.f32 %v9113_v49, 0.0  ;;  %v9114_v33 = vld [vmem:[#allocation7_spill] sm:$0xff]  ;;  %v9116_v32 = vld [vmem:[#allocation20_spill] sm:$0xff] }
 0x315   : > { %v5215_v30 = vpop.f32.mrf.mxu0  ;;  %v5256_v7 = vpop.f32.mrf.mxu1  ;;  %5377 = vmatpush1.msra.mxu0 %v5267_v50  ;;  %5454 = vmatpush1.msra.mxu1 %v5269_v45  ;;  %v5274_v50 = vmax.f32 %v9114_v33, 0.0  ;;  %v9115_v45 = vld [vmem:[#allocation19_spill] sm:$0xff] }
 0x316   : > { %5378 = vmatprep.subr.mxu0 %v5260_v15  ;;  %5455 = vmatprep.subr.mxu1 %v5262_v29  ;;  %v5271_v40 = vmax.f32 %v9115_v45, 0.0  ;;  %v5273_v15 = vmax.f32 %v9116_v32, 0.0  ;;  %v9117_v29 = vld [vmem:[#allocation8_spill] sm:$0xff]  ;;  %v9119_v7 = vld [vmem:[#allocation15_spill] sm:$0xff] }
 0x317   : > { %v5216_v54 = vpop.f32.mrf.mxu0  ;;  %v5257_v63 = vpop.f32.mrf.mxu1  ;;  %5379 = vmatpush1.msra.mxu0 %v5259_v22  ;;  %5456 = vmatpush1.msra.mxu1 %v5261_v53  ;;  %v5264_v22 = vmax.f32 %v9117_v29, 0.0  ;;  %v9118_v53 = vld [vmem:[#allocation9_spill] sm:$0xff] }
 0x318   : > { %6777 = vmatmul.mubr.msk.f32.vlgmr.msra.gmra.mxu0 %vm5341_vm3, %v8877_v1  ;;  %6779 = vmatmul.mubr.msk.f32.vlgmr.msra.gmra.mxu1 %vm5341_vm3, %v8877_v1  ;;  %v5266_v30 = vmax.f32 %v9118_v53, 0.0 }
 0x319   : > { %5514 = vmatprep.subr.mxu0 %v5336_v2  ;;  %5591 = vmatprep.subr.mxu1 %v5338_v34  ;;  %v5263_v2 = vmax.f32 %v9119_v7, 0.0  ;;  %v9120_v34 = vld [vmem:[#allocation18_spill] sm:$0xff] }
 0x31a   : > { %5515 = vmatpush1.msra.mxu0 %v5335_v11  ;;  %5592 = vmatpush1.msra.mxu1 %v5337_v55  ;;  %v5265_v54 = vmax.f32 %v9120_v34, 0.0 }
 0x31b   : > { %5516 = vmatprep.subr.mxu0 %v5328_v57  ;;  %5593 = vmatprep.subr.mxu1 %v5330_v35 }
 0x31c   : > { %5418 = vmatprep.mubr.f32.mxu0 %v9098_v5  ;;  %5495 = vmatprep.mubr.f32.mxu1 %v9098_v5 }
 0x31d   : > { %5517 = vmatpush1.msra.mxu0 %v5327_v18  ;;  %5594 = vmatpush1.msra.mxu1 %v5329_v6 }
 0x31e   : > { %6778 = vmatmul.mubr.msk.f32.gmra.mxu0 %vm5341_vm3, %v8890_v13  ;;  %6780 = vmatmul.mubr.msk.f32.gmra.mxu1 %vm5341_vm3, %v8890_v13 }
 0x31f   : > { %5518 = vmatprep.subr.mxu0 %v5320_v27  ;;  %5595 = vmatprep.subr.mxu1 %v5322_v3 }
 0x320   : > { %5519 = vmatpush1.msra.mxu0 %v5319_v28  ;;  %5596 = vmatpush1.msra.mxu1 %v5321_v47 }
 0x321   : > { %5520 = vmatprep.subr.mxu0 %v5312_v8  ;;  %5597 = vmatprep.subr.mxu1 %v5314_v16 }
 0x322   : > { %5521 = vmatpush1.msra.mxu0 %v5311_v59  ;;  %5598 = vmatpush1.msra.mxu1 %v5313_v31  ;;  %v5672_v31 = vld [vmem:[%s9016_s4] sm:$0xff] }
 0x323   : > { %5522 = vmatprep.subr.mxu0 %v5304_v48  ;;  %5599 = vmatprep.subr.mxu1 %v5306_v52  ;;  %v5673_v48 = vld [vmem:[%s9016_s4 + $0x8] sm:$0xff] }
 0x324   : > { %5523 = vmatpush1.msra.mxu0 %v5303_v10  ;;  %5600 = vmatpush1.msra.mxu1 %v5305_v21 }
 0x325   : > { %5524 = vmatprep.subr.mxu0 %v5296_v17  ;;  %5601 = vmatprep.subr.mxu1 %v5298_v12 }
 0x326   : > { %5525 = vmatpush1.msra.mxu0 %v5295_v26  ;;  %5602 = vmatpush1.msra.mxu1 %v5297_v41 }
 0x327   : > { %5526 = vmatprep.subr.mxu0 %v5288_v20  ;;  %5603 = vmatprep.subr.mxu1 %v5290_v0 }
 0x328   : > { %5527 = vmatpush1.msra.mxu0 %v5287_v43  ;;  %5604 = vmatpush1.msra.mxu1 %v5289_v23 }
 0x329   : > { %5528 = vmatprep.subr.mxu0 %v5280_v38  ;;  %5605 = vmatprep.subr.mxu1 %v5282_v25 }
 0x32a   : > { %5529 = vmatpush1.msra.mxu0 %v5279_v37  ;;  %5606 = vmatpush1.msra.mxu1 %v5281_v4 }
 0x32b   : > { %5530 = vmatprep.subr.mxu0 %v5272_v19  ;;  %5607 = vmatprep.subr.mxu1 %v5274_v50  ;;  %v6005_v50 = vld [vmem:[%s9017_s5] sm:$0xff] }
 0x32c   : > { %5531 = vmatpush1.msra.mxu0 %v5271_v40  ;;  %5608 = vmatpush1.msra.mxu1 %v5273_v15 }
 0x32d   : > { %5532 = vmatprep.subr.mxu0 %v5264_v22  ;;  %5609 = vmatprep.subr.mxu1 %v5266_v30 }
 0x32e   : > { %5533 = vmatpush1.msra.mxu0 %v5263_v2  ;;  %5566 = vmatprep.mubr.f32.mxu0 %v9098_v5 }
 0x32f   : > { %5610 = vmatpush1.msra.mxu1 %v5265_v54  ;;  %5643 = vmatprep.mubr.f32.mxu1 %v9098_v5 }
 0x330   : > { %6781 = vmatmul.mubr.msk.f32.vlgmr.msra.gmra.mxu0 %vm5341_vm3, %v8877_v1  ;;  %6783 = vmatmul.mubr.msk.f32.vlgmr.msra.gmra.mxu1 %vm5341_vm3, %v8877_v1 }
 0x331   : > { %5572 = vmatprep.mubr.f32.mxu0 %v9098_v5  ;;  %5649 = vmatprep.mubr.f32.mxu1 %v9098_v5 }
 0x334   : > { %6782 = vmatmul.mubr.msk.f32.gmra.mxu0 %vm5341_vm3, %v8890_v13  ;;  %6784 = vmatmul.mubr.msk.f32.gmra.mxu1 %vm5341_vm3, %v8890_v13 }
 0x335   : > { %5745 = vmatprep.mubr.f32.mxu0 %v9098_v5  ;;  %5822 = vmatprep.mubr.f32.mxu1 %v9098_v5 }
 0x3d8   : > { %v5414_v63 = vpop.f32.mrf.mxu0  ;;  %v5491_v11 = vpop.f32.mrf.mxu1 }
 0x3d9   : > { %v5656_v13 = vmax.f32 %v5414_v63, 0.0  ;;  %v5658_v59 = vmax.f32 %v5491_v11, 0.0 }
 0x3da   : > { %v5416_v55 = vpop.f32.mrf.mxu0  ;;  %v5493_v57 = vpop.f32.mrf.mxu1 }
 0x3db   : > { %v5657_v8 = vmax.f32 %v5416_v55, 0.0  ;;  %v5659_v16 = vmax.f32 %v5493_v57, 0.0 }
 0x3de   : > { %v5420_v35 = vpop.f32.mrf.mxu0  ;;  %v5497_v1 = vpop.f32.mrf.mxu1 }
 0x3df   : > { %v5664_v18 = vmax.f32 %v5420_v35, 0.0  ;;  %v5666_v6 = vmax.f32 %v5497_v1, 0.0 }
 0x3e0   : > { %v5422_v27 = vpop.f32.mrf.mxu0  ;;  %v5499_v3 = vpop.f32.mrf.mxu1 }
 0x3e1   : > { %v5665_v28 = vmax.f32 %v5422_v27, 0.0  ;;  %v5667_v47 = vmax.f32 %v5499_v3, 0.0 }
 0x3e3   : > { %5709 = vmatprep.subr.mxu0 %v5665_v28  ;;  %5786 = vmatprep.subr.mxu1 %v5667_v47 }
 0x3e4   : > { %5710 = vmatpush1.msra.mxu0 %v5664_v18  ;;  %5787 = vmatpush1.msra.mxu1 %v5666_v6 }
 0x3e5   : > { %5711 = vmatprep.subr.mxu0 %v5657_v8  ;;  %5788 = vmatprep.subr.mxu1 %v5659_v16 }
 0x3e6   : > { %5712 = vmatpush1.msra.mxu0 %v5656_v13  ;;  %5789 = vmatpush1.msra.mxu1 %v5658_v59 }
 0x3e7   : > { %6785 = vmatmul.mubr.msk.f32.vlgmr.msra.gmra.mxu0 %vm5674_vm4, %v5672_v31  ;;  %6787 = vmatmul.mubr.msk.f32.vlgmr.msra.gmra.mxu1 %vm5674_vm4, %v5672_v31 }
 0x3e8   : > { %5751 = vmatprep.mubr.f32.mxu0 %v9098_v5  ;;  %5828 = vmatprep.mubr.f32.mxu1 %v9098_v5 }
 0x3eb   : > { %6786 = vmatmul.mubr.msk.f32.gmra.mxu0 %vm5674_vm4, %v5673_v48  ;;  %6788 = vmatmul.mubr.msk.f32.gmra.mxu1 %vm5674_vm4, %v5673_v48 }
 0x3ec   : > { %5899 = vmatprep.mubr.f32.mxu0 %v9098_v5  ;;  %5976 = vmatprep.mubr.f32.mxu1 %v9098_v5 }
 0x3f0   : > { %v5568_v52 = vpop.f32.mrf.mxu0  ;;  %v5645_v46 = vpop.f32.mrf.mxu1 }
 0x3f1   : > { %v5660_v20 = vmax.f32 %v5568_v52, 0.0  ;;  %v5662_v62 = vmax.f32 %v5645_v46, 0.0 }
 0x3f2   : > { %v5570_v10 = vpop.f32.mrf.mxu0  ;;  %v5647_v42 = vpop.f32.mrf.mxu1 }
 0x3f3   : > { %v5661_v41 = vmax.f32 %v5570_v10, 0.0  ;;  %v5663_v56 = vmax.f32 %v5647_v42, 0.0 }
 0x3f4   : > { %v5574_v21 = vpop.f32.mrf.mxu0  ;;  %v5651_v44 = vpop.f32.mrf.mxu1 }
 0x3f5   : > { %v5668_v26 = vmax.f32 %v5574_v21, 0.0  ;;  %v5670_v61 = vmax.f32 %v5651_v44, 0.0 }
 0x3f6   : > { %v5576_v17 = vpop.f32.mrf.mxu0  ;;  %v5653_v24 = vpop.f32.mrf.mxu1 }
 0x3f7   : > { %v5669_v12 = vmax.f32 %v5576_v17, 0.0  ;;  %v5671_v60 = vmax.f32 %v5653_v24, 0.0 }
 0x3f9   : > { %5863 = vmatprep.subr.mxu0 %v5669_v12  ;;  %5940 = vmatprep.subr.mxu1 %v5671_v60 }
 0x3fa   : > { %5864 = vmatpush1.msra.mxu0 %v5668_v26  ;;  %5941 = vmatpush1.msra.mxu1 %v5670_v61 }
 0x3fb   : > { %5865 = vmatprep.subr.mxu0 %v5661_v41  ;;  %5942 = vmatprep.subr.mxu1 %v5663_v56 }
 0x3fc   : > { %5866 = vmatpush1.msra.mxu0 %v5660_v20  ;;  %5943 = vmatpush1.msra.mxu1 %v5662_v62 }
 0x3fd   : > { %6789 = vmatmul.mubr.msk.f32.vlgmr.msra.gmra.mxu0 %vm5674_vm4, %v5672_v31  ;;  %6791 = vmatmul.mubr.msk.f32.vlgmr.msra.gmra.mxu1 %vm5674_vm4, %v5672_v31 }
 0x3fe   : > { %5905 = vmatprep.mubr.f32.mxu0 %v9098_v5  ;;  %5982 = vmatprep.mubr.f32.mxu1 %v9098_v5 }
 0x401   : > { %6790 = vmatmul.mubr.msk.f32.gmra.mxu0 %vm5674_vm4, %v5673_v48  ;;  %6792 = vmatmul.mubr.msk.f32.gmra.mxu1 %vm5674_vm4, %v5673_v48 }
 0x402   : > { %6073 = vmatprep.mubr.f32.mxu0 %v9098_v5  ;;  %6144 = vmatprep.mubr.f32.mxu1 %v9098_v5 }
 0x4a7   : > { %v5747_v0 = vpop.f32.mrf.mxu0  ;;  %v5824_v36 = vpop.f32.mrf.mxu1 }
 0x4a8   : > { %v5989_v19 = vmax.f32 %v5747_v0, 0.0  ;;  %v5991_v33 = vmax.f32 %v5824_v36, 0.0  ;;  %v7032_v36 = vmov 1966171168  }
 0x4a9   : > { %v5749_v43 = vpop.f32.mrf.mxu0  ;;  %v5826_v39 = vpop.f32.mrf.mxu1 }
 0x4aa   : > { %v5990_v37 = vmax.f32 %v5749_v43, 0.0  ;;  %v5992_v9 = vmax.f32 %v5826_v39, 0.0  ;;  %v6354_v43 = vunpack.c.l.s4 %v7032_v36  ;;  %v6356_v39 = vlaneseq }
 0x4ab   : > { %v5753_v23 = vpop.f32.mrf.mxu0  ;;  %v5830_v14 = vpop.f32.mrf.mxu1 }
 0x4ac   : > { %v5997_v38 = vmax.f32 %v5753_v23, 0.0  ;;  %v5999_v51 = vmax.f32 %v5830_v14, 0.0 }
 0x4ad   : > { %v5755_v25 = vpop.f32.mrf.mxu0  ;;  %v5832_v58 = vpop.f32.mrf.mxu1 }
 0x4ae   : > { %v5998_v4 = vmax.f32 %v5755_v25, 0.0  ;;  %v6000_v49 = vmax.f32 %v5832_v58, 0.0  ;;  %v6357_v25 = vshrl.u32 %v6356_v39, 7 }
 0x4b0   : > { %6037 = vmatprep.subr.mxu0 %v5998_v4  ;;  %6108 = vmatprep.subr.mxu1 %v6000_v49 }
 0x4b1   : > { %6038 = vmatpush1.msra.mxu0 %v5997_v38  ;;  %6109 = vmatpush1.msra.mxu1 %v5999_v51  ;;  %v6355_v51 = vunpack.c.0.s8 %v6354_v43 }
 0x4b2   : > { %6039 = vmatprep.subr.mxu0 %v5990_v37  ;;  %6110 = vmatprep.subr.mxu1 %v5992_v9 }
 0x4b3   : > { %6040 = vmatpush1.msra.mxu0 %v5989_v19  ;;  %6111 = vmatpush1.msra.mxu1 %v5991_v33  ;;  %v6358_v4 = vsub.s32 %v6355_v51, %v6357_v25 }
 0x4b4   : > { %6793 = vmatmul.mubr.msk.f32.vlgmr.msra.gmra.mxu0 %vm5674_vm4, %v6005_v50  ;;  %6794 = vmatmul.mubr.msk.f32.vlgmr.msra.gmra.mxu1 %vm5674_vm4, %v6005_v50 }
 0x4b5   : > { %6215 = vmatprep.mubr.f32.mxu0 %v9098_v5  ;;  %6286 = vmatprep.mubr.f32.mxu1 %v9098_v5 }
 0x4bd   : > { %v5901_v45 = vpop.f32.mrf.mxu0  ;;  %v5978_v40 = vpop.f32.mrf.mxu1 }
 0x4be   : > { %v5993_v55 = vmax.f32 %v5901_v45, 0.0  ;;  %v5995_v57 = vmax.f32 %v5978_v40, 0.0 }
 0x4bf   : > { %v5903_v32 = vpop.f32.mrf.mxu0  ;;  %v5980_v15 = vpop.f32.mrf.mxu1 }
 0x4c0   : > { %v5994_v63 = vmax.f32 %v5903_v32, 0.0  ;;  %v5996_v11 = vmax.f32 %v5980_v15, 0.0 }
 0x4c1   : > { %v5907_v29 = vpop.f32.mrf.mxu0  ;;  %v5984_v22 = vpop.f32.mrf.mxu1 }
 0x4c2   : > { %v6001_v34 = vmax.f32 %v5907_v29, 0.0  ;;  %v6003_v54 = vmax.f32 %v5984_v22, 0.0 }
 0x4c3   : > { %v5909_v53 = vpop.f32.mrf.mxu0  ;;  %v5986_v30 = vpop.f32.mrf.mxu1 }
 0x4c4   : > { %v6002_v7 = vmax.f32 %v5909_v53, 0.0  ;;  %v6004_v2 = vmax.f32 %v5986_v30, 0.0 }
 0x4c6   : > { %6179 = vmatprep.subr.mxu0 %v6002_v7  ;;  %6250 = vmatprep.subr.mxu1 %v6004_v2 }
 0x4c7   : > { %6180 = vmatpush1.msra.mxu0 %v6001_v34  ;;  %6251 = vmatpush1.msra.mxu1 %v6003_v54 }
 0x4c8   : > { %6181 = vmatprep.subr.mxu0 %v5994_v63  ;;  %6252 = vmatprep.subr.mxu1 %v5996_v11 }
 0x4c9   : > { %6182 = vmatpush1.msra.mxu0 %v5993_v55  ;;  %6253 = vmatpush1.msra.mxu1 %v5995_v57 }
 0x4ca   : > { %6795 = vmatmul.mubr.msk.f32.vlgmr.msra.gmra.mxu0 %vm5674_vm4, %v6005_v50  ;;  %6796 = vmatmul.mubr.msk.f32.vlgmr.msra.gmra.mxu1 %vm5674_vm4, %v6005_v50 }
 0x574   : > { %v6075_v5 = vpop.f32.mrf.mxu0  ;;  %v6146_v35 = vpop.f32.mrf.mxu1 }
 0x575   : > { %v6797_v18 = vmul.f32 -1.442695, %v6075_v5  ;;  %v6799_v27 = vmul.f32 -1.442695, %v6146_v35 }
 0x576   : > { %v6077_v1 = vpop.f32.mrf.mxu0  ;;  %v6148_v6 = vpop.f32.mrf.mxu1 }
 0x577   : > { %v6798_v3 = vmul.f32 -1.442695, %v6077_v1  ;;  %v6800_v28 = vmul.f32 -1.442695, %v6148_v6  ;;  %6933 = vpow2.f32 %v6797_v18 }
 0x578   : > { %6935 = vpow2.f32 %v6799_v27 }
 0x579   : > { %6937 = vpow2.f32 %v6798_v3 }
 0x57a   : > { %6939 = vpow2.f32 %v6800_v28 }
 0x584   : > { %v6934_v46 = vpop.eup %6933 }
 0x585   : > { %v6936_v10 = vpop.eup %6935  ;;  %v6317_v44 = vadd.f32 1.0, %v6934_v46 }
 0x586   : > { %v6938_v42 = vpop.eup %6937  ;;  %v6319_v17 = vadd.f32 1.0, %v6936_v10 }
 0x587   : > { %v6940_v21 = vpop.eup %6939  ;;  %v6318_v24 = vadd.f32 1.0, %v6938_v42 }
 0x588   : > { %v6320_v12 = vadd.f32 1.0, %v6940_v21 }
 0x58a   : > { %v6217_v47 = vpop.f32.mrf.mxu0  ;;  %v6288_v8 = vpop.f32.mrf.mxu1 }
 0x58b   : > { %v6801_v16 = vmul.f32 -1.442695, %v6217_v47  ;;  %v6803_v13 = vmul.f32 -1.442695, %v6288_v8 }
 0x58c   : > { %v6219_v59 = vpop.f32.mrf.mxu0  ;;  %v6290_v31 = vpop.f32.mrf.mxu1 }
 0x58d   : > { %6941 = vpow2.f32 %v6801_v16  ;;  %v6802_v48 = vmul.f32 -1.442695, %v6219_v59  ;;  %v6804_v52 = vmul.f32 -1.442695, %v6290_v31 }
 0x58e   : > { %6943 = vpow2.f32 %v6803_v13 }
 0x58f   : > { %6945 = vpow2.f32 %v6802_v48 }
 0x590   : > { %6947 = vpow2.f32 %v6804_v52 }
 0x591   : > { %6949 = vrcp.f32 %v6317_v44 }
 0x592   : > { %6951 = vrcp.f32 %v6319_v17 }
 0x593   : > { %6953 = vrcp.f32 %v6318_v24 }
 0x594   : > { %6955 = vrcp.f32 %v6320_v12 }
 0x59a   : > { %v6942_v60 = vpop.eup %6941 }
 0x59b   : > { %v6944_v26 = vpop.eup %6943  ;;  %v6321_v61 = vadd.f32 1.0, %v6942_v60 }
 0x59c   : > { %v6946_v41 = vpop.eup %6945  ;;  %v6323_v56 = vadd.f32 1.0, %v6944_v26 }
 0x59d   : > { %v6948_v20 = vpop.eup %6947  ;;  %6957 = vrcp.f32 %v6321_v61  ;;  %v6322_v62 = vadd.f32 1.0, %v6946_v41 }
 0x59e   : > { %6959 = vrcp.f32 %v6323_v56  ;;  %v6324_v0 = vadd.f32 1.0, %v6948_v20  ;;  %v6950_v23 = vpop.eup %6949 }
 0x59f   : > { %6961 = vrcp.f32 %v6322_v62  ;;  %v6952_v14 = vpop.eup %6951 }
 0x5a0   : > { %6963 = vrcp.f32 %v6324_v0  ;;  %v6954_v38 = vpop.eup %6953 }
 0x5a1   : > { %v6956_v58 = vpop.eup %6955  ;;  %v6349_v37 = vcombine.low %v6950_v23, %v6954_v38 }
 0x5a2   : > { %v6350_v9 = vcombine.low %v6952_v14, %v6956_v58 }
 0x5a3   : > { %v6359_v50 = vrot.slane %v6349_v37, %v6358_v4 }
 0x5a4   : > { %v6366_v45 = vrot.slane %v6350_v9, %v6358_v4 }
 0x5a6   : > { %v6381_v53 = vcombine.low %v6359_v50, %v6366_v45 }
 0x5a8   : > { %v6389_v7 = vrot.slane %v6381_v53, %v6358_v4 }
 0x5aa   : > { %v6958_v49 = vpop.eup %6957 }
 0x5ab   : > { %v6960_v19 = vpop.eup %6959 }
 0x5ac   : > { %v6962_v33 = vpop.eup %6961 }
 0x5ad   : > { %v6964_v40 = vpop.eup %6963  ;;  %v6351_v32 = vcombine.low %v6958_v49, %v6962_v33 }
 0x5ae   : > { %v6352_v15 = vcombine.low %v6960_v19, %v6964_v40 }
 0x5af   : > { %v6373_v29 = vrot.slane %v6351_v32, %v6358_v4 }
 0x5b0   : > { %v6380_v22 = vrot.slane %v6352_v15, %v6358_v4 }
 0x5b2   : > { %v6382_v30 = vcombine.low %v6373_v29, %v6380_v22 }
 0x5b4   : > { %v6396_v2 = vrot.slane %v6382_v30, %v6358_v4 }
 0x5b6   : > { %v6397_v34 = vcombine.low %v6389_v7, %v6396_v2 }
 0x5b8   : > { %6399 = vst [vmem:[%s510_s15] sm:$0xff] %v6397_v34 }
 0x5b9   : > { %6981 = shalt.err (!%p6978_p5)
}
 0x5ba   : > { %s6982_s8 = scalar_lea.hbm %s6413_s19, 128  ;;  %s6986_s13 = scalar_lea.hbm %s9019_s7, 256 }
 0x5bb   : > { %p6983_p7 = scmp.ne.s32.totalorder %s6413_s19, %s6982_s8  ;;  %p6987_p12 = scmp.lt.s32.totalorder %s6413_s19, %s9019_s7 }
 0x5bc   : > { %p6988_p13 = scmp.lt.s32.totalorder %s6986_s13, %s6982_s8 }
 0x5bd   : > { %p6984_p10 = pnand %p6983_p7, %p7112_p6 }
 0x5be   : > { %p6989_p0 = por %p6988_p13, %p6987_p12 }
 0x5bf   : > { %p6985_p11 = pneg %p6984_p10 }
 0x5c1   : > { %p6990_p9 = pnand %p6989_p0, %p6985_p11 }
 0x5c3   : > { %6993 = shalt.err (!%p6990_p9)
}
 0x5c4   : > { %6814 = dma.vmem_to_hbm [thread:$0]  (%p7112_p6), %s6416_s16, 128, %s6413_s19, %s6401_s21  }
 0x5c5 PF: > { %s6427_s17 = sand.u32 1, %s7016_s24   ;;  %p9121_p1 = scmp.ge.s32.totalorder %s7028_s27, 2 }
 0x5c6   : > { %s6428_s18 = scalar_lea.sflag [#allocation4], %s6427_s17 }
 0x5c7   : > { %p6817_p2 = pnand %p9121_p1, %p7116_p8 }
 0x5c9   : > { %p6818_p3 = pneg %p6817_p2 }
 0x5cb   : > { %7011 = dma.done.wait (%p6818_p3), %s6428_s18, 128  }
 0x5cc   : > { %7013 = vsyncadd (%p6818_p3), %s6428_s18, 4294967168  ;;  %p17_p9 = scmp.ge.s32.totalorder %s7097_s30, 4   ;;  %s9122_s24 = smov %s7020_s25 }
 0x5cd   : > { %s9123_s25 = smov %s7024_s26  ;;  %s9124_s26 = smov %s7110_s10 }
 0x5ce   : > { %s9125_s27 = smov %s7097_s30  ;;  %19 = sbr.rel (!%p17_p9) target bundleno = 3 (0x3), region = 111 }
 0x5d3   :  { %6433 = vsyncpa [#allocation4], 1 }
 0x5d4   :  { %6435 = vsyncpa [#allocation4 + $0x1], 1 }

</bundles_post_ra>
